<compile_context>
chip_gen: v7x
topology: tpu7x:2x2x1
jax: 0.10.0
libtpu: 0.0.40
codegen_flags: <defaults>
</compile_context>

<pallas_src>
import functools

import jax
import jax.numpy as jnp
from jax.experimental import pallas as pl
from jax.experimental.pallas import tpu as pltpu

_K = 5          # Conv1d kernel size
_BN_EPS = 1e-5  # torch.nn.BatchNorm1d default eps
_HALO = 128     # lane-aligned left halo of the replicate-padded conv buffer


# ----------------------------------------------------------------------------
# The fused whole-model kernel (one grid step == one batch element)
# ----------------------------------------------------------------------------
def _gem_cnn_kernel(x_ref, w1_ref, w2_ref, wd_ref, sh_ref, pool1_ref,
                    pool2_ref, out_ref, xe_ref, col_ref, *,
                    length, cp, c_out, p, eps):
    """conv_block1 -> GeM -> conv_block2 -> GeM -> conv_block3, one batch elem.

    x_ref     : (1, cp, L)      channel-padded input, lane-dense (C, L) layout
    w1_ref    : (3, cp, K*cp)   conv1 weights, im2col layout, BN1 scale folded
    w2_ref    : (3, cp, K*cp)   conv2 weights, im2col layout, BN2 scale folded
    wd_ref    : (3, cp, cp)     1x1 downsample weights, BNd scale folded
    sh_ref    : (3, cp, 3)      per-block shifts [t1, t2, td] (bias+BN folded)
    pool1_ref : (L, L//3)       GeM pooling matrix (values 1/3)
    pool2_ref : (L//3, L//9)
    out_ref   : (1, c_out, L//9)
    xe_ref    : (cp, L+2*HALO)  replicate-padded conv input (VMEM halo buffer)
    col_ref   : (K*cp, L)       im2col scratch, taps at 8-aligned sublanes
    """
    h0 = _HALO

    def conv5(v, w, t, lc):
        # K=5 tap conv (stride 1, replicate pad) + folded-BN affine, 1 matmul.
        # Materialize the replicate-padded row once: main body lane-aligned,
        # two 2-lane edge-replica stores (no per-tap broadcast/select).
        xe_ref[:, h0:h0 + lc] = v
        xe_ref[:, h0 - 2:h0] = jnp.broadcast_to(v[:, 0:1], (cp, 2))
        xe_ref[:, h0 + lc:h0 + lc + 2] = jnp.broadcast_to(v[:, lc - 1:lc],
                                                          (cp, 2))
        # Pack the K shifted taps at 8-aligned sublane offsets (unmasked vst).
        for k in range(_K):
            src = h0 - 2 + k
            col_ref[k * cp:(k + 1) * cp, 0:lc] = xe_ref[:, src:src + lc]
        # Contract all taps in a single MXU push.
        y = jnp.dot(w, col_ref[:, 0:lc], preferred_element_type=jnp.float32)
        return y + t

    def conv_block(v, i, lc):
        # Conv1dBlock(skip_connection=True, relu); Dropout1d(0.0) == identity.
        t1 = sh_ref[i, :, 0:1]
        t2 = sh_ref[i, :, 1:2]
        td = sh_ref[i, :, 2:3]
        h = jnp.maximum(conv5(v, w1_ref[i], t1, lc), 0.0)     # conv1+BN1+ReLU
        y = conv5(h, w2_ref[i], t2, lc)                       # conv2+BN2
        ds = jnp.dot(wd_ref[i], v,
                     preferred_element_type=jnp.float32) + td  # 1x1 conv + BNd
        return jnp.maximum(y + ds, 0.0)                        # +skip, ReLU

    def gem_pool(y, pool_ref):
        # GeM(kernel=3): avg_pool(clamp(y, eps)^p, 3, 3)^(1/p).  The pooling
        # matrix (values 1/3) does window-sum + stride-3 select + mean at once.
        c = jnp.maximum(y, eps)
        c = c * c * c if p == 3.0 else c ** p   # integer cube -> VPU, no EUP
        s = jnp.dot(c, pool_ref[...], preferred_element_type=jnp.float32)
        return s ** (1.0 / p)

    v = x_ref[0]                                            # (cp, L)
    v = gem_pool(conv_block(v, 0, length), pool1_ref)       # (cp, L//3)
    v = gem_pool(conv_block(v, 1, length // 3), pool2_ref)  # (cp, L//9)
    v = conv_block(v, 2, length // 9)                       # (cp, L//9)
    out_ref[0] = v[0:c_out, :]                              # drop channel pad


# ----------------------------------------------------------------------------
# pallas_call wrapper: whole forward in ONE kernel launch (+ 2 XLA layout ops)
# ----------------------------------------------------------------------------
def gem_light_cnn_1d(x, packed, *, p=3.0, eps=1e-6):
    """x: (B, L, C) -> (B, L // 9, C)."""
    B, L, C = x.shape
    assert L % 9 == 0, "length must be divisible by 9 (two GeM /3 pools)"
    cp = packed["w1"].shape[1]          # padded channel width (multiple of 8)
    l9 = L // 9

    # TODO(synk): boundary (B,L,C)<->(B,C,L) transposes (+ zero channel pad)
    # stay in XLA — lane-layout boundary, tiny tensors.
    xt = jnp.transpose(x, (0, 2, 1))                   # (B, C, L)
    xp = jnp.pad(xt, ((0, 0), (0, cp - C), (0, 0)))    # (B, cp, L)

    def _const_spec(a):                 # full array as one block, fetched once
        return pl.BlockSpec(a.shape, lambda b, nd=a.ndim: (0,) * nd)

    kernel = functools.partial(_gem_cnn_kernel, length=L, cp=cp, c_out=C,
                               p=p, eps=eps)
    y = pl.pallas_call(
        kernel,
        out_shape=jax.ShapeDtypeStruct((B, C, l9), jnp.float32),
        grid=(B,),
        in_specs=[pl.BlockSpec((1, cp, L), lambda b: (b, 0, 0)),
                  _const_spec(packed["w1"]),
                  _const_spec(packed["w2"]),
                  _const_spec(packed["wd"]),
                  _const_spec(packed["sh"]),
                  _const_spec(packed["pool1"]),
                  _const_spec(packed["pool2"])],
        out_specs=pl.BlockSpec((1, C, l9), lambda b: (b, 0, 0)),
        scratch_shapes=[pltpu.VMEM((cp, L + 2 * _HALO), jnp.float32),
                        pltpu.VMEM((_K * cp, L), jnp.float32)],
        compiler_params=pltpu.CompilerParams(
            dimension_semantics=("parallel",)),
    )(xp, packed["w1"], packed["w2"], packed["wd"], packed["sh"],
      packed["pool1"], packed["pool2"])
    return jnp.transpose(y, (0, 2, 1))                 # (B, L//9, C)


# ----------------------------------------------------------------------------
# One-time parameter packing: fold BN into weights, pad channels, stack blocks
# ----------------------------------------------------------------------------
def _bn_scale_shift(gamma, beta):
    # eval-mode BatchNorm1d with fresh running stats (mean=0, var=1)
    s = gamma / jnp.sqrt(1.0 + _BN_EPS)
    return s, beta


def _pack_block(prm, cin, cout, cp):
    s1, be1 = _bn_scale_shift(prm["g1"], prm["be1"])
    s2, be2 = _bn_scale_shift(prm["g2"], prm["be2"])
    sd, bed = _bn_scale_shift(prm["gd"], prm["bed"])

    def im2col_weight(w, s, n_in):
        # W[co, k*cp + ci] = s[co] * w[co, ci, k], zero padded to (cp, K*cp)
        wk = jnp.transpose(w, (0, 2, 1)) * s[:, None, None]   # (cout, K, cin)
        return (jnp.zeros((cp, _K, cp), jnp.float32)
                .at[:cout, :, :n_in].set(wk).reshape(cp, _K * cp))

    w1 = im2col_weight(prm["w1"], s1, cin)
    w2 = im2col_weight(prm["w2"], s2, cout)
    wd = (jnp.zeros((cp, cp), jnp.float32)
          .at[:cout, :cin].set(prm["wd"][:, :, 0] * sd[:, None]))
    pad = lambda v: jnp.zeros((cp,), jnp.float32).at[:cout].set(v)
    sh = jnp.stack([pad(prm["b1"] * s1 + be1),     # conv bias folded into BN
                    pad(prm["b2"] * s2 + be2),
                    pad(bed)], axis=1)             # (cp, 3)
    return w1, w2, wd, sh


def _pool_matrix(n):
    # P[l, j] = 1/3 if l // 3 == j else 0: 3-window sum + stride-3 + mean.
    rows = jnp.arange(n)[:, None] // 3
    cols = jnp.arange(n // 3)[None, :]
    return (rows == cols).astype(jnp.float32) / 3.0


def pack_model_params(params, in_channels, length):
    c = in_channels
    cp = max(8, ((2 * c + 7) // 8) * 8)   # pad every channel dim to >= 8
    blocks = [(params["block1"], c, 2 * c),
              (params["block2"], 2 * c, 2 * c),
              (params["block3"], 2 * c, c)]
    w1, w2, wd, sh = zip(*(_pack_block(b, ci, co, cp) for b, ci, co in blocks))
    return {"w1": jnp.stack(w1), "w2": jnp.stack(w2), "wd": jnp.stack(wd),
            "sh": jnp.stack(sh),
            "pool1": _pool_matrix(length), "pool2": _pool_matrix(length // 3)}


# ----------------------------------------------------------------------------
# Raw (PyTorch-layout) parameter init
# ----------------------------------------------------------------------------
def _uniform(key, shape, bound):
    return jax.random.uniform(key, shape, jnp.float32, -bound, bound)


def init_block_params(key, cin, cout, ksz=_K):
    ks = jax.random.split(key, 10)
    b1 = (cin * ksz) ** -0.5
    b2 = (cout * ksz) ** -0.5
    return {
        "w1": _uniform(ks[0], (cout, cin, ksz), b1),     # torch (Cout, Cin, K)
        "b1": _uniform(ks[1], (cout,), b1),
        "g1": jax.random.uniform(ks[2], (cout,), jnp.float32, 0.5, 1.5),
        "be1": jax.random.uniform(ks[3], (cout,), jnp.float32, -0.1, 0.1),
        "w2": _uniform(ks[4], (cout, cout, ksz), b2),
        "b2": _uniform(ks[5], (cout,), b2),
        "g2": jax.random.uniform(ks[6], (cout,), jnp.float32, 0.5, 1.5),
        "be2": jax.random.uniform(ks[7], (cout,), jnp.float32, -0.1, 0.1),
        "wd": _uniform(ks[8], (cout, cin, 1), cin ** -0.5),
        "gd": jax.random.uniform(ks[9], (cout,), jnp.float32, 0.5, 1.5),
        "bed": jnp.zeros((cout,), jnp.float32),
    }


def init_model_params(key, in_channels):
    k1, k2, k3 = jax.random.split(key, 3)
    return {
        "block1": init_block_params(k1, in_channels, 2 * in_channels),
        "block2": init_block_params(k2, 2 * in_channels, 2 * in_channels),
        "block3": init_block_params(k3, 2 * in_channels, in_channels),
    }


# ----------------------------------------------------------------------------
# Pure-JAX reference (mirror of GemLightCNN1DModel.forward, eval mode)
# ----------------------------------------------------------------------------
def reference_forward(x, params, *, p=3.0, eps=1e-6):
    def conv1d(v, w, b):                 # v: (B, C, L), replicate padding
        k = w.shape[-1]
        pad = (k - 1) // 2
        vp = jnp.pad(v, ((0, 0), (0, 0), (pad, pad)), mode="edge")
        out = sum(jnp.einsum("oi,bil->bol", w[:, :, t],
                             vp[:, :, t:t + v.shape[-1]]) for t in range(k))
        return out + b[None, :, None]

    def bn(v, gamma, beta):
        s = gamma / jnp.sqrt(1.0 + _BN_EPS)
        return v * s[None, :, None] + beta[None, :, None]

    def conv_block(v, prm):
        h = jnp.maximum(bn(conv1d(v, prm["w1"], prm["b1"]),
                           prm["g1"], prm["be1"]), 0.0)
        y = bn(conv1d(h, prm["w2"], prm["b2"]), prm["g2"], prm["be2"])
        ds = bn(jnp.einsum("oi,bil->bol", prm["wd"][:, :, 0], v),
                prm["gd"], prm["bed"])
        return jnp.maximum(y + ds, 0.0)

    def gem(v):
        c = jnp.maximum(v, eps)
        c = c * c * c if p == 3.0 else c ** p
        bsz, ch, ln = c.shape
        c = c[:, :, :(ln // 3) * 3].reshape(bsz, ch, ln // 3, 3).mean(-1)
        return c ** (1.0 / p)

    v = jnp.transpose(x, (0, 2, 1))
    v = gem(conv_block(v, params["block1"]))
    v = gem(conv_block(v, params["block2"]))
    v = conv_block(v, params["block3"])
    return jnp.transpose(v, (0, 2, 1))


if __name__ == "__main__":
    # L chosen so L, L/3 and L/9 are multiples of 128 (lane-dense, unmasked
    # stores at every stage) while all tensors stay tiny.
    B, L, C = 2, 1152, 4
    key = jax.random.PRNGKey(0)
    kx, kp = jax.random.split(key)
    x = jax.random.normal(kx, (B, L, C), jnp.float32)
    params = init_model_params(kp, C)
    packed = pack_model_params(params, C, L)   # fold/pad/stack once, off-line

    fwd = jax.jit(gem_light_cnn_1d)
    out = jax.block_until_ready(fwd(x, packed))
    assert out.shape == (B, L // 9, C), out.shape
    assert bool(jnp.all(jnp.isfinite(out)))

    ref = jax.block_until_ready(jax.jit(reference_forward)(x, params))
    err = float(jnp.max(jnp.abs(out - ref)))
    assert err < 2e-3, f"kernel vs pure-JAX reference: max abs err {err}"
    print("KERNEL_OK")
</pallas_src>

<mosaic_0001>
module attributes {stable_mosaic.version = 11 : i64} {
  func.func @_gem_cnn_kernel(%arg0: i32, %arg1: memref<1x8x1152xf32, #tpu.memory_space<vmem>>, %arg2: memref<3x8x40xf32, #tpu.memory_space<vmem>>, %arg3: memref<3x8x40xf32, #tpu.memory_space<vmem>>, %arg4: memref<3x8x8xf32, #tpu.memory_space<vmem>>, %arg5: memref<3x8x3xf32, #tpu.memory_space<vmem>>, %arg6: memref<1152x384xf32, #tpu.memory_space<vmem>>, %arg7: memref<384x128xf32, #tpu.memory_space<vmem>>, %arg8: memref<1x4x128xf32, #tpu.memory_space<vmem>>, %arg9: memref<8x1408xf32, #tpu.memory_space<vmem>>, %arg10: memref<40x1152xf32, #tpu.memory_space<vmem>>) attributes {dimension_semantics = [#tpu.dimension_semantics<parallel>], iteration_bounds = array<i64: 2>, scalar_prefetch = 0 : i64, scratch_operands = 2 : i64, tpu.core_type = #tpu.core_type<tc>, window_params = [{transform_indices = @transform_0, window_bounds = array<i64: 1, 8, 1152>}, {pipeline_mode = #tpu.pipeline_mode<synchronous>, transform_indices = @transform_1, window_bounds = array<i64: 3, 8, 40>}, {pipeline_mode = #tpu.pipeline_mode<synchronous>, transform_indices = @transform_2, window_bounds = array<i64: 3, 8, 40>}, {pipeline_mode = #tpu.pipeline_mode<synchronous>, transform_indices = @transform_3, window_bounds = array<i64: 3, 8, 8>}, {pipeline_mode = #tpu.pipeline_mode<synchronous>, transform_indices = @transform_4, window_bounds = array<i64: 3, 8, 3>}, {pipeline_mode = #tpu.pipeline_mode<synchronous>, transform_indices = @transform_5, window_bounds = array<i64: 1152, 384>}, {pipeline_mode = #tpu.pipeline_mode<synchronous>, transform_indices = @transform_6, window_bounds = array<i64: 384, 128>}, {transform_indices = @transform_7, window_bounds = array<i64: 1, 4, 128>}]} {
    %c0 = arith.constant 0 : index
    %c0_0 = arith.constant 0 : index
    %c0_1 = arith.constant 0 : index
    %0 = vector.load %arg1[%c0, %c0_0, %c0_1] : memref<1x8x1152xf32, #tpu.memory_space<vmem>>, vector<1x8x1152xf32>
    %1 = vector.shape_cast %0 : vector<1x8x1152xf32> to vector<8x1152xf32>
    %c0_2 = arith.constant 0 : index
    %c0_3 = arith.constant 0 : index
    %c0_4 = arith.constant 0 : index
    %2 = vector.load %arg5[%c0_2, %c0_3, %c0_4] : memref<3x8x3xf32, #tpu.memory_space<vmem>>, vector<1x8x1xf32>
    %3 = vector.shape_cast %2 : vector<1x8x1xf32> to vector<8x1xf32>
    %c0_5 = arith.constant 0 : index
    %c0_6 = arith.constant 0 : index
    %c1 = arith.constant 1 : index
    %4 = vector.load %arg5[%c0_5, %c0_6, %c1] : memref<3x8x3xf32, #tpu.memory_space<vmem>>, vector<1x8x1xf32>
    %5 = vector.shape_cast %4 : vector<1x8x1xf32> to vector<8x1xf32>
    %c0_7 = arith.constant 0 : index
    %c0_8 = arith.constant 0 : index
    %c2 = arith.constant 2 : index
    %6 = vector.load %arg5[%c0_7, %c0_8, %c2] : memref<3x8x3xf32, #tpu.memory_space<vmem>>, vector<1x8x1xf32>
    %7 = vector.shape_cast %6 : vector<1x8x1xf32> to vector<8x1xf32>
    %c0_9 = arith.constant 0 : index
    %c0_10 = arith.constant 0 : index
    %c0_11 = arith.constant 0 : index
    %8 = vector.load %arg2[%c0_9, %c0_10, %c0_11] : memref<3x8x40xf32, #tpu.memory_space<vmem>>, vector<1x8x40xf32>
    %9 = vector.shape_cast %8 : vector<1x8x40xf32> to vector<8x40xf32>
    %c0_12 = arith.constant 0 : index
    %c128 = arith.constant 128 : index
    %10 = vector.load %arg9[%c0_12, %c128] : memref<8x1408xf32, #tpu.memory_space<vmem>>, vector<8x1152xf32>
    tpu.vector_store %arg9[%c0_12, %c128], %1 {strides = array<i32>} : memref<8x1408xf32, #tpu.memory_space<vmem>>, vector<8x1152xf32>,
    %11 = vector.extract_strided_slice %1 {offsets = [0, 0], sizes = [8, 1], strides = [1, 1]} : vector<8x1152xf32> to vector<8x1xf32>
    %12 = vector.shape_cast %11 : vector<8x1xf32> to vector<8x1xf32>
    %13 = vector.broadcast %12 : vector<8x1xf32> to vector<8x2xf32>
    %c0_13 = arith.constant 0 : index
    %c126 = arith.constant 126 : index
    %14 = vector.load %arg9[%c0_13, %c126] : memref<8x1408xf32, #tpu.memory_space<vmem>>, vector<8x2xf32>
    tpu.vector_store %arg9[%c0_13, %c126], %13 {strides = array<i32>} : memref<8x1408xf32, #tpu.memory_space<vmem>>, vector<8x2xf32>,
    %15 = vector.extract_strided_slice %1 {offsets = [0, 1151], sizes = [8, 1], strides = [1, 1]} : vector<8x1152xf32> to vector<8x1xf32>
    %16 = vector.shape_cast %15 : vector<8x1xf32> to vector<8x1xf32>
    %17 = vector.broadcast %16 : vector<8x1xf32> to vector<8x2xf32>
    %c0_14 = arith.constant 0 : index
    %c1280 = arith.constant 1280 : index
    %18 = vector.load %arg9[%c0_14, %c1280] : memref<8x1408xf32, #tpu.memory_space<vmem>>, vector<8x2xf32>
    tpu.vector_store %arg9[%c0_14, %c1280], %17 {strides = array<i32>} : memref<8x1408xf32, #tpu.memory_space<vmem>>, vector<8x2xf32>,
    %c0_15 = arith.constant 0 : index
    %c126_16 = arith.constant 126 : index
    %19 = vector.load %arg9[%c0_15, %c126_16] : memref<8x1408xf32, #tpu.memory_space<vmem>>, vector<8x1152xf32>
    %c0_17 = arith.constant 0 : index
    %c0_18 = arith.constant 0 : index
    %20 = vector.load %arg10[%c0_17, %c0_18] : memref<40x1152xf32, #tpu.memory_space<vmem>>, vector<8x1152xf32>
    tpu.vector_store %arg10[%c0_17, %c0_18], %19 {strides = array<i32>} : memref<40x1152xf32, #tpu.memory_space<vmem>>, vector<8x1152xf32>,
    %c0_19 = arith.constant 0 : index
    %c127 = arith.constant 127 : index
    %21 = vector.load %arg9[%c0_19, %c127] : memref<8x1408xf32, #tpu.memory_space<vmem>>, vector<8x1152xf32>
    %c8 = arith.constant 8 : index
    %c0_20 = arith.constant 0 : index
    %22 = vector.load %arg10[%c8, %c0_20] : memref<40x1152xf32, #tpu.memory_space<vmem>>, vector<8x1152xf32>
    tpu.vector_store %arg10[%c8, %c0_20], %21 {strides = array<i32>} : memref<40x1152xf32, #tpu.memory_space<vmem>>, vector<8x1152xf32>,
    %c0_21 = arith.constant 0 : index
    %c128_22 = arith.constant 128 : index
    %23 = vector.load %arg9[%c0_21, %c128_22] : memref<8x1408xf32, #tpu.memory_space<vmem>>, vector<8x1152xf32>
    %c16 = arith.constant 16 : index
    %c0_23 = arith.constant 0 : index
    %24 = vector.load %arg10[%c16, %c0_23] : memref<40x1152xf32, #tpu.memory_space<vmem>>, vector<8x1152xf32>
    tpu.vector_store %arg10[%c16, %c0_23], %23 {strides = array<i32>} : memref<40x1152xf32, #tpu.memory_space<vmem>>, vector<8x1152xf32>,
    %c0_24 = arith.constant 0 : index
    %c129 = arith.constant 129 : index
    %25 = vector.load %arg9[%c0_24, %c129] : memref<8x1408xf32, #tpu.memory_space<vmem>>, vector<8x1152xf32>
    %c24 = arith.constant 24 : index
    %c0_25 = arith.constant 0 : index
    %26 = vector.load %arg10[%c24, %c0_25] : memref<40x1152xf32, #tpu.memory_space<vmem>>, vector<8x1152xf32>
    tpu.vector_store %arg10[%c24, %c0_25], %25 {strides = array<i32>} : memref<40x1152xf32, #tpu.memory_space<vmem>>, vector<8x1152xf32>,
    %c0_26 = arith.constant 0 : index
    %c130 = arith.constant 130 : index
    %27 = vector.load %arg9[%c0_26, %c130] : memref<8x1408xf32, #tpu.memory_space<vmem>>, vector<8x1152xf32>
    %c32 = arith.constant 32 : index
    %c0_27 = arith.constant 0 : index
    %28 = vector.load %arg10[%c32, %c0_27] : memref<40x1152xf32, #tpu.memory_space<vmem>>, vector<8x1152xf32>
    tpu.vector_store %arg10[%c32, %c0_27], %27 {strides = array<i32>} : memref<40x1152xf32, #tpu.memory_space<vmem>>, vector<8x1152xf32>,
    %c0_28 = arith.constant 0 : index
    %c0_29 = arith.constant 0 : index
    %29 = vector.load %arg10[%c0_28, %c0_29] : memref<40x1152xf32, #tpu.memory_space<vmem>>, vector<40x1152xf32>
    %cst = arith.constant dense<0.000000e+00> : vector<8x1152xf32>
    %30 = tpu.matmul %9, %29, %cst {dimension_numbers = #tpu.dot_dimension_numbers<[1], [0], [0], [1], [0, 0, 1, 1], [], []>} : vector<8x40xf32>, vector<40x1152xf32>, vector<8x1152xf32> -> vector<8x1152xf32>
    %31 = vector.broadcast %3 : vector<8x1xf32> to vector<8x1152xf32>
    %32 = arith.addf %30, %31 : vector<8x1152xf32>
    %cst_30 = arith.constant 0.000000e+00 : f32
    %33 = vector.broadcast %cst_30 : f32 to vector<8x1152xf32>
    %34 = arith.maximumf %32, %33 : vector<8x1152xf32>
    %c0_31 = arith.constant 0 : index
    %c0_32 = arith.constant 0 : index
    %c0_33 = arith.constant 0 : index
    %35 = vector.load %arg3[%c0_31, %c0_32, %c0_33] : memref<3x8x40xf32, #tpu.memory_space<vmem>>, vector<1x8x40xf32>
    %36 = vector.shape_cast %35 : vector<1x8x40xf32> to vector<8x40xf32>
    %c0_34 = arith.constant 0 : index
    %c128_35 = arith.constant 128 : index
    %37 = vector.load %arg9[%c0_34, %c128_35] : memref<8x1408xf32, #tpu.memory_space<vmem>>, vector<8x1152xf32>
    tpu.vector_store %arg9[%c0_34, %c128_35], %34 {strides = array<i32>} : memref<8x1408xf32, #tpu.memory_space<vmem>>, vector<8x1152xf32>,
    %38 = vector.extract_strided_slice %34 {offsets = [0, 0], sizes = [8, 1], strides = [1, 1]} : vector<8x1152xf32> to vector<8x1xf32>
    %39 = vector.shape_cast %38 : vector<8x1xf32> to vector<8x1xf32>
    %40 = vector.broadcast %39 : vector<8x1xf32> to vector<8x2xf32>
    %c0_36 = arith.constant 0 : index
    %c126_37 = arith.constant 126 : index
    %41 = vector.load %arg9[%c0_36, %c126_37] : memref<8x1408xf32, #tpu.memory_space<vmem>>, vector<8x2xf32>
    tpu.vector_store %arg9[%c0_36, %c126_37], %40 {strides = array<i32>} : memref<8x1408xf32, #tpu.memory_space<vmem>>, vector<8x2xf32>,
    %42 = vector.extract_strided_slice %34 {offsets = [0, 1151], sizes = [8, 1], strides = [1, 1]} : vector<8x1152xf32> to vector<8x1xf32>
    %43 = vector.shape_cast %42 : vector<8x1xf32> to vector<8x1xf32>
    %44 = vector.broadcast %43 : vector<8x1xf32> to vector<8x2xf32>
    %c0_38 = arith.constant 0 : index
    %c1280_39 = arith.constant 1280 : index
    %45 = vector.load %arg9[%c0_38, %c1280_39] : memref<8x1408xf32, #tpu.memory_space<vmem>>, vector<8x2xf32>
    tpu.vector_store %arg9[%c0_38, %c1280_39], %44 {strides = array<i32>} : memref<8x1408xf32, #tpu.memory_space<vmem>>, vector<8x2xf32>,
    %c0_40 = arith.constant 0 : index
    %c126_41 = arith.constant 126 : index
    %46 = vector.load %arg9[%c0_40, %c126_41] : memref<8x1408xf32, #tpu.memory_space<vmem>>, vector<8x1152xf32>
    %c0_42 = arith.constant 0 : index
    %c0_43 = arith.constant 0 : index
    %47 = vector.load %arg10[%c0_42, %c0_43] : memref<40x1152xf32, #tpu.memory_space<vmem>>, vector<8x1152xf32>
    tpu.vector_store %arg10[%c0_42, %c0_43], %46 {strides = array<i32>} : memref<40x1152xf32, #tpu.memory_space<vmem>>, vector<8x1152xf32>,
    %c0_44 = arith.constant 0 : index
    %c127_45 = arith.constant 127 : index
    %48 = vector.load %arg9[%c0_44, %c127_45] : memref<8x1408xf32, #tpu.memory_space<vmem>>, vector<8x1152xf32>
    %c8_46 = arith.constant 8 : index
    %c0_47 = arith.constant 0 : index
    %49 = vector.load %arg10[%c8_46, %c0_47] : memref<40x1152xf32, #tpu.memory_space<vmem>>, vector<8x1152xf32>
    tpu.vector_store %arg10[%c8_46, %c0_47], %48 {strides = array<i32>} : memref<40x1152xf32, #tpu.memory_space<vmem>>, vector<8x1152xf32>,
    %c0_48 = arith.constant 0 : index
    %c128_49 = arith.constant 128 : index
    %50 = vector.load %arg9[%c0_48, %c128_49] : memref<8x1408xf32, #tpu.memory_space<vmem>>, vector<8x1152xf32>
    %c16_50 = arith.constant 16 : index
    %c0_51 = arith.constant 0 : index
    %51 = vector.load %arg10[%c16_50, %c0_51] : memref<40x1152xf32, #tpu.memory_space<vmem>>, vector<8x1152xf32>
    tpu.vector_store %arg10[%c16_50, %c0_51], %50 {strides = array<i32>} : memref<40x1152xf32, #tpu.memory_space<vmem>>, vector<8x1152xf32>,
    %c0_52 = arith.constant 0 : index
    %c129_53 = arith.constant 129 : index
    %52 = vector.load %arg9[%c0_52, %c129_53] : memref<8x1408xf32, #tpu.memory_space<vmem>>, vector<8x1152xf32>
    %c24_54 = arith.constant 24 : index
    %c0_55 = arith.constant 0 : index
    %53 = vector.load %arg10[%c24_54, %c0_55] : memref<40x1152xf32, #tpu.memory_space<vmem>>, vector<8x1152xf32>
    tpu.vector_store %arg10[%c24_54, %c0_55], %52 {strides = array<i32>} : memref<40x1152xf32, #tpu.memory_space<vmem>>, vector<8x1152xf32>,
    %c0_56 = arith.constant 0 : index
    %c130_57 = arith.constant 130 : index
    %54 = vector.load %arg9[%c0_56, %c130_57] : memref<8x1408xf32, #tpu.memory_space<vmem>>, vector<8x1152xf32>
    %c32_58 = arith.constant 32 : index
    %c0_59 = arith.constant 0 : index
    %55 = vector.load %arg10[%c32_58, %c0_59] : memref<40x1152xf32, #tpu.memory_space<vmem>>, vector<8x1152xf32>
    tpu.vector_store %arg10[%c32_58, %c0_59], %54 {strides = array<i32>} : memref<40x1152xf32, #tpu.memory_space<vmem>>, vector<8x1152xf32>,
    %c0_60 = arith.constant 0 : index
    %c0_61 = arith.constant 0 : index
    %56 = vector.load %arg10[%c0_60, %c0_61] : memref<40x1152xf32, #tpu.memory_space<vmem>>, vector<40x1152xf32>
    %cst_62 = arith.constant dense<0.000000e+00> : vector<8x1152xf32>
    %57 = tpu.matmul %36, %56, %cst_62 {dimension_numbers = #tpu.dot_dimension_numbers<[1], [0], [0], [1], [0, 0, 1, 1], [], []>} : vector<8x40xf32>, vector<40x1152xf32>, vector<8x1152xf32> -> vector<8x1152xf32>
    %58 = vector.broadcast %5 : vector<8x1xf32> to vector<8x1152xf32>
    %59 = arith.addf %57, %58 : vector<8x1152xf32>
    %c0_63 = arith.constant 0 : index
    %c0_64 = arith.constant 0 : index
    %c0_65 = arith.constant 0 : index
    %60 = vector.load %arg4[%c0_63, %c0_64, %c0_65] : memref<3x8x8xf32, #tpu.memory_space<vmem>>, vector<1x8x8xf32>
    %61 = vector.shape_cast %60 : vector<1x8x8xf32> to vector<8x8xf32>
    %cst_66 = arith.constant dense<0.000000e+00> : vector<8x1152xf32>
    %62 = tpu.matmul %61, %1, %cst_66 {dimension_numbers = #tpu.dot_dimension_numbers<[1], [0], [0], [1], [0, 0, 1, 1], [], []>} : vector<8x8xf32>, vector<8x1152xf32>, vector<8x1152xf32> -> vector<8x1152xf32>
    %63 = vector.broadcast %7 : vector<8x1xf32> to vector<8x1152xf32>
    %64 = arith.addf %62, %63 : vector<8x1152xf32>
    %65 = arith.addf %59, %64 : vector<8x1152xf32>
    %cst_67 = arith.constant 0.000000e+00 : f32
    %66 = vector.broadcast %cst_67 : f32 to vector<8x1152xf32>
    %67 = arith.maximumf %65, %66 : vector<8x1152xf32>
    %cst_68 = arith.constant 9.99999997E-7 : f32
    %68 = vector.broadcast %cst_68 : f32 to vector<8x1152xf32>
    %69 = arith.maximumf %67, %68 : vector<8x1152xf32>
    %70 = arith.mulf %69, %69 : vector<8x1152xf32>
    %71 = arith.mulf %70, %69 : vector<8x1152xf32>
    %c0_69 = arith.constant 0 : index
    %c0_70 = arith.constant 0 : index
    %72 = vector.load %arg6[%c0_69, %c0_70] : memref<1152x384xf32, #tpu.memory_space<vmem>>, vector<1152x384xf32>
    %cst_71 = arith.constant dense<0.000000e+00> : vector<8x384xf32>
    %73 = tpu.matmul %71, %72, %cst_71 {dimension_numbers = #tpu.dot_dimension_numbers<[1], [0], [0], [1], [0, 0, 1, 1], [], []>} : vector<8x1152xf32>, vector<1152x384xf32>, vector<8x384xf32> -> vector<8x384xf32>
    %cst_72 = arith.constant 0.333333343 : f32
    %74 = vector.broadcast %cst_72 : f32 to vector<8x384xf32>
    %75 = math.powf %73, %74 : vector<8x384xf32>
    %c1_73 = arith.constant 1 : index
    %c0_74 = arith.constant 0 : index
    %c0_75 = arith.constant 0 : index
    %76 = vector.load %arg5[%c1_73, %c0_74, %c0_75] : memref<3x8x3xf32, #tpu.memory_space<vmem>>, vector<1x8x1xf32>
    %77 = vector.shape_cast %76 : vector<1x8x1xf32> to vector<8x1xf32>
    %c1_76 = arith.constant 1 : index
    %c0_77 = arith.constant 0 : index
    %c1_78 = arith.constant 1 : index
    %78 = vector.load %arg5[%c1_76, %c0_77, %c1_78] : memref<3x8x3xf32, #tpu.memory_space<vmem>>, vector<1x8x1xf32>
    %79 = vector.shape_cast %78 : vector<1x8x1xf32> to vector<8x1xf32>
    %c1_79 = arith.constant 1 : index
    %c0_80 = arith.constant 0 : index
    %c2_81 = arith.constant 2 : index
    %80 = vector.load %arg5[%c1_79, %c0_80, %c2_81] : memref<3x8x3xf32, #tpu.memory_space<vmem>>, vector<1x8x1xf32>
    %81 = vector.shape_cast %80 : vector<1x8x1xf32> to vector<8x1xf32>
    %c1_82 = arith.constant 1 : index
    %c0_83 = arith.constant 0 : index
    %c0_84 = arith.constant 0 : index
    %82 = vector.load %arg2[%c1_82, %c0_83, %c0_84] : memref<3x8x40xf32, #tpu.memory_space<vmem>>, vector<1x8x40xf32>
    %83 = vector.shape_cast %82 : vector<1x8x40xf32> to vector<8x40xf32>
    %c0_85 = arith.constant 0 : index
    %c128_86 = arith.constant 128 : index
    %84 = vector.load %arg9[%c0_85, %c128_86] : memref<8x1408xf32, #tpu.memory_space<vmem>>, vector<8x384xf32>
    tpu.vector_store %arg9[%c0_85, %c128_86], %75 {strides = array<i32>} : memref<8x1408xf32, #tpu.memory_space<vmem>>, vector<8x384xf32>,
    %85 = vector.extract_strided_slice %75 {offsets = [0, 0], sizes = [8, 1], strides = [1, 1]} : vector<8x384xf32> to vector<8x1xf32>
    %86 = vector.shape_cast %85 : vector<8x1xf32> to vector<8x1xf32>
    %87 = vector.broadcast %86 : vector<8x1xf32> to vector<8x2xf32>
    %c0_87 = arith.constant 0 : index
    %c126_88 = arith.constant 126 : index
    %88 = vector.load %arg9[%c0_87, %c126_88] : memref<8x1408xf32, #tpu.memory_space<vmem>>, vector<8x2xf32>
    tpu.vector_store %arg9[%c0_87, %c126_88], %87 {strides = array<i32>} : memref<8x1408xf32, #tpu.memory_space<vmem>>, vector<8x2xf32>,
    %89 = vector.extract_strided_slice %75 {offsets = [0, 383], sizes = [8, 1], strides = [1, 1]} : vector<8x384xf32> to vector<8x1xf32>
    %90 = vector.shape_cast %89 : vector<8x1xf32> to vector<8x1xf32>
    %91 = vector.broadcast %90 : vector<8x1xf32> to vector<8x2xf32>
    %c0_89 = arith.constant 0 : index
    %c512 = arith.constant 512 : index
    %92 = vector.load %arg9[%c0_89, %c512] : memref<8x1408xf32, #tpu.memory_space<vmem>>, vector<8x2xf32>
    tpu.vector_store %arg9[%c0_89, %c512], %91 {strides = array<i32>} : memref<8x1408xf32, #tpu.memory_space<vmem>>, vector<8x2xf32>,
    %c0_90 = arith.constant 0 : index
    %c126_91 = arith.constant 126 : index
    %93 = vector.load %arg9[%c0_90, %c126_91] : memref<8x1408xf32, #tpu.memory_space<vmem>>, vector<8x384xf32>
    %c0_92 = arith.constant 0 : index
    %c0_93 = arith.constant 0 : index
    %94 = vector.load %arg10[%c0_92, %c0_93] : memref<40x1152xf32, #tpu.memory_space<vmem>>, vector<8x384xf32>
    tpu.vector_store %arg10[%c0_92, %c0_93], %93 {strides = array<i32>} : memref<40x1152xf32, #tpu.memory_space<vmem>>, vector<8x384xf32>,
    %c0_94 = arith.constant 0 : index
    %c127_95 = arith.constant 127 : index
    %95 = vector.load %arg9[%c0_94, %c127_95] : memref<8x1408xf32, #tpu.memory_space<vmem>>, vector<8x384xf32>
    %c8_96 = arith.constant 8 : index
    %c0_97 = arith.constant 0 : index
    %96 = vector.load %arg10[%c8_96, %c0_97] : memref<40x1152xf32, #tpu.memory_space<vmem>>, vector<8x384xf32>
    tpu.vector_store %arg10[%c8_96, %c0_97], %95 {strides = array<i32>} : memref<40x1152xf32, #tpu.memory_space<vmem>>, vector<8x384xf32>,
    %c0_98 = arith.constant 0 : index
    %c128_99 = arith.constant 128 : index
    %97 = vector.load %arg9[%c0_98, %c128_99] : memref<8x1408xf32, #tpu.memory_space<vmem>>, vector<8x384xf32>
    %c16_100 = arith.constant 16 : index
    %c0_101 = arith.constant 0 : index
    %98 = vector.load %arg10[%c16_100, %c0_101] : memref<40x1152xf32, #tpu.memory_space<vmem>>, vector<8x384xf32>
    tpu.vector_store %arg10[%c16_100, %c0_101], %97 {strides = array<i32>} : memref<40x1152xf32, #tpu.memory_space<vmem>>, vector<8x384xf32>,
    %c0_102 = arith.constant 0 : index
    %c129_103 = arith.constant 129 : index
    %99 = vector.load %arg9[%c0_102, %c129_103] : memref<8x1408xf32, #tpu.memory_space<vmem>>, vector<8x384xf32>
    %c24_104 = arith.constant 24 : index
    %c0_105 = arith.constant 0 : index
    %100 = vector.load %arg10[%c24_104, %c0_105] : memref<40x1152xf32, #tpu.memory_space<vmem>>, vector<8x384xf32>
    tpu.vector_store %arg10[%c24_104, %c0_105], %99 {strides = array<i32>} : memref<40x1152xf32, #tpu.memory_space<vmem>>, vector<8x384xf32>,
    %c0_106 = arith.constant 0 : index
    %c130_107 = arith.constant 130 : index
    %101 = vector.load %arg9[%c0_106, %c130_107] : memref<8x1408xf32, #tpu.memory_space<vmem>>, vector<8x384xf32>
    %c32_108 = arith.constant 32 : index
    %c0_109 = arith.constant 0 : index
    %102 = vector.load %arg10[%c32_108, %c0_109] : memref<40x1152xf32, #tpu.memory_space<vmem>>, vector<8x384xf32>
    tpu.vector_store %arg10[%c32_108, %c0_109], %101 {strides = array<i32>} : memref<40x1152xf32, #tpu.memory_space<vmem>>, vector<8x384xf32>,
    %c0_110 = arith.constant 0 : index
    %c0_111 = arith.constant 0 : index
    %103 = vector.load %arg10[%c0_110, %c0_111] : memref<40x1152xf32, #tpu.memory_space<vmem>>, vector<40x384xf32>
    %cst_112 = arith.constant dense<0.000000e+00> : vector<8x384xf32>
    %104 = tpu.matmul %83, %103, %cst_112 {dimension_numbers = #tpu.dot_dimension_numbers<[1], [0], [0], [1], [0, 0, 1, 1], [], []>} : vector<8x40xf32>, vector<40x384xf32>, vector<8x384xf32> -> vector<8x384xf32>
    %105 = vector.broadcast %77 : vector<8x1xf32> to vector<8x384xf32>
    %106 = arith.addf %104, %105 : vector<8x384xf32>
    %cst_113 = arith.constant 0.000000e+00 : f32
    %107 = vector.broadcast %cst_113 : f32 to vector<8x384xf32>
    %108 = arith.maximumf %106, %107 : vector<8x384xf32>
    %c1_114 = arith.constant 1 : index
    %c0_115 = arith.constant 0 : index
    %c0_116 = arith.constant 0 : index
    %109 = vector.load %arg3[%c1_114, %c0_115, %c0_116] : memref<3x8x40xf32, #tpu.memory_space<vmem>>, vector<1x8x40xf32>
    %110 = vector.shape_cast %109 : vector<1x8x40xf32> to vector<8x40xf32>
    %c0_117 = arith.constant 0 : index
    %c128_118 = arith.constant 128 : index
    %111 = vector.load %arg9[%c0_117, %c128_118] : memref<8x1408xf32, #tpu.memory_space<vmem>>, vector<8x384xf32>
    tpu.vector_store %arg9[%c0_117, %c128_118], %108 {strides = array<i32>} : memref<8x1408xf32, #tpu.memory_space<vmem>>, vector<8x384xf32>,
    %112 = vector.extract_strided_slice %108 {offsets = [0, 0], sizes = [8, 1], strides = [1, 1]} : vector<8x384xf32> to vector<8x1xf32>
    %113 = vector.shape_cast %112 : vector<8x1xf32> to vector<8x1xf32>
    %114 = vector.broadcast %113 : vector<8x1xf32> to vector<8x2xf32>
    %c0_119 = arith.constant 0 : index
    %c126_120 = arith.constant 126 : index
    %115 = vector.load %arg9[%c0_119, %c126_120] : memref<8x1408xf32, #tpu.memory_space<vmem>>, vector<8x2xf32>
    tpu.vector_store %arg9[%c0_119, %c126_120], %114 {strides = array<i32>} : memref<8x1408xf32, #tpu.memory_space<vmem>>, vector<8x2xf32>,
    %116 = vector.extract_strided_slice %108 {offsets = [0, 383], sizes = [8, 1], strides = [1, 1]} : vector<8x384xf32> to vector<8x1xf32>
    %117 = vector.shape_cast %116 : vector<8x1xf32> to vector<8x1xf32>
    %118 = vector.broadcast %117 : vector<8x1xf32> to vector<8x2xf32>
    %c0_121 = arith.constant 0 : index
    %c512_122 = arith.constant 512 : index
    %119 = vector.load %arg9[%c0_121, %c512_122] : memref<8x1408xf32, #tpu.memory_space<vmem>>, vector<8x2xf32>
    tpu.vector_store %arg9[%c0_121, %c512_122], %118 {strides = array<i32>} : memref<8x1408xf32, #tpu.memory_space<vmem>>, vector<8x2xf32>,
    %c0_123 = arith.constant 0 : index
    %c126_124 = arith.constant 126 : index
    %120 = vector.load %arg9[%c0_123, %c126_124] : memref<8x1408xf32, #tpu.memory_space<vmem>>, vector<8x384xf32>
    %c0_125 = arith.constant 0 : index
    %c0_126 = arith.constant 0 : index
    %121 = vector.load %arg10[%c0_125, %c0_126] : memref<40x1152xf32, #tpu.memory_space<vmem>>, vector<8x384xf32>
    tpu.vector_store %arg10[%c0_125, %c0_126], %120 {strides = array<i32>} : memref<40x1152xf32, #tpu.memory_space<vmem>>, vector<8x384xf32>,
    %c0_127 = arith.constant 0 : index
    %c127_128 = arith.constant 127 : index
    %122 = vector.load %arg9[%c0_127, %c127_128] : memref<8x1408xf32, #tpu.memory_space<vmem>>, vector<8x384xf32>
    %c8_129 = arith.constant 8 : index
    %c0_130 = arith.constant 0 : index
    %123 = vector.load %arg10[%c8_129, %c0_130] : memref<40x1152xf32, #tpu.memory_space<vmem>>, vector<8x384xf32>
    tpu.vector_store %arg10[%c8_129, %c0_130], %122 {strides = array<i32>} : memref<40x1152xf32, #tpu.memory_space<vmem>>, vector<8x384xf32>,
    %c0_131 = arith.constant 0 : index
    %c128_132 = arith.constant 128 : index
    %124 = vector.load %arg9[%c0_131, %c128_132] : memref<8x1408xf32, #tpu.memory_space<vmem>>, vector<8x384xf32>
    %c16_133 = arith.constant 16 : index
    %c0_134 = arith.constant 0 : index
    %125 = vector.load %arg10[%c16_133, %c0_134] : memref<40x1152xf32, #tpu.memory_space<vmem>>, vector<8x384xf32>
    tpu.vector_store %arg10[%c16_133, %c0_134], %124 {strides = array<i32>} : memref<40x1152xf32, #tpu.memory_space<vmem>>, vector<8x384xf32>,
    %c0_135 = arith.constant 0 : index
    %c129_136 = arith.constant 129 : index
    %126 = vector.load %arg9[%c0_135, %c129_136] : memref<8x1408xf32, #tpu.memory_space<vmem>>, vector<8x384xf32>
    %c24_137 = arith.constant 24 : index
    %c0_138 = arith.constant 0 : index
    %127 = vector.load %arg10[%c24_137, %c0_138] : memref<40x1152xf32, #tpu.memory_space<vmem>>, vector<8x384xf32>
    tpu.vector_store %arg10[%c24_137, %c0_138], %126 {strides = array<i32>} : memref<40x1152xf32, #tpu.memory_space<vmem>>, vector<8x384xf32>,
    %c0_139 = arith.constant 0 : index
    %c130_140 = arith.constant 130 : index
    %128 = vector.load %arg9[%c0_139, %c130_140] : memref<8x1408xf32, #tpu.memory_space<vmem>>, vector<8x384xf32>
    %c32_141 = arith.constant 32 : index
    %c0_142 = arith.constant 0 : index
    %129 = vector.load %arg10[%c32_141, %c0_142] : memref<40x1152xf32, #tpu.memory_space<vmem>>, vector<8x384xf32>
    tpu.vector_store %arg10[%c32_141, %c0_142], %128 {strides = array<i32>} : memref<40x1152xf32, #tpu.memory_space<vmem>>, vector<8x384xf32>,
    %c0_143 = arith.constant 0 : index
    %c0_144 = arith.constant 0 : index
    %130 = vector.load %arg10[%c0_143, %c0_144] : memref<40x1152xf32, #tpu.memory_space<vmem>>, vector<40x384xf32>
    %cst_145 = arith.constant dense<0.000000e+00> : vector<8x384xf32>
    %131 = tpu.matmul %110, %130, %cst_145 {dimension_numbers = #tpu.dot_dimension_numbers<[1], [0], [0], [1], [0, 0, 1, 1], [], []>} : vector<8x40xf32>, vector<40x384xf32>, vector<8x384xf32> -> vector<8x384xf32>
    %132 = vector.broadcast %79 : vector<8x1xf32> to vector<8x384xf32>
    %133 = arith.addf %131, %132 : vector<8x384xf32>
    %c1_146 = arith.constant 1 : index
    %c0_147 = arith.constant 0 : index
    %c0_148 = arith.constant 0 : index
    %134 = vector.load %arg4[%c1_146, %c0_147, %c0_148] : memref<3x8x8xf32, #tpu.memory_space<vmem>>, vector<1x8x8xf32>
    %135 = vector.shape_cast %134 : vector<1x8x8xf32> to vector<8x8xf32>
    %cst_149 = arith.constant dense<0.000000e+00> : vector<8x384xf32>
    %136 = tpu.matmul %135, %75, %cst_149 {dimension_numbers = #tpu.dot_dimension_numbers<[1], [0], [0], [1], [0, 0, 1, 1], [], []>} : vector<8x8xf32>, vector<8x384xf32>, vector<8x384xf32> -> vector<8x384xf32>
    %137 = vector.broadcast %81 : vector<8x1xf32> to vector<8x384xf32>
    %138 = arith.addf %136, %137 : vector<8x384xf32>
    %139 = arith.addf %133, %138 : vector<8x384xf32>
    %cst_150 = arith.constant 0.000000e+00 : f32
    %140 = vector.broadcast %cst_150 : f32 to vector<8x384xf32>
    %141 = arith.maximumf %139, %140 : vector<8x384xf32>
    %cst_151 = arith.constant 9.99999997E-7 : f32
    %142 = vector.broadcast %cst_151 : f32 to vector<8x384xf32>
    %143 = arith.maximumf %141, %142 : vector<8x384xf32>
    %144 = arith.mulf %143, %143 : vector<8x384xf32>
    %145 = arith.mulf %144, %143 : vector<8x384xf32>
    %c0_152 = arith.constant 0 : index
    %c0_153 = arith.constant 0 : index
    %146 = vector.load %arg7[%c0_152, %c0_153] : memref<384x128xf32, #tpu.memory_space<vmem>>, vector<384x128xf32>
    %cst_154 = arith.constant dense<0.000000e+00> : vector<8x128xf32>
    %147 = tpu.matmul %145, %146, %cst_154 {dimension_numbers = #tpu.dot_dimension_numbers<[1], [0], [0], [1], [0, 0, 1, 1], [], []>} : vector<8x384xf32>, vector<384x128xf32>, vector<8x128xf32> -> vector<8x128xf32>
    %cst_155 = arith.constant 0.333333343 : f32
    %148 = vector.broadcast %cst_155 : f32 to vector<8x128xf32>
    %149 = math.powf %147, %148 : vector<8x128xf32>
    %c2_156 = arith.constant 2 : index
    %c0_157 = arith.constant 0 : index
    %c0_158 = arith.constant 0 : index
    %150 = vector.load %arg5[%c2_156, %c0_157, %c0_158] : memref<3x8x3xf32, #tpu.memory_space<vmem>>, vector<1x8x1xf32>
    %151 = vector.shape_cast %150 : vector<1x8x1xf32> to vector<8x1xf32>
    %c2_159 = arith.constant 2 : index
    %c0_160 = arith.constant 0 : index
    %c1_161 = arith.constant 1 : index
    %152 = vector.load %arg5[%c2_159, %c0_160, %c1_161] : memref<3x8x3xf32, #tpu.memory_space<vmem>>, vector<1x8x1xf32>
    %153 = vector.shape_cast %152 : vector<1x8x1xf32> to vector<8x1xf32>
    %c2_162 = arith.constant 2 : index
    %c0_163 = arith.constant 0 : index
    %c2_164 = arith.constant 2 : index
    %154 = vector.load %arg5[%c2_162, %c0_163, %c2_164] : memref<3x8x3xf32, #tpu.memory_space<vmem>>, vector<1x8x1xf32>
    %155 = vector.shape_cast %154 : vector<1x8x1xf32> to vector<8x1xf32>
    %c2_165 = arith.constant 2 : index
    %c0_166 = arith.constant 0 : index
    %c0_167 = arith.constant 0 : index
    %156 = vector.load %arg2[%c2_165, %c0_166, %c0_167] : memref<3x8x40xf32, #tpu.memory_space<vmem>>, vector<1x8x40xf32>
    %157 = vector.shape_cast %156 : vector<1x8x40xf32> to vector<8x40xf32>
    %c0_168 = arith.constant 0 : index
    %c128_169 = arith.constant 128 : index
    %158 = vector.load %arg9[%c0_168, %c128_169] : memref<8x1408xf32, #tpu.memory_space<vmem>>, vector<8x128xf32>
    tpu.vector_store %arg9[%c0_168, %c128_169], %149 {strides = array<i32>} : memref<8x1408xf32, #tpu.memory_space<vmem>>, vector<8x128xf32>,
    %159 = vector.extract_strided_slice %149 {offsets = [0, 0], sizes = [8, 1], strides = [1, 1]} : vector<8x128xf32> to vector<8x1xf32>
    %160 = vector.shape_cast %159 : vector<8x1xf32> to vector<8x1xf32>
    %161 = vector.broadcast %160 : vector<8x1xf32> to vector<8x2xf32>
    %c0_170 = arith.constant 0 : index
    %c126_171 = arith.constant 126 : index
    %162 = vector.load %arg9[%c0_170, %c126_171] : memref<8x1408xf32, #tpu.memory_space<vmem>>, vector<8x2xf32>
    tpu.vector_store %arg9[%c0_170, %c126_171], %161 {strides = array<i32>} : memref<8x1408xf32, #tpu.memory_space<vmem>>, vector<8x2xf32>,
    %163 = vector.extract_strided_slice %149 {offsets = [0, 127], sizes = [8, 1], strides = [1, 1]} : vector<8x128xf32> to vector<8x1xf32>
    %164 = vector.shape_cast %163 : vector<8x1xf32> to vector<8x1xf32>
    %165 = vector.broadcast %164 : vector<8x1xf32> to vector<8x2xf32>
    %c0_172 = arith.constant 0 : index
    %c256 = arith.constant 256 : index
    %166 = vector.load %arg9[%c0_172, %c256] : memref<8x1408xf32, #tpu.memory_space<vmem>>, vector<8x2xf32>
    tpu.vector_store %arg9[%c0_172, %c256], %165 {strides = array<i32>} : memref<8x1408xf32, #tpu.memory_space<vmem>>, vector<8x2xf32>,
    %c0_173 = arith.constant 0 : index
    %c126_174 = arith.constant 126 : index
    %167 = vector.load %arg9[%c0_173, %c126_174] : memref<8x1408xf32, #tpu.memory_space<vmem>>, vector<8x128xf32>
    %c0_175 = arith.constant 0 : index
    %c0_176 = arith.constant 0 : index
    %168 = vector.load %arg10[%c0_175, %c0_176] : memref<40x1152xf32, #tpu.memory_space<vmem>>, vector<8x128xf32>
    tpu.vector_store %arg10[%c0_175, %c0_176], %167 {strides = array<i32>} : memref<40x1152xf32, #tpu.memory_space<vmem>>, vector<8x128xf32>,
    %c0_177 = arith.constant 0 : index
    %c127_178 = arith.constant 127 : index
    %169 = vector.load %arg9[%c0_177, %c127_178] : memref<8x1408xf32, #tpu.memory_space<vmem>>, vector<8x128xf32>
    %c8_179 = arith.constant 8 : index
    %c0_180 = arith.constant 0 : index
    %170 = vector.load %arg10[%c8_179, %c0_180] : memref<40x1152xf32, #tpu.memory_space<vmem>>, vector<8x128xf32>
    tpu.vector_store %arg10[%c8_179, %c0_180], %169 {strides = array<i32>} : memref<40x1152xf32, #tpu.memory_space<vmem>>, vector<8x128xf32>,
    %c0_181 = arith.constant 0 : index
    %c128_182 = arith.constant 128 : index
    %171 = vector.load %arg9[%c0_181, %c128_182] : memref<8x1408xf32, #tpu.memory_space<vmem>>, vector<8x128xf32>
    %c16_183 = arith.constant 16 : index
    %c0_184 = arith.constant 0 : index
    %172 = vector.load %arg10[%c16_183, %c0_184] : memref<40x1152xf32, #tpu.memory_space<vmem>>, vector<8x128xf32>
    tpu.vector_store %arg10[%c16_183, %c0_184], %171 {strides = array<i32>} : memref<40x1152xf32, #tpu.memory_space<vmem>>, vector<8x128xf32>,
    %c0_185 = arith.constant 0 : index
    %c129_186 = arith.constant 129 : index
    %173 = vector.load %arg9[%c0_185, %c129_186] : memref<8x1408xf32, #tpu.memory_space<vmem>>, vector<8x128xf32>
    %c24_187 = arith.constant 24 : index
    %c0_188 = arith.constant 0 : index
    %174 = vector.load %arg10[%c24_187, %c0_188] : memref<40x1152xf32, #tpu.memory_space<vmem>>, vector<8x128xf32>
    tpu.vector_store %arg10[%c24_187, %c0_188], %173 {strides = array<i32>} : memref<40x1152xf32, #tpu.memory_space<vmem>>, vector<8x128xf32>,
    %c0_189 = arith.constant 0 : index
    %c130_190 = arith.constant 130 : index
    %175 = vector.load %arg9[%c0_189, %c130_190] : memref<8x1408xf32, #tpu.memory_space<vmem>>, vector<8x128xf32>
    %c32_191 = arith.constant 32 : index
    %c0_192 = arith.constant 0 : index
    %176 = vector.load %arg10[%c32_191, %c0_192] : memref<40x1152xf32, #tpu.memory_space<vmem>>, vector<8x128xf32>
    tpu.vector_store %arg10[%c32_191, %c0_192], %175 {strides = array<i32>} : memref<40x1152xf32, #tpu.memory_space<vmem>>, vector<8x128xf32>,
    %c0_193 = arith.constant 0 : index
    %c0_194 = arith.constant 0 : index
    %177 = vector.load %arg10[%c0_193, %c0_194] : memref<40x1152xf32, #tpu.memory_space<vmem>>, vector<40x128xf32>
    %cst_195 = arith.constant dense<0.000000e+00> : vector<8x128xf32>
    %178 = tpu.matmul %157, %177, %cst_195 {dimension_numbers = #tpu.dot_dimension_numbers<[1], [0], [0], [1], [0, 0, 1, 1], [], []>} : vector<8x40xf32>, vector<40x128xf32>, vector<8x128xf32> -> vector<8x128xf32>
    %179 = vector.broadcast %151 : vector<8x1xf32> to vector<8x128xf32>
    %180 = arith.addf %178, %179 : vector<8x128xf32>
    %cst_196 = arith.constant 0.000000e+00 : f32
    %181 = vector.broadcast %cst_196 : f32 to vector<8x128xf32>
    %182 = arith.maximumf %180, %181 : vector<8x128xf32>
    %c2_197 = arith.constant 2 : index
    %c0_198 = arith.constant 0 : index
    %c0_199 = arith.constant 0 : index
    %183 = vector.load %arg3[%c2_197, %c0_198, %c0_199] : memref<3x8x40xf32, #tpu.memory_space<vmem>>, vector<1x8x40xf32>
    %184 = vector.shape_cast %183 : vector<1x8x40xf32> to vector<8x40xf32>
    %c0_200 = arith.constant 0 : index
    %c128_201 = arith.constant 128 : index
    %185 = vector.load %arg9[%c0_200, %c128_201] : memref<8x1408xf32, #tpu.memory_space<vmem>>, vector<8x128xf32>
    tpu.vector_store %arg9[%c0_200, %c128_201], %182 {strides = array<i32>} : memref<8x1408xf32, #tpu.memory_space<vmem>>, vector<8x128xf32>,
    %186 = vector.extract_strided_slice %182 {offsets = [0, 0], sizes = [8, 1], strides = [1, 1]} : vector<8x128xf32> to vector<8x1xf32>
    %187 = vector.shape_cast %186 : vector<8x1xf32> to vector<8x1xf32>
    %188 = vector.broadcast %187 : vector<8x1xf32> to vector<8x2xf32>
    %c0_202 = arith.constant 0 : index
    %c126_203 = arith.constant 126 : index
    %189 = vector.load %arg9[%c0_202, %c126_203] : memref<8x1408xf32, #tpu.memory_space<vmem>>, vector<8x2xf32>
    tpu.vector_store %arg9[%c0_202, %c126_203], %188 {strides = array<i32>} : memref<8x1408xf32, #tpu.memory_space<vmem>>, vector<8x2xf32>,
    %190 = vector.extract_strided_slice %182 {offsets = [0, 127], sizes = [8, 1], strides = [1, 1]} : vector<8x128xf32> to vector<8x1xf32>
    %191 = vector.shape_cast %190 : vector<8x1xf32> to vector<8x1xf32>
    %192 = vector.broadcast %191 : vector<8x1xf32> to vector<8x2xf32>
    %c0_204 = arith.constant 0 : index
    %c256_205 = arith.constant 256 : index
    %193 = vector.load %arg9[%c0_204, %c256_205] : memref<8x1408xf32, #tpu.memory_space<vmem>>, vector<8x2xf32>
    tpu.vector_store %arg9[%c0_204, %c256_205], %192 {strides = array<i32>} : memref<8x1408xf32, #tpu.memory_space<vmem>>, vector<8x2xf32>,
    %c0_206 = arith.constant 0 : index
    %c126_207 = arith.constant 126 : index
    %194 = vector.load %arg9[%c0_206, %c126_207] : memref<8x1408xf32, #tpu.memory_space<vmem>>, vector<8x128xf32>
    %c0_208 = arith.constant 0 : index
    %c0_209 = arith.constant 0 : index
    %195 = vector.load %arg10[%c0_208, %c0_209] : memref<40x1152xf32, #tpu.memory_space<vmem>>, vector<8x128xf32>
    tpu.vector_store %arg10[%c0_208, %c0_209], %194 {strides = array<i32>} : memref<40x1152xf32, #tpu.memory_space<vmem>>, vector<8x128xf32>,
    %c0_210 = arith.constant 0 : index
    %c127_211 = arith.constant 127 : index
    %196 = vector.load %arg9[%c0_210, %c127_211] : memref<8x1408xf32, #tpu.memory_space<vmem>>, vector<8x128xf32>
    %c8_212 = arith.constant 8 : index
    %c0_213 = arith.constant 0 : index
    %197 = vector.load %arg10[%c8_212, %c0_213] : memref<40x1152xf32, #tpu.memory_space<vmem>>, vector<8x128xf32>
    tpu.vector_store %arg10[%c8_212, %c0_213], %196 {strides = array<i32>} : memref<40x1152xf32, #tpu.memory_space<vmem>>, vector<8x128xf32>,
    %c0_214 = arith.constant 0 : index
    %c128_215 = arith.constant 128 : index
    %198 = vector.load %arg9[%c0_214, %c128_215] : memref<8x1408xf32, #tpu.memory_space<vmem>>, vector<8x128xf32>
    %c16_216 = arith.constant 16 : index
    %c0_217 = arith.constant 0 : index
    %199 = vector.load %arg10[%c16_216, %c0_217] : memref<40x1152xf32, #tpu.memory_space<vmem>>, vector<8x128xf32>
    tpu.vector_store %arg10[%c16_216, %c0_217], %198 {strides = array<i32>} : memref<40x1152xf32, #tpu.memory_space<vmem>>, vector<8x128xf32>,
    %c0_218 = arith.constant 0 : index
    %c129_219 = arith.constant 129 : index
    %200 = vector.load %arg9[%c0_218, %c129_219] : memref<8x1408xf32, #tpu.memory_space<vmem>>, vector<8x128xf32>
    %c24_220 = arith.constant 24 : index
    %c0_221 = arith.constant 0 : index
    %201 = vector.load %arg10[%c24_220, %c0_221] : memref<40x1152xf32, #tpu.memory_space<vmem>>, vector<8x128xf32>
    tpu.vector_store %arg10[%c24_220, %c0_221], %200 {strides = array<i32>} : memref<40x1152xf32, #tpu.memory_space<vmem>>, vector<8x128xf32>,
    %c0_222 = arith.constant 0 : index
    %c130_223 = arith.constant 130 : index
    %202 = vector.load %arg9[%c0_222, %c130_223] : memref<8x1408xf32, #tpu.memory_space<vmem>>, vector<8x128xf32>
    %c32_224 = arith.constant 32 : index
    %c0_225 = arith.constant 0 : index
    %203 = vector.load %arg10[%c32_224, %c0_225] : memref<40x1152xf32, #tpu.memory_space<vmem>>, vector<8x128xf32>
    tpu.vector_store %arg10[%c32_224, %c0_225], %202 {strides = array<i32>} : memref<40x1152xf32, #tpu.memory_space<vmem>>, vector<8x128xf32>,
    %c0_226 = arith.constant 0 : index
    %c0_227 = arith.constant 0 : index
    %204 = vector.load %arg10[%c0_226, %c0_227] : memref<40x1152xf32, #tpu.memory_space<vmem>>, vector<40x128xf32>
    %cst_228 = arith.constant dense<0.000000e+00> : vector<8x128xf32>
    %205 = tpu.matmul %184, %204, %cst_228 {dimension_numbers = #tpu.dot_dimension_numbers<[1], [0], [0], [1], [0, 0, 1, 1], [], []>} : vector<8x40xf32>, vector<40x128xf32>, vector<8x128xf32> -> vector<8x128xf32>
    %206 = vector.broadcast %153 : vector<8x1xf32> to vector<8x128xf32>
    %207 = arith.addf %205, %206 : vector<8x128xf32>
    %c2_229 = arith.constant 2 : index
    %c0_230 = arith.constant 0 : index
    %c0_231 = arith.constant 0 : index
    %208 = vector.load %arg4[%c2_229, %c0_230, %c0_231] : memref<3x8x8xf32, #tpu.memory_space<vmem>>, vector<1x8x8xf32>
    %209 = vector.shape_cast %208 : vector<1x8x8xf32> to vector<8x8xf32>
    %cst_232 = arith.constant dense<0.000000e+00> : vector<8x128xf32>
    %210 = tpu.matmul %209, %149, %cst_232 {dimension_numbers = #tpu.dot_dimension_numbers<[1], [0], [0], [1], [0, 0, 1, 1], [], []>} : vector<8x8xf32>, vector<8x128xf32>, vector<8x128xf32> -> vector<8x128xf32>
    %211 = vector.broadcast %155 : vector<8x1xf32> to vector<8x128xf32>
    %212 = arith.addf %210, %211 : vector<8x128xf32>
    %213 = arith.addf %207, %212 : vector<8x128xf32>
    %cst_233 = arith.constant 0.000000e+00 : f32
    %214 = vector.broadcast %cst_233 : f32 to vector<8x128xf32>
    %215 = arith.maximumf %213, %214 : vector<8x128xf32>
    %216 = vector.extract_strided_slice %215 {offsets = [0, 0], sizes = [4, 128], strides = [1, 1]} : vector<8x128xf32> to vector<4x128xf32>
    %c0_234 = arith.constant 0 : index
    %c0_235 = arith.constant 0 : index
    %c0_236 = arith.constant 0 : index
    %217 = vector.load %arg8[%c0_234, %c0_235, %c0_236] : memref<1x4x128xf32, #tpu.memory_space<vmem>>, vector<1x4x128xf32>
    %218 = vector.shape_cast %217 : vector<1x4x128xf32> to vector<4x128xf32>
    %219 = vector.shape_cast %216 : vector<4x128xf32> to vector<1x4x128xf32>
    tpu.vector_store %arg8[%c0_234, %c0_235, %c0_236], %219 {strides = array<i32>} : memref<1x4x128xf32, #tpu.memory_space<vmem>>, vector<1x4x128xf32>,
    return
  }
  func.func @transform_0(%arg0: i32) -> (i32, i32, i32) {
    %c0_i32 = arith.constant 0 : i32
    %c0_i32_0 = arith.constant 0 : i32
    %c0_i32_1 = arith.constant 0 : i32
    return %arg0, %c0_i32, %c0_i32_0 : i32, i32, i32
  }
  func.func @transform_1(%arg0: i32) -> (i32, i32, i32) {
    %c0_i32 = arith.constant 0 : i32
    %c0_i32_0 = arith.constant 0 : i32
    %c0_i32_1 = arith.constant 0 : i32
    %c0_i32_2 = arith.constant 0 : i32
    return %c0_i32, %c0_i32_0, %c0_i32_1 : i32, i32, i32
  }
  func.func @transform_2(%arg0: i32) -> (i32, i32, i32) {
    %c0_i32 = arith.constant 0 : i32
    %c0_i32_0 = arith.constant 0 : i32
    %c0_i32_1 = arith.constant 0 : i32
    %c0_i32_2 = arith.constant 0 : i32
    return %c0_i32, %c0_i32_0, %c0_i32_1 : i32, i32, i32
  }
  func.func @transform_3(%arg0: i32) -> (i32, i32, i32) {
    %c0_i32 = arith.constant 0 : i32
    %c0_i32_0 = arith.constant 0 : i32
    %c0_i32_1 = arith.constant 0 : i32
    %c0_i32_2 = arith.constant 0 : i32
    return %c0_i32, %c0_i32_0, %c0_i32_1 : i32, i32, i32
  }
  func.func @transform_4(%arg0: i32) -> (i32, i32, i32) {
    %c0_i32 = arith.constant 0 : i32
    %c0_i32_0 = arith.constant 0 : i32
    %c0_i32_1 = arith.constant 0 : i32
    %c0_i32_2 = arith.constant 0 : i32
    return %c0_i32, %c0_i32_0, %c0_i32_1 : i32, i32, i32
  }
  func.func @transform_5(%arg0: i32) -> (i32, i32) {
    %c0_i32 = arith.constant 0 : i32
    %c0_i32_0 = arith.constant 0 : i32
    %c0_i32_1 = arith.constant 0 : i32
    return %c0_i32, %c0_i32_0 : i32, i32
  }
  func.func @transform_6(%arg0: i32) -> (i32, i32) {
    %c0_i32 = arith.constant 0 : i32
    %c0_i32_0 = arith.constant 0 : i32
    %c0_i32_1 = arith.constant 0 : i32
    return %c0_i32, %c0_i32_0 : i32, i32
  }
  func.func @transform_7(%arg0: i32) -> (i32, i32, i32) {
    %c0_i32 = arith.constant 0 : i32
    %c0_i32_0 = arith.constant 0 : i32
    %c0_i32_1 = arith.constant 0 : i32
    return %arg0, %c0_i32, %c0_i32_0 : i32, i32, i32
  }
}

</mosaic_0001>

<bundles_post_ra>
// kernel: gem_light_cnn_1d.1
= control target key start
LH: loop header
LB: loop body
LE: loop exit
PB: predicated region body
PF: predicated region fallthrough
CT: control target
= control target key end

     0   :  { %s7501_s0 = inlined_call_operand.vmem [shape: f32[2,8,1152], index: 0, kind: input, shape index: {}]   ;;  %s7502_s1 = inlined_call_operand.hbm [shape: f32[3,8,40], index: 1, kind: input, shape index: {}]   ;;  %s7503_s2 = inlined_call_operand.hbm [shape: f32[3,8,40], index: 2, kind: input, shape index: {}]   ;;  %s7504_s3 = inlined_call_operand.hbm [shape: f32[3,8,8], index: 3, kind: input, shape index: {}]   ;;  %s7505_s4 = inlined_call_operand.vmem [shape: f32[3,8,3], index: 4, kind: input, shape index: {}]   ;;  %s7506_s5 = inlined_call_operand.hbm [shape: f32[1152,384], index: 5, kind: input, shape index: {}]   ;;  %s7507_s6 = inlined_call_operand.hbm [shape: f32[384,128], index: 6, kind: input, shape index: {}]   ;;  %s7508_s7 = inlined_call_operand.hbm [shape: f32[2,4,128], index: 7, kind: output, shape index: {}]  }
   0x1   :  { %7520 = sst [smem:[#allocation20_spill]] %s7503_s2 }
   0x2   :  { %12 = vsyncpa [#allocation5], 0 }
   0x3   :  { %13 = vsyncpa [#allocation8], 0 }
   0x4   :  { %14 = vsyncpa [#allocation11], 0 }
   0x5   :  { %15 = vsyncpa [#allocation6], 0 }
   0x6   :  { %17 = vsyncpa [#allocation6 + $0x1], 0  ;;  %s6573_s24 = smov 0   ;;  %s6575_s25 = smov 0  }
   0x7   :  { %s6577_s26 = smov 0   ;;  %s6579_s27 = smov 0  }
   0x8 LB: > { %7521 = sst [smem:[#allocation18_spill]] %s6506_s26  ;;  %s6594_s28 = sadd.s32 4294967295, %s6510_s27   ;;  %s6510_s27 = sphi %s6579_s27, %s7548_s27   ;;  %s6506_s26 = sphi %s6577_s26, %s7545_s26   ;;  %s6502_s25 = sphi %s6575_s25, %s7547_s25   ;;  %s6498_s24 = sphi %s6573_s24, %s7546_s24  }
   0x9   : > { %s4777_s29 = sadd.s32 4294967294, %s6510_s27   ;;  %s6598_s30 = sadd.s32 1, %s6510_s27  }
   0xa   : > { %s182_s8 = sadd.s32 1, %s6506_s26  ;;  %s179_s9 = ssub.s32 %s6510_s27, %s6598_s30 }
   0xb   : > { %p192_p0 = scmp.ne.s32.totalorder %s6506_s26, %s6502_s25  ;;  %p180_p1 = scmp.eq.s32.totalorder %s179_s9, 0 }
   0xc   : > { %p193_p2 = scmp.eq.s32.totalorder %s6594_s28, 1  ;;  %p198_p3 = scmp.ne.s32.totalorder %s6502_s25, %s6498_s24 }
   0xd   : > { %p199_p4 = scmp.eq.s32.totalorder %s4777_s29, 1  ;;  %p4778_p7 = scmp.ge.s32.totalorder %s6510_s27, 1 }
   0xe   : > { %s6609_s10 = scalar_select %p180_p1, %s6506_s26, %s182_s8  }
   0xf   : > { %p6611_p5 = por %p193_p2, %p192_p0  ;;  %p6615_p6 = por %p199_p4, %p198_p3 }
  0x10   : > { %7522 = sst [smem:[#allocation19_spill]] %s6609_s10  ;;  %p206_p8 = scmp.lt.s32.totalorder %s6510_s27, 3 }
  0x11   : > { %s7523_s11 = scalar_select %p6611_p5, 1, 0 }
  0x12   : > { %s7524_s12 = scalar_select %p6615_p6, 1, 0 }
  0x13   : > { %p7509_p9 = scmp.eq.s32.totalorder %s6594_s28, 0  ;;  %p6622_p10 = pnand %p4778_p7, %p206_p8 }
  0x14   : > { %s6512_s14 = smov [#allocation7]   ;;  %s6513_s17 = smov [#allocation10]  }
  0x15   : > { %s7525_s13 = scalar_select %p6622_p10, 1, 0 }
  0x16   : > { %p5994_p11 = pneg %p6622_p10  ;;  %s231_s15 = sshll.u32 %s6512_s14, 4  ;;  %s232_s15 = int_to_ptr.vmem [resolvable:$true] %s231_s15 }
  0x17   : > { %s260_s18 = sshll.u32 %s6513_s17, 4  ;;  %s7527_s2 = sld [smem:[#allocation20_spill]]  ;;  %s6634_s18 = int_to_ptr.vmem [resolvable:$true] %s260_s18 }
  0x18   : > { %p6630_p12 = pnand %p7509_p9, %p5994_p11 }
  0x1a   : > { %p6644_p0 = pneg %p6630_p12 }
  0x1d   : > { %s6296_s21 = scalar_lea.hbm %s7527_s2, 384 }
  0x1e   : > { %p6297_p13 = scmp.ne.s32.totalorder %s7527_s2, %s6296_s21  ;;  %p6303_p3 = scmp.lt.u32.totalorder %s6296_s21, %s7527_s2 }
  0x20   : > { %p6299_p1 = pnand %p6644_p0, %p6297_p13 }
  0x22   : > { %p6300_p2 = pneg %p6299_p1 }
  0x24   : > { %p6305_p4 = pnand %p6303_p3, %p6300_p2 }
  0x26   : > { %6308 = shalt.err (!%p6305_p4)
}
  0x27   : > { %s6309_s14 = scalar_lea.vmem %s232_s15, 384  ;;  %p6317_p9 = scmp.lt.s32.totalorder %s232_s15, %s232_s15 }
  0x28   : > { %p6310_p7 = scmp.ne.s32.totalorder %s232_s15, %s6309_s14  ;;  %p6318_p6 = scmp.lt.s32.totalorder %s6309_s14, %s6309_s14 }
  0x2a   : > { %p6312_p8 = pnand %p6310_p7, %p6644_p0  ;;  %p6319_p5 = por %p6318_p6, %p6317_p9 }
  0x2c   : > { %p6313_p11 = pneg %p6312_p8 }
  0x2e   : > { %p6320_p10 = pnand %p6319_p5, %p6313_p11 }
  0x30   : > { %6323 = shalt.err (!%p6320_p10)
}
  0x31   : > { %s7513_s17 = smov 128   ;;  %s7515_s19 = smov 8  }
  0x32   : > { %6000 = dma.hbm_to_vmem [thread:$0]  (!%p6630_p12), %s7527_s2, 384, %s232_s15, [#allocation8], %s7513_s17, %s7513_s17, %s7515_s19  }
  0x33   : > { %s6324_s8 = scalar_lea.hbm %s7506_s5, 55296 }
  0x34   : > { %p6325_p5 = scmp.ne.s32.totalorder %s7506_s5, %s6324_s8  ;;  %p6331_p10 = scmp.lt.u32.totalorder %s6324_s8, %s7506_s5 }
  0x36   : > { %p6327_p6 = pnand %p6325_p5, %p6644_p0 }
  0x38   : > { %p6328_p9 = pneg %p6327_p6 }
  0x3a   : > { %p6333_p13 = pnand %p6331_p10, %p6328_p9 }
  0x3c   : > { %6336 = shalt.err (!%p6333_p13)
}
  0x3d   : > { %s6337_s15 = scalar_lea.vmem %s6634_s18, 55296  ;;  %p6345_p4 = scmp.lt.s32.totalorder %s6634_s18, %s6634_s18 }
  0x3e   : > { %p6338_p1 = scmp.ne.s32.totalorder %s6634_s18, %s6337_s15  ;;  %p6346_p7 = scmp.lt.s32.totalorder %s6337_s15, %s6337_s15 }
  0x40   : > { %p6340_p2 = pnand %p6338_p1, %p6644_p0  ;;  %p6347_p8 = por %p6346_p7, %p6345_p4 }
  0x42   : > { %p6341_p3 = pneg %p6340_p2 }
  0x44   : > { %p6348_p11 = pnand %p6347_p8, %p6341_p3 }
  0x46   : > { %6351 = shalt.err (!%p6348_p11)
}
  0x47   : > { %s6516_s20 = smov 384   ;;  %s6517_s26 = smov 24  }
  0x48   : > { %6006 = dma.hbm_to_vmem [thread:$0]  (!%p6630_p12), %s7506_s5, 55296, %s6634_s18, [#allocation11], %s6516_s20, %s6516_s20, %s6517_s26  }
  0x49   : > { %s6518_s22 = smov [#allocation4]   ;;  %s6519_s8 = smov [#allocation9]  }
  0x4a   : > { %s218_s23 = sshll.u32 %s6518_s22, 4  ;;  %s244_s9 = sshll.u32 %s6519_s8, 4  ;;  %s219_s23 = int_to_ptr.vmem [resolvable:$true] %s218_s23  ;;  %s6686_s9 = int_to_ptr.vmem [resolvable:$true] %s244_s9 }
  0x4b   : > { %s6352_s17 = scalar_lea.hbm %s7502_s1, 384 }
  0x4c   : > { %p6353_p5 = scmp.ne.s32.totalorder %s7502_s1, %s6352_s17  ;;  %p6359_p10 = scmp.lt.u32.totalorder %s6352_s17, %s7502_s1 }
  0x4e   : > { %p6355_p6 = pnand %p6353_p5, %p6644_p0 }
  0x50   : > { %p6356_p9 = pneg %p6355_p6 }
  0x52   : > { %p6361_p13 = pnand %p6359_p10, %p6356_p9 }
  0x54   : > { %6364 = shalt.err (!%p6361_p13)
}
  0x55   : > { %s6365_s20 = scalar_lea.vmem %s219_s23, 384  ;;  %p6373_p4 = scmp.lt.s32.totalorder %s219_s23, %s219_s23 }
  0x56   : > { %p6366_p1 = scmp.ne.s32.totalorder %s219_s23, %s6365_s20  ;;  %p6374_p7 = scmp.lt.s32.totalorder %s6365_s20, %s6365_s20 }
  0x58   : > { %p6368_p2 = pnand %p6366_p1, %p6644_p0  ;;  %p6375_p8 = por %p6374_p7, %p6373_p4 }
  0x5a   : > { %p6369_p3 = pneg %p6368_p2 }
  0x5c   : > { %p6376_p11 = pnand %p6375_p8, %p6369_p3 }
  0x5e   : > { %6379 = shalt.err (!%p6376_p11)
}
  0x5f   : > { %s7529_s2 = smov 8   ;;  %s7530_s19 = smov 128  }
  0x60   : > { %5997 = dma.hbm_to_vmem [thread:$0]  (!%p6630_p12), %s7502_s1, 384, %s219_s23, [#allocation5], %s7530_s19, %s7530_s19, %s7529_s2  }
  0x61   : > { %s6380_s8 = scalar_lea.hbm %s7504_s3, 384 }
  0x62   : > { %p6381_p5 = scmp.ne.s32.totalorder %s7504_s3, %s6380_s8  ;;  %p6387_p10 = scmp.lt.u32.totalorder %s6380_s8, %s7504_s3 }
  0x64   : > { %p6383_p6 = pnand %p6381_p5, %p6644_p0 }
  0x66   : > { %p6384_p9 = pneg %p6383_p6 }
  0x68   : > { %p6389_p13 = pnand %p6387_p10, %p6384_p9 }
  0x6a   : > { %6392 = shalt.err (!%p6389_p13)
}
  0x6b   : > { %s6393_s23 = scalar_lea.vmem %s6686_s9, 384  ;;  %p6401_p4 = scmp.lt.s32.totalorder %s6686_s9, %s6686_s9 }
  0x6c   : > { %p6394_p1 = scmp.ne.s32.totalorder %s6686_s9, %s6393_s23  ;;  %p6402_p7 = scmp.lt.s32.totalorder %s6393_s23, %s6393_s23 }
  0x6e   : > { %p6396_p2 = pnand %p6394_p1, %p6644_p0  ;;  %p6403_p8 = por %p6402_p7, %p6401_p4 }
  0x70   : > { %p6397_p3 = pneg %p6396_p2 }
  0x72   : > { %p6404_p11 = pnand %p6403_p8, %p6397_p3 }
  0x74   : > { %6407 = shalt.err (!%p6404_p11)
}
  0x75   : > { %6003 = dma.hbm_to_vmem [thread:$0]  (!%p6630_p12), %s7504_s3, 384, %s6686_s9, [#allocation8], %s7530_s19, %s7530_s19, %s7529_s2  }
  0x76   : > { %s6520_s17 = smov [#allocation12]   ;;  %s6408_s14 = scalar_lea.hbm %s7507_s6, 6144 }
  0x77   : > { %s273_s21 = sshll.u32 %s6520_s17, 4  ;;  %p6409_p5 = scmp.ne.s32.totalorder %s7507_s6, %s6408_s14  ;;  %s274_s21 = int_to_ptr.vmem [resolvable:$true] %s273_s21 }
  0x78   : > { %p6415_p10 = scmp.lt.u32.totalorder %s6408_s14, %s7507_s6 }
  0x79   : > { %p6411_p6 = pnand %p6409_p5, %p6644_p0 }
  0x7b   : > { %p6412_p9 = pneg %p6411_p6 }
  0x7d   : > { %p6417_p13 = pnand %p6415_p10, %p6412_p9 }
  0x7f   : > { %6420 = shalt.err (!%p6417_p13)
}
  0x80   : > { %s6421_s9 = scalar_lea.vmem %s274_s21, 6144  ;;  %p6429_p4 = scmp.lt.s32.totalorder %s274_s21, %s274_s21 }
  0x81   : > { %p6422_p1 = scmp.ne.s32.totalorder %s274_s21, %s6421_s9  ;;  %p6430_p7 = scmp.lt.s32.totalorder %s6421_s9, %s6421_s9 }
  0x83   : > { %p6424_p2 = pnand %p6422_p1, %p6644_p0  ;;  %p6431_p8 = por %p6430_p7, %p6429_p4 }
  0x85   : > { %p6425_p3 = pneg %p6424_p2 }
  0x87   : > { %p6432_p11 = pnand %p6431_p8, %p6425_p3 }
  0x89   : > { %6435 = shalt.err (!%p6432_p11)
}
  0x8a   : > { %6009 = dma.hbm_to_vmem [thread:$0]  (!%p6630_p12), %s7507_s6, 6144, %s274_s21, [#allocation11], %s7530_s19, %s7530_s19, %s7529_s2  }
  0x8b   : > { %p7531_p5 = scmp.ne.s32.totalorder %s7525_s13, 0 }
  0x8c   : > { %p7532_p0 = scmp.eq.s32.totalorder (!%p7531_p5), %s6594_s28, 0 }
  0x8d   : > { %297 = sbr.rel (%p7531_p5) target bundleno = 3885 (0xf2d), region = 48 }
  0x94   : > { %6481 = dma.done.wait (%p7532_p0), [#allocation5], 384   ;;  %p7533_p6 = pmov %p7532_p0 }
  0x95   : > { %p7534_p9 = pmov %p7532_p0 }
  0x96   : > { %6483 = vsyncadd (%p7533_p6), [#allocation5], 4294966912 }
  0x97   : > { %6485 = dma.done.wait (%p7534_p9), [#allocation8], 768   ;;  %p7535_p10 = pmov %p7532_p0 }
  0x98   : > { %p7536_p13 = pmov %p7532_p0 }
  0x99   : > { %6487 = vsyncadd (%p7535_p10), [#allocation8], 4294966528 }
  0x9a   : > { %6489 = dma.done.wait (%p7536_p13), [#allocation11], 61440   ;;  %p7537_p12 = pmov %p7532_p0 }
  0x9b   : > { %p345_p1 = scmp.lt.s32.totalorder %s6594_s28, 1  ;;  %v6521_v0 = vmov 0   ;;  %s6522_s17 = smov 2   ;;  %v6523_v5 = vmov 127   ;;  %vm382_vm0 = vcmask 15360   ;;  %vm491_vm1 = vcmask 7168  }
  0x9c   : > { %6491 = vsyncadd (%p7537_p12), [#allocation11], 4294905856  ;;  %6077 = vset.pattern.permute.xlu0 %v6521_v0  ;;  %6139 = vset.pattern.permute.xlu1 %v6521_v0  ;;  %s6524_s21 = smov 1   ;;  %vm375_vm2 = vcmask 1048560   ;;  %v6525_v20 = vmov 0.0   ;;  %s6526_s22 = smov 127  }
  0x9d   : > { %s346_s13 = scalar_select %p345_p1, %s6594_s28, 1  ;;  %791 = vmatprep.mubr.f32.mxu0 %v6525_v20  ;;  %862 = vmatprep.mubr.f32.mxu1 %v6525_v20  ;;  %v6889_v33 = vld [vmem:[%s7505_s4] sm:$0xff]  ;;  %vm577_vm3 = vcmask 1039360   ;;  %vm645_vm4 = vcmask 1031168   ;;  %v6905_v54 = vld [vmem:[#allocation4] sm:$0xff]  ;;  %vm723_vm5 = vcmask 326656  }
  0x9e   : > { %s6527_s8 = smov 126   ;;  %vm7518_vm6 = vmmov 0   ;;  %vm7517_vm7 = vcmask 64512   ;;  %s342_s20 = sand.u32 1, %s6502_s25  }
  0x9f   : > { %s5899_s16 = smul.u32 72, %s346_s13  ;;  %s4791_s26 = sshll.u32 %s342_s20, 2 }
  0xa0   : > { %s4820_s13 = sshll.u32 %s6594_s28, 6  ;;  %p7542_p3 = scmp.ne.s32.totalorder %s7523_s11, 0 }
  0xa1   : > { %s6777_s19 = scalar_lea.vmem %s7501_s0, %s5899_s16  ;;  %s344_s16 = scalar_lea.vmem [#allocation13], %s4791_s26 }
  0xa2   : > { %v6780_v1 = vld [vmem:[%s6777_s19] sm:$0xff]  ;;  %v6783_v2 = vld [vmem:[%s6777_s19 + $0x8] sm:$0xff]  ;;  %v6814_v17 = vld [vmem:[%s6777_s19 + $0x10] sm:$0xff]  ;;  %s4668_s29 = sshll.u32 %s344_s16, 4  ;;  %s6532_s28 = smov [#allocation13]   ;;  %s7461_s29 = int_to_ptr.vmem [resolvable:$true] %s4668_s29 }
  0xa3   : > { %372 = vperm.xlu0 %6077, %v6780_v1   ;;  %v6079_v3 = vpack.i.bf16 %v6783_v2, %v6780_v1  ;;  %v6789_v4 = vld [vmem:[%s6777_s19 + $0x40] sm:$0xff]  ;;  %v6089_v19 = vpack.i.bf16 %v6814_v17, %v6783_v2  ;;  %v6827_v21 = vld [vmem:[%s6777_s19 + $0x18] sm:$0xff]  ;;  %v6844_v25 = vld [vmem:[%s6777_s19 + $0x28] sm:$0xff] }
  0xa4   : > { %v6094_v22 = vpack.i.bf16 %v6827_v21, %v6814_v17  ;;  %v6836_v23 = vld [vmem:[%s6777_s19 + $0x20] sm:$0xff]  ;;  %v6851_v27 = vld [vmem:[%s6777_s19 + $0x30] sm:$0xff]  ;;  %v6854_v28 = vld [vmem:[%s6777_s19 + $0x38] sm:$0xff] }
  0xa5   : > { %6080 = vrot.lane.b32.xlu1 %v6079_v3, %s6522_s17  ;;  %v6104_v24 = vpack.i.bf16 %v6836_v23, %v6827_v21  ;;  %v6114_v26 = vpack.i.bf16 %v6844_v25, %v6836_v23  ;;  %v6124_v29 = vpack.i.bf16 %v6854_v28, %v6851_v27  ;;  %v6119_v30 = vpack.i.bf16 %v6851_v27, %v6844_v25 }
  0xa6   : > { %v6134_v31 = vpack.i.bf16 %v6789_v4, %v6854_v28 }
  0xa7   : > { %6078 = vset.pattern.permute.xlu0 %v6523_v5 }
  0xa8   : > { %379 = vperm.xlu0 %6078, %v6789_v4  }
  0xa9   : > { %6085 = vrot.lane.b32.xlu1 %v6079_v3, %s6524_s21 }
  0xac   : > { %6140 = vset.pattern.permute.xlu0 %v6521_v0 }
 0x117   : > { %v6796_v6 = vpop.permute.xlu1 %6080 }
 0x118   : > { %v6083_v7 = vunpack.i.h.bf16 %v6796_v6  ;;  %v6082_v8 = vunpack.i.l.bf16 %v6796_v6 }
 0x11a   : > { %v425_v12 = vsel %vm382_vm0, %v6082_v8, %v6083_v7 }
 0x11b   : > { %v6800_v9 = vpop.permute.xlu1 %6085 }
 0x11c   : > { %v6088_v10 = vunpack.i.h.bf16 %v6800_v9  ;;  %v6087_v11 = vunpack.i.l.bf16 %v6800_v9 }
 0x11e   : > { %v493_v13 = vsel %vm491_vm1, %v6087_v11, %v6088_v10 }
 0x11f   : > { %v5237_v14 = vpack.c.bf16 %v493_v13, %v425_v12 }
 0x121   : > { %5238 = vmatprep.subr.bf16.mxu0 %v5237_v14 }
 0x122   : > { %v373_v15 = vpop.permute.xlu0 %372 }
 0x123   : > { %376 = vst.msk [vmem:[#allocation2] sm:$0xff] %vm375_vm2, %v373_v15 }
 0x127   : > { %v380_v16 = vpop.permute.xlu0 %379 }
 0x128   : > { %383 = vst.msk [vmem:[#allocation2 + $0x50] sm:$0xff] %vm382_vm0, %v380_v16 }
 0x12a   : > { %v451_v18 = vld [vmem:[#allocation2] sm:$0xff] }
 0x12b   : > { %471 = vrot.lane.b32.xlu0 %v451_v18, %s6524_s21  ;;  %404 = vrot.lane.b32.xlu1 %v451_v18, %s6522_s17 }
 0x12f   : > { %557 = vrot.lane.b32.xlu0 %v6780_v1, %s6526_s22  ;;  %6090 = vrot.lane.b32.xlu1 %v6089_v19, %s6526_s22  ;;  %v546_v32 = vld [vmem:[#allocation2 + $0x50] sm:$0xff] }
 0x133   : > { %629 = vrot.lane.b32.xlu0 %v6814_v17, %s6527_s8  ;;  %627 = vrot.lane.b32.xlu1 %v6783_v2, %s6527_s8 }
 0x137   : > { %6095 = vrot.lane.b32.xlu0 %v6094_v22, %s6522_s17  ;;  %625 = vrot.lane.b32.xlu1 %v6780_v1, %s6527_s8 }
 0x13b   : > { %6105 = vrot.lane.b32.xlu0 %v6104_v24, %s6526_s22  ;;  %6100 = vrot.lane.b32.xlu1 %v6094_v22, %s6524_s21 }
 0x13f   : > { %6115 = vrot.lane.b32.xlu0 %v6114_v26, %s6524_s21  ;;  %6110 = vrot.lane.b32.xlu1 %v6114_v26, %s6522_s17 }
 0x143   : > { %6125 = vrot.lane.b32.xlu0 %v6124_v29, %s6522_s17  ;;  %6120 = vrot.lane.b32.xlu1 %v6119_v30, %s6526_s22 }
 0x147   : > { %631 = vrot.lane.b32.xlu0 %v6827_v21, %s6527_s8  ;;  %6130 = vrot.lane.b32.xlu1 %v6124_v29, %s6524_s21 }
 0x14b   : > { %6135 = vrot.lane.b32.xlu0 %v6134_v31, %s6526_s22  ;;  %633 = vrot.lane.b32.xlu1 %v6836_v23, %s6527_s8 }
 0x14f   : > { %637 = vrot.lane.b32.xlu0 %v6851_v27, %s6527_s8  ;;  %635 = vrot.lane.b32.xlu1 %v6844_v25, %s6527_s8 }
 0x153   : > { %489 = vrot.lane.b32.xlu0 %v6789_v4, %s6524_s21  ;;  %422 = vrot.lane.b32.xlu1 %v6789_v4, %s6522_s17 }
 0x157   : > { %575 = vrot.lane.b32.xlu1 %v546_v32, %s6526_s22  ;;  %639 = vrot.lane.b32.xlu0 %v6854_v28, %s6527_s8 }
 0x15b   : > { %641 = vrot.lane.b32.xlu1 %v6789_v4, %s6527_s8  ;;  %643 = vrot.lane.b32.xlu0 %v546_v32, %s6527_s8 }
 0x15f   : > { %720 = vperm.xlu1 %6139, %v6889_v33  }
 0x19d   : > { %v472_v34 = vpop.permute.xlu0 %471  ;;  %v405_v35 = vpop.permute.xlu1 %404 }
 0x19e   : > { %v492_v36 = vsel %vm491_vm1, %v472_v34, %v6087_v11  ;;  %v424_v37 = vsel %vm382_vm0, %v405_v35, %v6082_v8 }
 0x19f   : > { %v5239_v38 = vpack.c.bf16 %v492_v36, %v424_v37 }
 0x1a1   : > { %v558_v39 = vpop.permute.xlu0 %557  ;;  %v6091_v40 = vpop.permute.xlu1 %6090  ;;  %5240 = vmatpush1.bf16.msra.mxu0 %v5239_v38 }
 0x1a2   : > { %v6093_v41 = vunpack.i.h.bf16 %v6091_v40  ;;  %v6092_v42 = vunpack.i.l.bf16 %v6091_v40 }
 0x1a4   : > { %v579_v43 = vsel %vm577_vm3, %v6092_v42, %v6093_v41  ;;  %v578_v44 = vsel %vm577_vm3, %v558_v39, %v6092_v42 }
 0x1a5   : > { %v6898_v45 = vpop.permute.xlu0 %629  ;;  %v628_v46 = vpop.permute.xlu1 %627  ;;  %v5241_v47 = vpack.c.bf16 %v579_v43, %v6783_v2  ;;  %v5243_v48 = vpack.c.bf16 %v578_v44, %v6780_v1 }
 0x1a6   : > { %v647_v49 = vsel %vm645_vm4, %v628_v46, %v6898_v45 }
 0x1a7   : > { %5242 = vmatprep.subr.bf16.mxu0 %v5241_v47 }
 0x1a8   : > { %5244 = vmatpush1.bf16.msra.mxu0 %v5243_v48 }
 0x1a9   : > { %v6096_v50 = vpop.permute.xlu0 %6095  ;;  %v626_v51 = vpop.permute.xlu1 %625  ;;  %735 = vmatprep.subr.mxu0 %v647_v49 }
 0x1aa   : > { %v6098_v52 = vunpack.i.h.bf16 %v6096_v50  ;;  %v646_v53 = vsel %vm645_vm4, %v626_v51, %v628_v46  ;;  %v6097_v55 = vunpack.i.l.bf16 %v6096_v50 }
 0x1ac   : > { %736 = vmatpush1.msra.mxu0 %v646_v53  ;;  %v427_v58 = vsel %vm382_vm0, %v6097_v55, %v6098_v52  ;;  %v426_v3 = vsel %vm382_vm0, %v6083_v7, %v6097_v55 }
 0x1ad   : > { %v6106_v56 = vpop.permute.xlu0 %6105  ;;  %v6101_v57 = vpop.permute.xlu1 %6100  ;;  %4793 = vmatmul.mubr.msk.f32.vlgmr.msra.gmra.mrb[0].mxu0 %vm723_vm5, %v6905_v54 }
 0x1ae   : > { %v6108_v59 = vunpack.i.h.bf16 %v6106_v56  ;;  %v6107_v60 = vunpack.i.l.bf16 %v6106_v56  ;;  %v6103_v61 = vunpack.i.h.bf16 %v6101_v57  ;;  %v6102_v62 = vunpack.i.l.bf16 %v6101_v57  ;;  %933 = vmatprep.mubr.f32.mxu0 %v6525_v20 }
 0x1b0   : > { %v495_v63 = vsel %vm491_vm1, %v6102_v62, %v6103_v61  ;;  %v494_v8 = vsel %vm491_vm1, %v6088_v10, %v6102_v62  ;;  %v581_v11 = vsel %vm577_vm3, %v6107_v60, %v6108_v59  ;;  %v580_v18 = vsel %vm577_vm3, %v6093_v41, %v6107_v60 }
 0x1b1   : > { %v6116_v12 = vpop.permute.xlu0 %6115  ;;  %v6111_v13 = vpop.permute.xlu1 %6110  ;;  %v5245_v14 = vpack.c.bf16 %v495_v63, %v427_v58  ;;  %v5247_v15 = vpack.c.bf16 %v494_v8, %v426_v3  ;;  %v5249_v16 = vpack.c.bf16 %v581_v11, %v6827_v21  ;;  %v5251_v31 = vpack.c.bf16 %v580_v18, %v6814_v17 }
 0x1b2   : > { %v6118_v19 = vunpack.i.h.bf16 %v6116_v12  ;;  %v6117_v22 = vunpack.i.l.bf16 %v6116_v12  ;;  %v6113_v24 = vunpack.i.h.bf16 %v6111_v13  ;;  %v6112_v6 = vunpack.i.l.bf16 %v6111_v13 }
 0x1b3   : > { %5246 = vmatprep.subr.bf16.mxu1 %v5245_v14  ;;  %v6528_v13 = vmov 0.0|0.0  }
 0x1b4   : > { %v496_v7 = vsel %vm491_vm1, %v6103_v61, %v6117_v22  ;;  %v428_v9 = vsel %vm382_vm0, %v6098_v52, %v6112_v6  ;;  %5248 = vmatpush1.bf16.msra.mxu1 %v5247_v15  ;;  %v429_v10 = vsel %vm382_vm0, %v6112_v6, %v6113_v24  ;;  %v497_v26 = vsel %vm491_vm1, %v6117_v22, %v6118_v19 }
 0x1b5   : > { %v6126_v29 = vpop.permute.xlu0 %6125  ;;  %v6121_v30 = vpop.permute.xlu1 %6120  ;;  %5250 = vmatprep.subr.bf16.mxu1 %v5249_v16  ;;  %v5253_v32 = vpack.c.bf16 %v497_v26, %v429_v10  ;;  %v5255_v34 = vpack.c.bf16 %v496_v7, %v428_v9 }
 0x1b6   : > { %v6128_v35 = vunpack.i.h.bf16 %v6126_v29  ;;  %v6127_v36 = vunpack.i.l.bf16 %v6126_v29  ;;  %v6123_v37 = vunpack.i.h.bf16 %v6121_v30  ;;  %v6122_v38 = vunpack.i.l.bf16 %v6121_v30 }
 0x1b7   : > { %5254 = vmatprep.subr.bf16.mxu0 %v5253_v32 }
 0x1b8   : > { %v582_v39 = vsel %vm577_vm3, %v6108_v59, %v6122_v38  ;;  %5252 = vmatpush1.bf16.msra.mxu1 %v5251_v31  ;;  %5256 = vmatpush1.bf16.msra.mxu0 %v5255_v34  ;;  %v583_v40 = vsel %vm577_vm3, %v6122_v38, %v6123_v37  ;;  %v431_v48 = vsel %vm382_vm0, %v6127_v36, %v6128_v35 }
 0x1b9   : > { %v632_v41 = vpop.permute.xlu0 %631  ;;  %v6131_v42 = vpop.permute.xlu1 %6130  ;;  %v5257_v43 = vpack.c.bf16 %v583_v40, %v6844_v25  ;;  %v5259_v44 = vpack.c.bf16 %v582_v39, %v6836_v23  ;;  %v430_v49 = vsel %vm382_vm0, %v6113_v24, %v6127_v36 }
 0x1ba   : > { %v6133_v46 = vunpack.i.h.bf16 %v6131_v42  ;;  %v6132_v47 = vunpack.i.l.bf16 %v6131_v42  ;;  %v648_v58 = vsel %vm645_vm4, %v6898_v45, %v632_v41 }
 0x1bb   : > { %5258 = vmatprep.subr.bf16.mxu0 %v5257_v43 }
 0x1bc   : > { %v498_v50 = vsel %vm491_vm1, %v6118_v19, %v6132_v47  ;;  %5260 = vmatpush1.bf16.msra.mxu0 %v5259_v44  ;;  %v499_v51 = vsel %vm491_vm1, %v6132_v47, %v6133_v46 }
 0x1bd   : > { %v6136_v52 = vpop.permute.xlu0 %6135  ;;  %v634_v53 = vpop.permute.xlu1 %633  ;;  %v5261_v55 = vpack.c.bf16 %v499_v51, %v431_v48  ;;  %v5263_v23 = vpack.c.bf16 %v498_v50, %v430_v49 }
 0x1be   : > { %v6138_v56 = vunpack.i.h.bf16 %v6136_v52  ;;  %v6137_v57 = vunpack.i.l.bf16 %v6136_v52  ;;  %v649_v25 = vsel %vm645_vm4, %v632_v41, %v634_v53 }
 0x1bf   : > { %806 = vmatprep.subr.mxu1 %v649_v25 }
 0x1c0   : > { %v584_v59 = vsel %vm577_vm3, %v6123_v37, %v6137_v57  ;;  %807 = vmatpush1.msra.mxu1 %v648_v58  ;;  %v585_v60 = vsel %vm577_vm3, %v6137_v57, %v6138_v56 }
 0x1c1   : > { %v638_v61 = vpop.permute.xlu0 %637  ;;  %v636_v62 = vpop.permute.xlu1 %635  ;;  %4794 = vmatmul.mubr.msk.f32.vlgmr.msra.gmra.mrb[0].mxu1 %vm723_vm5, %v6905_v54  ;;  %5262 = vmatprep.subr.bf16.mxu1 %v5261_v55  ;;  %v5265_v63 = vpack.c.bf16 %v585_v60, %v6854_v28  ;;  %v5267_v3 = vpack.c.bf16 %v584_v59, %v6851_v27 }
 0x1c2   : > { %v651_v8 = vsel %vm645_vm4, %v636_v62, %v638_v61  ;;  %v650_v11 = vsel %vm645_vm4, %v634_v53, %v636_v62  ;;  %5264 = vmatpush1.bf16.msra.mxu1 %v5263_v23  ;;  %1004 = vmatprep.mubr.f32.mxu1 %v6525_v20 }
 0x1c3   : > { %877 = vmatprep.subr.mxu0 %v651_v8  ;;  %5266 = vmatprep.subr.bf16.mxu1 %v5265_v63 }
 0x1c4   : > { %878 = vmatpush1.msra.mxu0 %v650_v11 }
 0x1c5   : > { %v490_v45 = vpop.permute.xlu0 %489  ;;  %v423_v12 = vpop.permute.xlu1 %422  ;;  %4795 = vmatmul.mubr.msk.f32.vlgmr.msra.gmra.mrb[2].mxu0 %vm723_vm5, %v6905_v54  ;;  %5269 = vmatprep.subr.bf16.mxu0 %v6528_v13 }
 0x1c6   : > { %v500_v14 = vsel %vm491_vm1, %v6133_v46, %v490_v45  ;;  %v432_v15 = vsel %vm382_vm0, %v6128_v35, %v423_v12  ;;  %5268 = vmatpush1.bf16.msra.mxu1 %v5267_v3  ;;  %5084 = vmatprep.mubr.msk.f32.mxu0 %vm7518_vm6, %v6525_v20 }
 0x1c7   : > { %v5270_v16 = vpack.c.bf16 %v500_v14, %v432_v15 }
 0x1c9   : > { %v576_v18 = vpop.permute.xlu1 %575  ;;  %5271 = vmatpush3.bf16.msra.mxu0 %v5270_v16  ;;  %v640_v19 = vpop.permute.xlu0 %639 }
 0x1ca   : > { %v586_v22 = vsel %vm577_vm3, %v6138_v56, %v576_v18  ;;  %5272 = vmatprep.subr.bf16.mxu0 %v6528_v13  ;;  %v652_v6 = vsel %vm645_vm4, %v638_v61, %v640_v19 }
 0x1cb   : > { %v5273_v24 = vpack.c.bf16 %v586_v22, %v6789_v4 }
 0x1cd   : > { %v642_v7 = vpop.permute.xlu1 %641  ;;  %5274 = vmatpush3.bf16.msra.mxu0 %v5273_v24  ;;  %v644_v9 = vpop.permute.xlu0 %643 }
 0x1ce   : > { %v654_v10 = vsel %vm645_vm4, %v642_v7, %v644_v9  ;;  %v653_v26 = vsel %vm645_vm4, %v640_v19, %v642_v7  ;;  %5082 = vmatprep.subr.mxu0 %v6525_v20 }
 0x1cf   : > { %948 = vmatprep.subr.mxu1 %v653_v26 }
 0x1d0   : > { %949 = vmatpush1.msra.mxu1 %v652_v6 }
 0x1d1   : > { %4796 = vmatmul.mubr.msk.f32.vlgmr.msra.gmra.mrb[2].mxu1 %vm723_vm5, %v6905_v54  ;;  %5083 = vmatpush3.msra.mxu0 %v654_v10 }
 0x1d2   : > { %5085 = vmatmul.mubr.msk.f32.vlgmr.msra.gmra.mrb[4].mxu0 %vm723_vm5, %v6905_v54  ;;  %1514 = vmatprep.mubr.f32.mxu1 %v6525_v20 }
 0x1d3   : > { %1585 = vmatprep.mubr.f32.mxu0 %v6525_v20 }
 0x1de   : > { %v721_v4 = vpop.permute.xlu1 %720 }
 0x280   : > { %v793_v29 = vpop.f32.mrb[0].mxu0 }
 0x281   : > { %v794_v30 = vadd.f32 %v793_v29, %v721_v4  ;;  %v795_v31 = vpop.f32.mrb[1].mxu0 }
 0x282   : > { %v796_v51 = vadd.f32 %v795_v31, %v721_v4 }
 0x283   : > { %v6966_v32 = vmax.f32 %v794_v30, 0.0 }
 0x284   : > { %v6989_v23 = vmax.f32 %v796_v51, 0.0 }
 0x285   : > { %1102 = vperm.xlu0 %6140, %v6966_v32  }
 0x286   : > { %v6166_v59 = vpack.i.bf16 %v6966_v32, %v6989_v23 }
 0x289   : > { %6201 = vset.pattern.permute.xlu0 %v6523_v5 }
 0x294   : > { %v864_v34 = vpop.f32.mrb[0].mxu1 }
 0x295   : > { %v865_v35 = vadd.f32 %v864_v34, %v721_v4  ;;  %v866_v36 = vpop.f32.mrb[1].mxu1 }
 0x296   : > { %v867_v37 = vadd.f32 %v866_v36, %v721_v4 }
 0x297   : > { %v6970_v38 = vmax.f32 %v865_v35, 0.0 }
 0x298   : > { %v6972_v54 = vmax.f32 %v867_v37, 0.0  ;;  %v935_v39 = vpop.f32.mrb[2].mxu0 }
 0x299   : > { %v936_v40 = vadd.f32 %v935_v39, %v721_v4  ;;  %v937_v41 = vpop.f32.mrb[3].mxu0  ;;  %v6171_v60 = vpack.i.bf16 %v6989_v23, %v6970_v38 }
 0x29a   : > { %1094 = vst [vmem:[#allocation2 + $0x20] sm:$0xff] %v6972_v54  ;;  %v938_v42 = vadd.f32 %v937_v41, %v721_v4  ;;  %v6141_v43 = vpack.i.bf16 %v6972_v54, %v6970_v38 }
 0x29b   : > { %v6977_v44 = vmax.f32 %v936_v40, 0.0 }
 0x29c   : > { %v6979_v46 = vmax.f32 %v938_v42, 0.0  ;;  %6142 = vrot.lane.b32.xlu1 %v6141_v43, %s6522_s17 }
 0x29d   : > { %v6176_v61 = vpack.i.bf16 %v6977_v44, %v6972_v54 }
 0x2a0   : > { %6147 = vrot.lane.b32.xlu1 %v6141_v43, %s6524_s21 }
 0x2a4   : > { %v1006_v47 = vpop.f32.mrb[2].mxu1 }
 0x2a5   : > { %v1007_v48 = vadd.f32 %v1006_v47, %v721_v4  ;;  %v1008_v49 = vpop.f32.mrb[3].mxu1  ;;  %v1077_v50 = vpop.f32.mrb[4].mxu0 }
 0x2a6   : > { %v1009_v52 = vadd.f32 %v1008_v49, %v721_v4  ;;  %v1078_v53 = vadd.f32 %v1077_v50, %v721_v4  ;;  %v5086_v55 = vpop.f32.mrb[5].mxu0 }
 0x2a7   : > { %v6983_v56 = vmax.f32 %v1007_v48, 0.0 }
 0x2a8   : > { %v6985_v57 = vmax.f32 %v1009_v52, 0.0  ;;  %v6987_v25 = vmax.f32 %v1078_v53, 0.0 }
 0x2a9   : > { %v6191_v45 = vpack.i.bf16 %v6983_v56, %v6966_v32 }
 0x2aa   : > { %v6156_v58 = vpack.i.bf16 %v6985_v57, %v6983_v56  ;;  %v6181_v62 = vpack.i.bf16 %v6987_v25, %v6985_v57 }
 0x2ac   : > { %6157 = vrot.lane.b32.xlu1 %v6156_v58, %s6524_s21  ;;  %6152 = vrot.lane.b32.xlu0 %v6156_v58, %s6522_s17 }
 0x2b0   : > { %1357 = vrot.lane.b32.xlu0 %v6972_v54, %s6527_s8  ;;  %6167 = vrot.lane.b32.xlu1 %v6166_v59, %s6524_s21 }
 0x2b4   : > { %6172 = vrot.lane.b32.xlu1 %v6171_v60, %s6526_s22  ;;  %6162 = vrot.lane.b32.xlu0 %v6166_v59, %s6522_s17 }
 0x2b8   : > { %1359 = vrot.lane.b32.xlu1 %v6977_v44, %s6527_s8  ;;  %6177 = vrot.lane.b32.xlu0 %v6176_v61, %s6526_s22 }
 0x2bc   : > { %6182 = vrot.lane.b32.xlu1 %v6181_v62, %s6526_s22  ;;  %1355 = vrot.lane.b32.xlu0 %v6970_v38, %s6527_s8 }
 0x304   : > { %v1103_v63 = vpop.permute.xlu0 %1102 }
 0x305   : > { %1105 = vst.msk [vmem:[#allocation2] sm:$0xff] %vm375_vm2, %v1103_v63  ;;  %v6530_v63 = vmov 1  }
 0x30c   : > { %v1179_v3 = vld [vmem:[#allocation2] sm:$0xff] }
 0x30d   : > { %v6196_v8 = vpack.i.bf16 %v6979_v46, %v1179_v3  ;;  %v6531_v3 = vmov 2  }
 0x30e   : > { %v7016_v11 = vpop.permute.xlu1 %6142  ;;  %6203 = vset.pattern.permute.xlu1 %v6531_v3 }
 0x30f   : > { %6197 = vrot.lane.b32.xlu1 %v6196_v8, %s6524_s21  ;;  %6187 = vrot.lane.b32.xlu0 %v6196_v8, %s6522_s17  ;;  %v6145_v12 = vunpack.i.h.bf16 %v7016_v11  ;;  %v6144_v14 = vunpack.i.l.bf16 %v7016_v11 }
 0x311   : > { %v1155_v19 = vsel %vm382_vm0, %v6144_v14, %v6145_v12 }
 0x312   : > { %v7024_v15 = vpop.permute.xlu1 %6147 }
 0x313   : > { %1353 = vrot.lane.b32.xlu1 %v6989_v23, %s6527_s8  ;;  %6192 = vrot.lane.b32.xlu0 %v6191_v45, %s6526_s22  ;;  %v6150_v16 = vunpack.i.h.bf16 %v7024_v15  ;;  %v6149_v18 = vunpack.i.l.bf16 %v7024_v15 }
 0x315   : > { %v1222_v22 = vsel %vm491_vm1, %v6149_v18, %v6150_v16 }
 0x316   : > { %v5283_v24 = vpack.c.bf16 %v1222_v22, %v1155_v19 }
 0x317   : > { %1367 = vrot.lane.b32.xlu1 %v6987_v25, %s6527_s8  ;;  %1365 = vrot.lane.b32.xlu0 %v6985_v57, %s6527_s8 }
 0x318   : > { %5284 = vmatprep.subr.bf16.mxu0 %v5283_v24 }
 0x31b   : > { %1363 = vrot.lane.b32.xlu1 %v6983_v56, %s6527_s8  ;;  %1351 = vrot.lane.b32.xlu0 %v6966_v32, %s6527_s8 }
 0x31e   : > { %v7045_v6 = vpop.permute.xlu1 %6157  ;;  %v7047_v7 = vpop.permute.xlu0 %6152 }
 0x31f   : > { %1142 = vrot.lane.b32.xlu1 %v6977_v44, %s6522_s17  ;;  %1108 = vperm.xlu0 %6201, %v6987_v25   ;;  %v6160_v51 = vunpack.i.h.bf16 %v7045_v6  ;;  %v6159_v52 = vunpack.i.l.bf16 %v7045_v6  ;;  %v6155_v53 = vunpack.i.h.bf16 %v7047_v7  ;;  %v6154_v55 = vunpack.i.l.bf16 %v7047_v7  ;;  %v2219_v7 = vld [vmem:[#allocation10 + $0x38] sm:$0xff]  ;;  %v2218_v6 = vld [vmem:[#allocation10 + $0x30] sm:$0xff] }
 0x322   : > { %v1358_v9 = vpop.permute.xlu0 %1357  ;;  %v7052_v10 = vpop.permute.xlu1 %6167 }
 0x323   : > { %1209 = vrot.lane.b32.xlu1 %v6977_v44, %s6524_s21  ;;  %1294 = vrot.lane.b32.xlu0 %v6979_v46, %s6526_s22  ;;  %v6169_v26 = vunpack.i.l.bf16 %v7052_v10  ;;  %v6170_v4 = vunpack.i.h.bf16 %v7052_v10 }
 0x324   : > { %6202 = vset.pattern.permute.xlu0 %v6530_v63 }
 0x325   : > { %v1221_v37 = vsel %vm491_vm1, %v6169_v26, %v6149_v18  ;;  %v1220_v41 = vsel %vm491_vm1, %v6170_v4, %v6169_v26 }
 0x326   : > { %v7060_v29 = vpop.permute.xlu1 %6172  ;;  %v6163_v30 = vpop.permute.xlu0 %6162 }
 0x327   : > { %1361 = vrot.lane.b32.xlu1 %v6979_v46, %s6527_s8  ;;  %1150 = vrot.lane.b32.xlu0 %v6987_v25, %s6522_s17  ;;  %v6175_v31 = vunpack.i.h.bf16 %v7060_v29  ;;  %v6174_v34 = vunpack.i.l.bf16 %v7060_v29  ;;  %v6165_v35 = vunpack.i.h.bf16 %v6163_v30  ;;  %v6164_v36 = vunpack.i.l.bf16 %v6163_v30 }
 0x329   : > { %v1154_v39 = vsel %vm382_vm0, %v6164_v36, %v6144_v14  ;;  %v1153_v40 = vsel %vm382_vm0, %v6165_v35, %v6164_v36  ;;  %v7075_v42 = vsel %vm577_vm3, %v6175_v31, %v6174_v34  ;;  %v1159_v14 = vsel %vm382_vm0, %v6154_v55, %v6155_v53 }
 0x32a   : > { %v5285_v43 = vpack.c.bf16 %v1221_v37, %v1154_v39  ;;  %v7077_v47 = vpop.permute.xlu0 %6177  ;;  %v5275_v48 = vpack.c.bf16 %v1220_v41, %v1153_v40  ;;  %v7091_v60 = vpop.permute.xlu1 %1359 }
 0x32b   : > { %1217 = vrot.lane.b32.xlu1 %v6987_v25, %s6524_s21  ;;  %v6180_v49 = vunpack.i.h.bf16 %v7077_v47  ;;  %v6179_v50 = vunpack.i.l.bf16 %v7077_v47  ;;  %v1374_v45 = vsel %vm645_vm4, %v1358_v9, %v7091_v60 }
 0x32c   : > { %5276 = vmatprep.subr.bf16.mxu1 %v5275_v48  ;;  %5286 = vmatpush1.bf16.msra.mxu0 %v5285_v43 }
 0x32d   : > { %v1306_v58 = vsel %vm577_vm3, %v6174_v34, %v6179_v50  ;;  %v1307_v59 = vsel %vm577_vm3, %v6179_v50, %v6180_v49 }
 0x32e   : > { %v5289_v61 = vpack.c.bf16 %v1306_v58, %v6970_v38  ;;  %v5287_v62 = vpack.c.bf16 %v1307_v59, %v6972_v54  ;;  %v1356_v8 = vpop.permute.xlu0 %1355  ;;  %v1226_v38 = vsel %vm491_vm1, %v6159_v52, %v6160_v51  ;;  %v7105_v54 = vld [vmem:[#allocation7] sm:$0xff]  ;;  %v7111_v22 = vpop.permute.xlu1 %6182 }
 0x32f   : > { %v1373_v18 = vsel %vm645_vm4, %v1356_v8, %v1358_v9  ;;  %v5299_v19 = vpack.c.bf16 %v1226_v38, %v1159_v14  ;;  %v6185_v24 = vunpack.i.h.bf16 %v7111_v22  ;;  %v6184_v10 = vunpack.i.l.bf16 %v7111_v22  ;;  %v6294_v22 = vld [vmem:[%s6777_s19 + $0x20] sm:$0xff] }
 0x330   : > { %5288 = vmatprep.subr.bf16.mxu0 %v5287_v62  ;;  %v5279_v14 = vpack.c.bf16 %v7075_v42, %v6989_v23 }
 0x331   : > { %5290 = vmatpush1.bf16.msra.mxu0 %v5289_v61  ;;  %v1311_v39 = vsel %vm577_vm3, %v6184_v10, %v6185_v24 }
 0x332   : > { %1529 = vmatprep.subr.mxu0 %v1374_v45  ;;  %v5303_v38 = vpack.c.bf16 %v1311_v39, %v6985_v57 }
 0x335   : > { %1530 = vmatpush1.msra.mxu0 %v1373_v18 }
 0x336   : > { %5300 = vmatprep.subr.bf16.mxu0 %v5299_v19  ;;  %4799 = vmatmul.mubr.msk.f32.vlgmr.msra.gmra.mrb[6].mxu0 %vm723_vm5, %v7105_v54 }
 0x337   : > { %1727 = vmatprep.mubr.f32.mxu0 %v6525_v20 }
 0x381   : > { %v6198_v26 = vpop.permute.xlu1 %6197  ;;  %v6188_v30 = vpop.permute.xlu0 %6187 }
 0x382   : > { %v6200_v34 = vunpack.i.h.bf16 %v6198_v26  ;;  %v6199_v36 = vunpack.i.l.bf16 %v6198_v26  ;;  %v6190_v37 = vunpack.i.h.bf16 %v6188_v30  ;;  %v6189_v9 = vunpack.i.l.bf16 %v6188_v30 }
 0x384   : > { %v1225_v40 = vsel %vm491_vm1, %v6200_v34, %v6159_v52  ;;  %v1219_v41 = vsel %vm491_vm1, %v6199_v36, %v6170_v4  ;;  %v1158_v43 = vsel %vm382_vm0, %v6190_v37, %v6154_v55  ;;  %v1152_v48 = vsel %vm382_vm0, %v6189_v9, %v6165_v35 }
 0x385   : > { %v5301_v50 = vpack.c.bf16 %v1225_v40, %v1158_v43  ;;  %v5277_v58 = vpack.c.bf16 %v1219_v41, %v1152_v48  ;;  %v1354_v59 = vpop.permute.xlu1 %1353  ;;  %v6193_v61 = vpop.permute.xlu0 %6192  ;;  %v2212_v40 = vld [vmem:[#allocation10] sm:$0xff]  ;;  %v2215_v48 = vld [vmem:[#allocation10 + $0x18] sm:$0xff] }
 0x386   : > { %v6195_v62 = vunpack.i.h.bf16 %v6193_v61  ;;  %v6194_v45 = vunpack.i.l.bf16 %v6193_v61  ;;  %v1372_v23 = vsel %vm645_vm4, %v1354_v59, %v1356_v8  ;;  %v7144_v8 = vld [vmem:[#allocation9] sm:$0xff] }
 0x387   : > { %5278 = vmatpush1.bf16.msra.mxu1 %v5277_v58  ;;  %5302 = vmatpush1.bf16.msra.mxu0 %v5301_v50  ;;  %v2222_v50 = vld [vmem:[#allocation10 + $0x50] sm:$0xff]  ;;  %v5315_v58 = vpack.c.bf16 %v2215_v48, %v2212_v40  ;;  %v2260_v40 = vld [vmem:[#allocation10 + $0x180] sm:$0xff] }
 0x388   : > { %v1310_v52 = vsel %vm577_vm3, %v6195_v62, %v6184_v10  ;;  %v1304_v4 = vsel %vm577_vm3, %v6194_v45, %v6175_v31  ;;  %5280 = vmatprep.subr.bf16.mxu1 %v5279_v14  ;;  %5304 = vmatprep.subr.bf16.mxu0 %v5303_v38  ;;  %v2224_v45 = vld [vmem:[#allocation10 + $0x60] sm:$0xff]  ;;  %v2227_v14 = vld [vmem:[#allocation10 + $0x78] sm:$0xff] }
 0x389   : > { %v5305_v35 = vpack.c.bf16 %v1310_v52, %v6983_v56  ;;  %v5281_v55 = vpack.c.bf16 %v1304_v4, %v6966_v32  ;;  %v7131_v18 = vpop.permute.xlu1 %1367  ;;  %v1366_v19 = vpop.permute.xlu0 %1365  ;;  %v2231_v38 = vld [vmem:[#allocation10 + $0x98] sm:$0xff]  ;;  %v2234_v52 = vld [vmem:[#allocation10 + $0xb0] sm:$0xff]  ;;  %v5323_v4 = vpack.c.bf16 %v2227_v14, %v2224_v45 }
 0x38a   : > { %v1378_v57 = vsel %vm645_vm4, %v1366_v19, %v7131_v18 }
 0x38b   : > { %5282 = vmatpush1.bf16.msra.mxu1 %v5281_v55  ;;  %5306 = vmatpush1.bf16.msra.mxu0 %v5305_v35  ;;  %v5325_v35 = vpack.c.bf16 %v2234_v52, %v2231_v38  ;;  %v2230_v55 = vld [vmem:[#allocation10 + $0x90] sm:$0xff]  ;;  %v2281_v52 = vld [vmem:[#allocation10 + $0x228] sm:$0xff] }
 0x38c   : > { %1458 = vmatprep.subr.mxu1 %v1372_v23  ;;  %1671 = vmatprep.subr.mxu0 %v1378_v57  ;;  %v2237_v57 = vld [vmem:[#allocation10 + $0xc8] sm:$0xff]  ;;  %v2240_v23 = vld [vmem:[#allocation10 + $0xe0] sm:$0xff]  ;;  %v2278_v38 = vld [vmem:[#allocation10 + $0x210] sm:$0xff] }
 0x38d   : > { %v1364_v29 = vpop.permute.xlu1 %1363  ;;  %v1352_v31 = vpop.permute.xlu0 %1351 }
 0x38e   : > { %v1377_v42 = vsel %vm645_vm4, %v1364_v29, %v1366_v19  ;;  %v1371_v56 = vsel %vm645_vm4, %v1352_v31, %v1354_v59  ;;  %v2221_v59 = vld [vmem:[#allocation10 + $0x48] sm:$0xff]  ;;  %v5329_v31 = vpack.c.bf16 %v2240_v23, %v2237_v57  ;;  %v2284_v57 = vld [vmem:[#allocation10 + $0x240] sm:$0xff]  ;;  %v2287_v23 = vld [vmem:[#allocation10 + $0x258] sm:$0xff] }
 0x38f   : > { %1459 = vmatpush1.msra.mxu1 %v1371_v56  ;;  %1672 = vmatpush1.msra.mxu0 %v1377_v42  ;;  %v5319_v61 = vpack.c.bf16 %v2221_v59, %v2218_v6  ;;  %v2233_v19 = vld [vmem:[#allocation10 + $0xa8] sm:$0xff]  ;;  %v2236_v42 = vld [vmem:[#allocation10 + $0xc0] sm:$0xff]  ;;  %v2239_v56 = vld [vmem:[#allocation10 + $0xd8] sm:$0xff] }
 0x390   : > { %4798 = vmatmul.mubr.msk.f32.vlgmr.msra.gmra.mrb[4].mxu1 %vm723_vm5, %v7105_v54  ;;  %4801 = vmatmul.mubr.msk.f32.vlgmr.msra.gmra.mrb[8].mxu0 %vm723_vm5, %v7105_v54 }
 0x391   : > { %v1143_v32 = vpop.permute.xlu1 %1142  ;;  %1813 = vmatprep.subr.mxu0 %v6783_v2  ;;  %1877 = vmatprep.mubr.f32.mxu0 %v6525_v20 }
 0x392   : > { %1814 = vmatpush1.msra.mxu0 %v6780_v1  ;;  %1656 = vmatprep.mubr.f32.mxu1 %v6525_v20  ;;  %v1156_v2 = vsel %vm382_vm0, %v6145_v12, %v1143_v32  ;;  %v1157_v26 = vsel %vm382_vm0, %v1143_v32, %v6190_v37  ;;  %v2243_v32 = vld [vmem:[#allocation10 + $0xf8] sm:$0xff] }
 0x393   : > { %1884 = vmatprep.subr.mxu0 %v6827_v21 }
 0x394   : > { %4803 = vmatmul.mubr.msk.f32.vlgmr.msra.gmra.mrb[10].mxu0 %vm7517_vm7, %v7144_v8 }
 0x395   : > { %v1210_v10 = vpop.permute.xlu1 %1209  ;;  %1885 = vmatpush1.msra.mxu0 %v6814_v17  ;;  %1948 = vmatprep.mubr.f32.mxu0 %v6525_v20 }
 0x396   : > { %v1223_v1 = vsel %vm491_vm1, %v6150_v16, %v1210_v10  ;;  %v1224_v21 = vsel %vm491_vm1, %v1210_v10, %v6200_v34  ;;  %2026 = vmatprep.subr.mxu0 %v6854_v28  ;;  %v2246_v10 = vld [vmem:[#allocation10 + $0x110] sm:$0xff] }
 0x397   : > { %v5291_v30 = vpack.c.bf16 %v1224_v21, %v1157_v26  ;;  %v5293_v36 = vpack.c.bf16 %v1223_v1, %v1156_v2  ;;  %v5331_v2 = vpack.c.bf16 %v2239_v56, %v2236_v42  ;;  %v5333_v26 = vpack.c.bf16 %v2246_v10, %v2243_v32  ;;  %v2242_v1 = vld [vmem:[#allocation10 + $0xf0] sm:$0xff]  ;;  %v2245_v21 = vld [vmem:[#allocation10 + $0x108] sm:$0xff] }
 0x398   : > { %4804 = vmatmul.mubr.msk.f32.vlgmr.msra.gmra.mrb[6].mxu0 %vm7517_vm7, %v7144_v8  ;;  %v2294_v42 = vld [vmem:[#allocation10 + $0x290] sm:$0xff]  ;;  %v2293_v10 = vld [vmem:[#allocation10 + $0x288] sm:$0xff] }
 0x399   : > { %5292 = vmatprep.subr.bf16.mxu1 %v5291_v30  ;;  %2027 = vmatpush1.msra.mxu0 %v6851_v27  ;;  %v1362_v11 = vpop.permute.xlu1 %1361  ;;  %v2249_v30 = vld [vmem:[#allocation10 + $0x128] sm:$0xff]  ;;  %v2290_v32 = vld [vmem:[#allocation10 + $0x270] sm:$0xff] }
 0x39a   : > { %5294 = vmatpush1.bf16.msra.mxu1 %v5293_v36  ;;  %2090 = vmatprep.mubr.f32.mxu0 %v6525_v20  ;;  %v1376_v39 = vsel %vm645_vm4, %v1362_v11, %v1364_v29  ;;  %v5327_v29 = vpack.c.bf16 %v2233_v19, %v2230_v55  ;;  %v2252_v36 = vld [vmem:[#allocation10 + $0x140] sm:$0xff] }
 0x39b   : > { %v2288_v55 = vld [vmem:[#allocation10 + $0x260] sm:$0xff] }
 0x39c   : > { %4806 = vmatmul.mubr.msk.f32.vlgmr.msra.gmra.mrb[8].mxu0 %vm7517_vm7, %v7144_v8 }
 0x39d   : > { %v1218_v9 = vpop.permute.xlu1 %1217 }
 0x39e   : > { %v1109_v17 = vpop.permute.xlu0 %1108  ;;  %v1227_v41 = vsel %vm491_vm1, %v6160_v51, %v1218_v9  ;;  %v2228_v51 = vld [vmem:[#allocation10 + $0x80] sm:$0xff]  ;;  %v2257_v9 = vld [vmem:[#allocation10 + $0x168] sm:$0xff] }
 0x39f   : > { %1111 = vst.msk [vmem:[#allocation2 + $0x50] sm:$0xff] %vm382_vm0, %v1109_v17  ;;  %v5335_v17 = vpack.c.bf16 %v2245_v21, %v2242_v1  ;;  %v2300_v1 = vld [vmem:[#allocation10 + $0x2c0] sm:$0xff] }
 0x3a2   : > { %v1295_v12 = vpop.permute.xlu0 %1294 }
 0x3a3   : > { %v1308_v28 = vsel %vm577_vm3, %v6180_v49, %v1295_v12  ;;  %v1309_v15 = vsel %vm577_vm3, %v1295_v12, %v6195_v62  ;;  %v2213_v49 = vld [vmem:[#allocation10 + $0x8] sm:$0xff]  ;;  %v2248_v12 = vld [vmem:[#allocation10 + $0x120] sm:$0xff] }
 0x3a4   : > { %v5295_v16 = vpack.c.bf16 %v1309_v15, %v6979_v46  ;;  %v5297_v27 = vpack.c.bf16 %v1308_v28, %v6977_v44  ;;  %v2216_v46 = vld [vmem:[#allocation10 + $0x20] sm:$0xff]  ;;  %v1375_v44 = vsel %vm645_vm4, %v7091_v60, %v1362_v11  ;;  %v5317_v60 = vpack.c.bf16 %v2222_v50, %v2219_v7  ;;  %v2251_v28 = vld [vmem:[#allocation10 + $0x138] sm:$0xff]  ;;  %v2266_v50 = vld [vmem:[#allocation10 + $0x1b0] sm:$0xff] }
 0x3a5   : > { %v5313_v43 = vpack.c.bf16 %v2216_v46, %v2213_v49  ;;  %v5337_v11 = vpack.c.bf16 %v2252_v36, %v2249_v30  ;;  %v2255_v15 = vld [vmem:[#allocation10 + $0x158] sm:$0xff]  ;;  %v2296_v30 = vld [vmem:[#allocation10 + $0x2a0] sm:$0xff] }
 0x3a6   : > { %v1151_v34 = vpop.permute.xlu0 %1150  ;;  %5296 = vmatprep.subr.bf16.mxu1 %v5295_v16  ;;  %v1340_v37 = vld [vmem:[#allocation2 + $0x50] sm:$0xff]  ;;  %v2299_v36 = vld [vmem:[#allocation10 + $0x2b8] sm:$0xff] }
 0x3a7   : > { %1369 = vrot.lane.b32.xlu1 %v1340_v37, %s6527_s8  ;;  %1302 = vrot.lane.b32.xlu0 %v1340_v37, %s6526_s22  ;;  %v1160_v47 = vsel %vm382_vm0, %v6155_v53, %v1151_v34  ;;  %v2258_v16 = vld [vmem:[#allocation10 + $0x170] sm:$0xff] }
 0x3a8   : > { %5298 = vmatpush1.bf16.msra.mxu1 %v5297_v27  ;;  %v5308_v53 = vpack.c.bf16 %v1227_v41, %v1160_v47  ;;  %5314 = vmatprep.subr.bf16.mxu0 %v5313_v43  ;;  %v5339_v27 = vpack.c.bf16 %v2251_v28, %v2248_v12  ;;  %v5341_v34 = vpack.c.bf16 %v2258_v16, %v2255_v15  ;;  %v2254_v37 = vld [vmem:[#allocation10 + $0x150] sm:$0xff]  ;;  %v2264_v47 = vld [vmem:[#allocation10 + $0x1a0] sm:$0xff]  ;;  %v2267_v41 = vld [vmem:[#allocation10 + $0x1b8] sm:$0xff] }
 0x3a9   : > { %1600 = vmatprep.subr.mxu1 %v1376_v39  ;;  %5316 = vmatpush1.bf16.msra.mxu0 %v5315_v58  ;;  %v2261_v39 = vld [vmem:[#allocation10 + $0x188] sm:$0xff]  ;;  %v5343_v49 = vpack.c.bf16 %v2257_v9, %v2254_v37  ;;  %v2270_v43 = vld [vmem:[#allocation10 + $0x1d0] sm:$0xff]  ;;  %v2312_v37 = vld [vmem:[#allocation10 + $0x320] sm:$0xff] }
 0x3aa   : > { %5318 = vmatprep.subr.bf16.mxu0 %v5317_v60  ;;  %v5345_v46 = vpack.c.bf16 %v2264_v47, %v2261_v39  ;;  %v5349_v7 = vpack.c.bf16 %v2270_v43, %v2267_v41  ;;  %v2273_v58 = vld [vmem:[#allocation10 + $0x1e8] sm:$0xff]  ;;  %v2276_v60 = vld [vmem:[#allocation10 + $0x200] sm:$0xff]  ;;  %v2306_v12 = vld [vmem:[#allocation10 + $0x2f0] sm:$0xff] }
 0x3ab   : > { %1444 = vperm.xlu0 %6202, %v6889_v33   ;;  %1806 = vperm.xlu1 %6203, %v6889_v33   ;;  %v2225_v33 = vld [vmem:[#allocation10 + $0x68] sm:$0xff]  ;;  %v5353_v59 = vpack.c.bf16 %v2276_v60, %v2273_v58  ;;  %v2302_v15 = vld [vmem:[#allocation10 + $0x2d0] sm:$0xff]  ;;  %v2220_v58 = vld [vmem:[#allocation10 + $0x40] sm:$0xff] }
 0x3ac   : > { %1601 = vmatpush1.msra.mxu1 %v1375_v44  ;;  %v5321_v62 = vpack.c.bf16 %v2228_v51, %v2225_v33  ;;  %v2263_v44 = vld [vmem:[#allocation10 + $0x198] sm:$0xff]  ;;  %v2272_v33 = vld [vmem:[#allocation10 + $0x1e0] sm:$0xff]  ;;  %v2305_v16 = vld [vmem:[#allocation10 + $0x2e8] sm:$0xff] }
 0x3ad   : > { %5307 = vmatprep.subr.bf16.mxu1 %v6528_v13  ;;  %4800 = vmatmul.mubr.msk.f32.vlgmr.msra.gmra.mrb[6].mxu1 %vm723_vm5, %v7105_v54  ;;  %v5347_v48 = vpack.c.bf16 %v2263_v44, %v2260_v40  ;;  %v2275_v51 = vld [vmem:[#allocation10 + $0x1f8] sm:$0xff]  ;;  %v2262_v44 = vld [vmem:[#allocation10 + $0x190] sm:$0xff]  ;;  %v2265_v41 = vld [vmem:[#allocation10 + $0x1a8] sm:$0xff] }
 0x3ae   : > { %5309 = vmatpush3.bf16.msra.mxu1 %v5308_v53  ;;  %5097 = vmatprep.mubr.msk.f32.mxu1 %vm7518_vm6, %v6525_v20  ;;  %v2269_v53 = vld [vmem:[#allocation10 + $0x1c8] sm:$0xff]  ;;  %v5355_v45 = vpack.c.bf16 %v2275_v51, %v2272_v33  ;;  %v2223_v60 = vld [vmem:[#allocation10 + $0x58] sm:$0xff] }
 0x3af   : > { %5310 = vmatprep.subr.bf16.mxu1 %v6528_v13  ;;  %6205 = vset.pattern.permute.xlu0 %v6523_v5  ;;  %v5351_v6 = vpack.c.bf16 %v2269_v53, %v2266_v50  ;;  %v6293_v43 = vld [vmem:[%s6777_s19 + $0x28] sm:$0xff]  ;;  %v6295_v50 = vld [vmem:[%s6777_s19 + $0x40] sm:$0xff]  ;;  %v5607_v33 = vpack.c.bf16 %v2223_v60, %v2220_v58 }
 0x3b0   : > { %6204 = vset.pattern.permute.xlu1 %v6521_v0  ;;  %5320 = vmatpush1.bf16.msra.mxu0 %v5319_v61  ;;  %v2279_v61 = vld [vmem:[#allocation10 + $0x218] sm:$0xff] }
 0x3b1   : > { %5322 = vmatprep.subr.bf16.mxu0 %v5321_v62  ;;  %v2282_v62 = vld [vmem:[#allocation10 + $0x230] sm:$0xff] }
 0x3b2   : > { %v5357_v14 = vpack.c.bf16 %v2282_v62, %v2279_v61  ;;  %v2226_v61 = vld [vmem:[#allocation10 + $0x70] sm:$0xff]  ;;  %v2229_v62 = vld [vmem:[#allocation10 + $0x88] sm:$0xff] }
 0x3b4   : > { %5324 = vmatpush1.bf16.msra.mxu0 %v5323_v4  ;;  %v5359_v4 = vpack.c.bf16 %v2281_v52, %v2278_v38  ;;  %v5611_v38 = vpack.c.bf16 %v2229_v62, %v2226_v61  ;;  %v2310_v62 = vld [vmem:[#allocation10 + $0x310] sm:$0xff] }
 0x3b5   : > { %5326 = vmatprep.subr.bf16.mxu0 %v5325_v35  ;;  %v2285_v35 = vld [vmem:[#allocation10 + $0x248] sm:$0xff] }
 0x3b6   : > { %v5361_v19 = vpack.c.bf16 %v2288_v55, %v2285_v35  ;;  %v2235_v35 = vld [vmem:[#allocation10 + $0xb8] sm:$0xff]  ;;  %v2286_v55 = vld [vmem:[#allocation10 + $0x250] sm:$0xff] }
 0x3b8   : > { %5328 = vmatpush1.bf16.msra.mxu0 %v5327_v29  ;;  %v5363_v29 = vpack.c.bf16 %v2287_v23, %v2284_v57  ;;  %v2238_v23 = vld [vmem:[#allocation10 + $0xd0] sm:$0xff] }
 0x3b9   : > { %5330 = vmatprep.subr.bf16.mxu0 %v5329_v31  ;;  %v2291_v31 = vld [vmem:[#allocation10 + $0x278] sm:$0xff] }
 0x3ba   : > { %v5365_v56 = vpack.c.bf16 %v2294_v42, %v2291_v31  ;;  %v2292_v31 = vld [vmem:[#allocation10 + $0x280] sm:$0xff]  ;;  %v2295_v42 = vld [vmem:[#allocation10 + $0x298] sm:$0xff] }
 0x3bc   : > { %5332 = vmatpush1.bf16.msra.mxu0 %v5331_v2  ;;  %v5367_v2 = vpack.c.bf16 %v2293_v10, %v2290_v32  ;;  %v5621_v32 = vpack.c.bf16 %v2295_v42, %v2292_v31  ;;  %v2244_v10 = vld [vmem:[#allocation10 + $0x100] sm:$0xff] }
 0x3bd   : > { %5334 = vmatprep.subr.bf16.mxu0 %v5333_v26  ;;  %v2297_v26 = vld [vmem:[#allocation10 + $0x2a8] sm:$0xff] }
 0x3be   : > { %v5369_v21 = vpack.c.bf16 %v2300_v1, %v2297_v26  ;;  %v2298_v26 = vld [vmem:[#allocation10 + $0x2b0] sm:$0xff]  ;;  %v2301_v1 = vld [vmem:[#allocation10 + $0x2c8] sm:$0xff] }
 0x3c0   : > { %5336 = vmatpush1.bf16.msra.mxu0 %v5335_v17  ;;  %v5371_v17 = vpack.c.bf16 %v2299_v36, %v2296_v30  ;;  %v5625_v30 = vpack.c.bf16 %v2301_v1, %v2298_v26  ;;  %v2250_v36 = vld [vmem:[#allocation10 + $0x130] sm:$0xff]  ;;  %v2316_v26 = vld [vmem:[#allocation10 + $0x340] sm:$0xff]  ;;  %v2319_v1 = vld [vmem:[#allocation10 + $0x358] sm:$0xff] }
 0x3c1   : > { %5338 = vmatprep.subr.bf16.mxu0 %v5337_v11  ;;  %v2303_v11 = vld [vmem:[#allocation10 + $0x2d8] sm:$0xff] }
 0x3c2   : > { %v5373_v28 = vpack.c.bf16 %v2306_v12, %v2303_v11  ;;  %v2304_v11 = vld [vmem:[#allocation10 + $0x2e0] sm:$0xff]  ;;  %v2307_v12 = vld [vmem:[#allocation10 + $0x2f8] sm:$0xff] }
 0x3c4   : > { %5340 = vmatpush1.bf16.msra.mxu0 %v5339_v27  ;;  %v5375_v27 = vpack.c.bf16 %v2305_v16, %v2302_v15  ;;  %v5629_v15 = vpack.c.bf16 %v2307_v12, %v2304_v11  ;;  %v2256_v16 = vld [vmem:[#allocation10 + $0x160] sm:$0xff]  ;;  %v2373_v11 = vld [vmem:[#allocation10 + $0x508] sm:$0xff] }
 0x3c5   : > { %5342 = vmatprep.subr.bf16.mxu0 %v5341_v34  ;;  %v2309_v34 = vld [vmem:[#allocation10 + $0x308] sm:$0xff] }
 0x3c6   : > { %v5377_v9 = vpack.c.bf16 %v2312_v37, %v2309_v34  ;;  %v2358_v34 = vld [vmem:[#allocation10 + $0x490] sm:$0xff]  ;;  %v2361_v37 = vld [vmem:[#allocation10 + $0x4a8] sm:$0xff] }
 0x3c8   : > { %5344 = vmatpush1.bf16.msra.mxu0 %v5343_v49 }
 0x3c9   : > { %5346 = vmatprep.subr.bf16.mxu0 %v5345_v46 }
 0x3cc   : > { %5348 = vmatpush1.bf16.msra.mxu0 %v5347_v48  ;;  %v2217_v48 = vld [vmem:[#allocation10 + $0x28] sm:$0xff] }
 0x3cd   : > { %5350 = vmatprep.subr.bf16.mxu0 %v5349_v7  ;;  %v2268_v7 = vld [vmem:[#allocation10 + $0x1c0] sm:$0xff] }
 0x3d0   : > { %5352 = vmatpush1.bf16.msra.mxu0 %v5351_v6  ;;  %v2274_v6 = vld [vmem:[#allocation10 + $0x1f0] sm:$0xff] }
 0x3d1   : > { %5354 = vmatprep.subr.bf16.mxu0 %v5353_v59  ;;  %v2277_v59 = vld [vmem:[#allocation10 + $0x208] sm:$0xff] }
 0x3d2   : > { %v5609_v51 = vpack.c.bf16 %v2277_v59, %v2274_v6 }
 0x3d4   : > { %5356 = vmatpush1.bf16.msra.mxu0 %v5355_v45  ;;  %v2280_v45 = vld [vmem:[#allocation10 + $0x220] sm:$0xff] }
 0x3d5   : > { %5358 = vmatprep.subr.bf16.mxu0 %v5357_v14  ;;  %v2283_v14 = vld [vmem:[#allocation10 + $0x238] sm:$0xff] }
 0x3d6   : > { %v5613_v52 = vpack.c.bf16 %v2283_v14, %v2280_v45  ;;  %v2313_v45 = vld [vmem:[#allocation10 + $0x328] sm:$0xff]  ;;  %v2315_v14 = vld [vmem:[#allocation10 + $0x338] sm:$0xff] }
 0x3d7   : > { %v5635_v42 = vpack.c.bf16 %v2313_v45, %v2310_v62  ;;  %v2334_v45 = vld [vmem:[#allocation10 + $0x3d0] sm:$0xff] }
 0x3d8   : > { %5360 = vmatpush1.bf16.msra.mxu0 %v5359_v4  ;;  %v2232_v4 = vld [vmem:[#allocation10 + $0xa0] sm:$0xff] }
 0x3d9   : > { %5362 = vmatprep.subr.bf16.mxu0 %v5361_v19  ;;  %v2289_v19 = vld [vmem:[#allocation10 + $0x268] sm:$0xff]  ;;  %v5615_v57 = vpack.c.bf16 %v2235_v35, %v2232_v4  ;;  %v2318_v35 = vld [vmem:[#allocation10 + $0x350] sm:$0xff] }
 0x3dc   : > { %5364 = vmatpush1.bf16.msra.mxu0 %v5363_v29  ;;  %v2241_v29 = vld [vmem:[#allocation10 + $0xe8] sm:$0xff] }
 0x3dd   : > { %5366 = vmatprep.subr.bf16.mxu0 %v5365_v56  ;;  %v5619_v56 = vpack.c.bf16 %v2241_v29, %v2238_v23 }
 0x3e0   : > { %5368 = vmatpush1.bf16.msra.mxu0 %v5367_v2  ;;  %v2247_v2 = vld [vmem:[#allocation10 + $0x118] sm:$0xff] }
 0x3e1   : > { %5370 = vmatprep.subr.bf16.mxu0 %v5369_v21  ;;  %v5623_v21 = vpack.c.bf16 %v2247_v2, %v2244_v10  ;;  %v5381_v10 = vpack.c.bf16 %v2318_v35, %v2315_v14  ;;  %v2337_v14 = vld [vmem:[#allocation10 + $0x3e8] sm:$0xff]  ;;  %v2388_v35 = vld [vmem:[#allocation10 + $0x580] sm:$0xff] }
 0x3e4   : > { %5372 = vmatpush1.bf16.msra.mxu0 %v5371_v17  ;;  %v2253_v17 = vld [vmem:[#allocation10 + $0x148] sm:$0xff] }
 0x3e5   : > { %5374 = vmatprep.subr.bf16.mxu0 %v5373_v28  ;;  %v5627_v28 = vpack.c.bf16 %v2253_v17, %v2250_v36  ;;  %v2324_v36 = vld [vmem:[#allocation10 + $0x380] sm:$0xff]  ;;  %v2370_v17 = vld [vmem:[#allocation10 + $0x4f0] sm:$0xff] }
 0x3e8   : > { %5376 = vmatpush1.bf16.msra.mxu0 %v5375_v27  ;;  %v2259_v27 = vld [vmem:[#allocation10 + $0x178] sm:$0xff] }
 0x3e9   : > { %5378 = vmatprep.subr.bf16.mxu0 %v5377_v9  ;;  %v5631_v9 = vpack.c.bf16 %v2259_v27, %v2256_v16  ;;  %v2320_v16 = vld [vmem:[#allocation10 + $0x360] sm:$0xff]  ;;  %v2323_v27 = vld [vmem:[#allocation10 + $0x378] sm:$0xff] }
 0x419   : > { %v1303_v39 = vpop.permute.xlu0 %1302  ;;  %v1370_v46 = vpop.permute.xlu1 %1369 }
 0x41a   : > { %v1312_v47 = vsel %vm577_vm3, %v6185_v24, %v1303_v39  ;;  %v1379_v40 = vsel %vm645_vm4, %v7131_v18, %v1370_v46  ;;  %v2214_v24 = vld [vmem:[#allocation10 + $0x10] sm:$0xff]  ;;  %v2271_v18 = vld [vmem:[#allocation10 + $0x1d8] sm:$0xff]  ;;  %v5633_v39 = vpack.c.bf16 %v2361_v37, %v2358_v34  ;;  %v5641_v37 = vpack.c.bf16 %v2373_v11, %v2370_v17  ;;  %v2344_v17 = vld [vmem:[#allocation10 + $0x420] sm:$0xff] }
 0x41b   : > { %v5311_v49 = vpack.c.bf16 %v1312_v47, %v6987_v25  ;;  %v5601_v25 = vpack.c.bf16 %v2265_v41, %v2262_v44  ;;  %v5605_v53 = vpack.c.bf16 %v2271_v18, %v2268_v7  ;;  %v2347_v11 = vld [vmem:[#allocation10 + $0x438] sm:$0xff] }
 0x41d   : > { %5312 = vmatpush3.bf16.msra.mxu1 %v5311_v49 }
 0x41e   : > { %5095 = vmatprep.subr.mxu1 %v6525_v20 }
 0x421   : > { %5096 = vmatpush3.msra.mxu1 %v1379_v40 }
 0x422   : > { %5098 = vmatmul.mubr.msk.f32.vlgmr.msra.gmra.mrb[8].mxu1 %vm723_vm5, %v7105_v54  ;;  %1955 = vmatprep.subr.mxu1 %v6293_v43  ;;  %v5603_v54 = vpack.c.bf16 %v2217_v48, %v2214_v24 }
 0x423   : > { %1956 = vmatpush1.msra.mxu1 %v6294_v22  ;;  %2019 = vmatprep.mubr.f32.mxu1 %v6525_v20 }
 0x424   : > { %5100 = vmatprep.subr.mxu1 %v6525_v20 }
 0x426   : > { %4805 = vmatmul.mubr.msk.f32.vlgmr.msra.gmra.mrb[6].mxu1 %vm7517_vm7, %v7144_v8 }
 0x427   : > { %5101 = vmatpush3.msra.mxu1 %v6295_v50  ;;  %5102 = vmatprep.mubr.msk.f32.mxu1 %vm7518_vm6, %v6525_v20 }
 0x428   : > { %5602 = vmatprep.subr.bf16.mxu1 %v5601_v25 }
 0x42a   : > { %5103 = vmatmul.mubr.msk.f32.vlgmr.msra.gmra.mrb[8].mxu1 %vm7517_vm7, %v7144_v8  ;;  %v5617_v8 = vpack.c.bf16 %v2289_v19, %v2286_v55  ;;  %v1445_v47 = vpop.permute.xlu0 %1444  ;;  %v1807_v46 = vpop.permute.xlu1 %1806  ;;  %v2364_v55 = vld [vmem:[#allocation10 + $0x4c0] sm:$0xff]  ;;  %v2367_v19 = vld [vmem:[#allocation10 + $0x4d8] sm:$0xff] }
 0x42b   : > { %5604 = vmatpush3.bf16.msra.mxu1 %v5603_v54  ;;  %v7216_v7 = vadd.f32 %v1807_v46, %v1445_v47  ;;  %v5637_v2 = vpack.c.bf16 %v2367_v19, %v2364_v55  ;;  %v2391_v55 = vld [vmem:[#allocation10 + $0x598] sm:$0xff] }
 0x42c   : > { %5606 = vmatprep.subr.bf16.mxu1 %v5605_v53 }
 0x42f   : > { %5608 = vmatpush3.bf16.msra.mxu1 %v5607_v33  ;;  %v2308_v33 = vld [vmem:[#allocation10 + $0x300] sm:$0xff] }
 0x430   : > { %5610 = vmatprep.subr.bf16.mxu1 %v5609_v51  ;;  %v2311_v51 = vld [vmem:[#allocation10 + $0x318] sm:$0xff] }
 0x431   : > { %v5379_v31 = vpack.c.bf16 %v2311_v51, %v2308_v33  ;;  %v2332_v33 = vld [vmem:[#allocation10 + $0x3c0] sm:$0xff]  ;;  %v2335_v51 = vld [vmem:[#allocation10 + $0x3d8] sm:$0xff] }
 0x432   : > { %v5395_v19 = vpack.c.bf16 %v2335_v51, %v2332_v33  ;;  %v2363_v33 = vld [vmem:[#allocation10 + $0x4b8] sm:$0xff] }
 0x433   : > { %5612 = vmatpush3.bf16.msra.mxu1 %v5611_v38 }
 0x434   : > { %5614 = vmatprep.subr.bf16.mxu1 %v5613_v52 }
 0x437   : > { %5616 = vmatpush3.bf16.msra.mxu1 %v5615_v57 }
 0x438   : > { %5618 = vmatprep.subr.bf16.mxu1 %v5617_v8 }
 0x43b   : > { %5620 = vmatpush3.bf16.msra.mxu1 %v5619_v56  ;;  %v2314_v56 = vld [vmem:[#allocation10 + $0x330] sm:$0xff] }
 0x43c   : > { %5622 = vmatprep.subr.bf16.mxu1 %v5621_v32  ;;  %v2317_v32 = vld [vmem:[#allocation10 + $0x348] sm:$0xff] }
 0x43f   : > { %5624 = vmatpush3.bf16.msra.mxu1 %v5623_v21  ;;  %v2321_v21 = vld [vmem:[#allocation10 + $0x368] sm:$0xff] }
 0x440   : > { %5626 = vmatprep.subr.bf16.mxu1 %v5625_v30  ;;  %v5385_v34 = vpack.c.bf16 %v2324_v36, %v2321_v21  ;;  %v2397_v21 = vld [vmem:[#allocation10 + $0x5c8] sm:$0xff] }
 0x443   : > { %5628 = vmatpush3.bf16.msra.mxu1 %v5627_v28  ;;  %v5383_v28 = vpack.c.bf16 %v2317_v32, %v2314_v56  ;;  %v5653_v56 = vpack.c.bf16 %v2391_v55, %v2388_v35  ;;  %v2340_v32 = vld [vmem:[#allocation10 + $0x400] sm:$0xff]  ;;  %v2362_v35 = vld [vmem:[#allocation10 + $0x4b0] sm:$0xff]  ;;  %v2365_v55 = vld [vmem:[#allocation10 + $0x4c8] sm:$0xff] }
 0x444   : > { %5630 = vmatprep.subr.bf16.mxu1 %v5629_v15  ;;  %v5639_v15 = vpack.c.bf16 %v2319_v1, %v2316_v26  ;;  %v2348_v26 = vld [vmem:[#allocation10 + $0x440] sm:$0xff]  ;;  %v2394_v1 = vld [vmem:[#allocation10 + $0x5b0] sm:$0xff] }
 0x447   : > { %5632 = vmatpush3.bf16.msra.mxu1 %v5631_v9  ;;  %v2322_v9 = vld [vmem:[#allocation10 + $0x370] sm:$0xff] }
 0x448   : > { %5634 = vmatprep.subr.bf16.mxu1 %v5633_v39  ;;  %v2325_v39 = vld [vmem:[#allocation10 + $0x388] sm:$0xff] }
 0x463   : > { %v1516_v49 = vpop.f32.mrb[4].mxu1 }
 0x464   : > { %v1517_v40 = vadd.f32 %v1516_v49, %v1445_v47  ;;  %v1518_v44 = vpop.f32.mrb[5].mxu1  ;;  %v2330_v49 = vld [vmem:[#allocation10 + $0x3b0] sm:$0xff] }
 0x465   : > { %v1519_v41 = vadd.f32 %v1518_v44, %v1445_v47  ;;  %v2327_v47 = vld [vmem:[#allocation10 + $0x398] sm:$0xff]  ;;  %v5387_v44 = vpack.c.bf16 %v2323_v27, %v2320_v16  ;;  %v2349_v16 = vld [vmem:[#allocation10 + $0x448] sm:$0xff] }
 0x466   : > { %v5850_v43 = vadd.f32 %v1807_v46, %v1517_v40  ;;  %v2379_v40 = vld [vmem:[#allocation10 + $0x538] sm:$0xff] }
 0x467   : > { %v1879_v22 = vpop.f32.mrb[10].mxu0  ;;  %v5853_v25 = vadd.f32 %v1807_v46, %v1519_v41  ;;  %v2376_v46 = vld [vmem:[#allocation10 + $0x520] sm:$0xff]  ;;  %v5643_v41 = vpack.c.bf16 %v2325_v39, %v2322_v9  ;;  %v2351_v27 = vld [vmem:[#allocation10 + $0x458] sm:$0xff]  ;;  %v5403_v39 = vpack.c.bf16 %v2347_v11, %v2344_v17 }
 0x468   : > { %v5851_v24 = vadd.f32 %v5850_v43, %v1879_v22  ;;  %v1881_v48 = vpop.f32.mrb[11].mxu0  ;;  %v2326_v43 = vld [vmem:[#allocation10 + $0x390] sm:$0xff]  ;;  %v2329_v22 = vld [vmem:[#allocation10 + $0x3a8] sm:$0xff]  ;;  %v2403_v9 = vld [vmem:[#allocation10 + $0x5f8] sm:$0xff] }
 0x469   : > { %v5854_v18 = vadd.f32 %v5853_v25, %v1881_v48  ;;  %v5389_v25 = vpack.c.bf16 %v2330_v49, %v2327_v47  ;;  %v2328_v48 = vld [vmem:[#allocation10 + $0x3a0] sm:$0xff]  ;;  %v2350_v49 = vld [vmem:[#allocation10 + $0x450] sm:$0xff]  ;;  %v2375_v17 = vld [vmem:[#allocation10 + $0x518] sm:$0xff] }
 0x46a   : > { %v2176_v50 = vmax.f32 %v5851_v24, 0.0  ;;  %v5645_v24 = vpack.c.bf16 %v2379_v40, %v2376_v46  ;;  %v2353_v46 = vld [vmem:[#allocation10 + $0x468] sm:$0xff] }
 0x46b   : > { %v2177_v54 = vmax.f32 %v5854_v18, 0.0  ;;  %v7218_v53 = vpop.f32.mrb[6].mxu0  ;;  %v2331_v18 = vld [vmem:[#allocation10 + $0x3b8] sm:$0xff] }
 0x46c   : > { %v2185_v58 = vmax.f32 %v2176_v50, 1e-06  ;;  %v1952_v60 = vpop.f32.mrb[7].mxu0  ;;  %v2333_v50 = vld [vmem:[#allocation10 + $0x3c8] sm:$0xff] }
 0x46d   : > { %v2186_v6 = vmax.f32 %v2177_v54, 1e-06  ;;  %v5858_v59 = vadd.f32 %v7216_v7, %v1952_v60  ;;  %v2336_v54 = vld [vmem:[#allocation10 + $0x3e0] sm:$0xff]  ;;  %v2385_v60 = vld [vmem:[#allocation10 + $0x568] sm:$0xff] }
 0x46e   : > { %v2194_v61 = vmul.f32 %v2185_v58, %v2185_v58 }
 0x46f   : > { %v2195_v38 = vmul.f32 %v2186_v6, %v2186_v6  ;;  %v2179_v52 = vmax.f32 %v5858_v59, 0.0  ;;  %v7221_v4 = vpop.f32.mrb[8].mxu0  ;;  %v5647_v59 = vpack.c.bf16 %v2331_v18, %v2328_v48  ;;  %v2454_v48 = vld [vmem:[#allocation10 + $0x790] sm:$0xff]  ;;  %v2457_v18 = vld [vmem:[#allocation10 + $0x7a8] sm:$0xff] }
 0x470   : > { %v2203_v57 = vmul.f32 %v2194_v61, %v2185_v58  ;;  %v7223_v8 = vpop.f32.mrb[9].mxu0  ;;  %v2382_v58 = vld [vmem:[#allocation10 + $0x550] sm:$0xff]  ;;  %v5393_v61 = vpack.c.bf16 %v2336_v54, %v2333_v50  ;;  %v5407_v50 = vpack.c.bf16 %v2353_v46, %v2350_v49  ;;  %v5665_v51 = vpack.c.bf16 %v2457_v18, %v2454_v48  ;;  %v2424_v46 = vld [vmem:[#allocation10 + $0x6a0] sm:$0xff] }
 0x471   : > { %v2204_v23 = vmul.f32 %v2195_v38, %v2186_v6  ;;  %v2188_v29 = vmax.f32 %v2179_v52, 1e-06  ;;  %v5391_v6 = vpack.c.bf16 %v2329_v22, %v2326_v43  ;;  %v5649_v62 = vpack.c.bf16 %v2385_v60, %v2382_v58  ;;  %v2339_v38 = vld [vmem:[#allocation10 + $0x3f8] sm:$0xff]  ;;  %v2342_v52 = vld [vmem:[#allocation10 + $0x410] sm:$0xff]  ;;  %v2352_v43 = vld [vmem:[#allocation10 + $0x460] sm:$0xff] }
 0x472   : > { %v2355_v22 = vld [vmem:[#allocation10 + $0x478] sm:$0xff]  ;;  %v2356_v58 = vld [vmem:[#allocation10 + $0x480] sm:$0xff] }
 0x473   : > { %v2197_v30 = vmul.f32 %v2188_v29, %v2188_v29  ;;  %2708 = vmatprep.mubr.f32.mxu0 %v2204_v23  ;;  %3063 = vmatprep.mubr.f32.mxu1 %v2204_v23  ;;  %v2338_v23 = vld [vmem:[#allocation10 + $0x3f0] sm:$0xff]  ;;  %v5663_v54 = vpack.c.bf16 %v2355_v22, %v2352_v43  ;;  %v2359_v60 = vld [vmem:[#allocation10 + $0x498] sm:$0xff]  ;;  %v2481_v43 = vld [vmem:[#allocation10 + $0x868] sm:$0xff] }
 0x474   : > { %2709 = vmatmul.mubr.f32.vlgmr.msra.gmra.mrb[12].mxu0 %v2203_v57  ;;  %3064 = vmatmul.mubr.f32.vlgmr.msra.gmra.mrb[10].mxu1 %v2203_v57  ;;  %v5651_v57 = vpack.c.bf16 %v2337_v14, %v2334_v45  ;;  %v2366_v45 = vld [vmem:[#allocation10 + $0x4d0] sm:$0xff]  ;;  %v2460_v14 = vld [vmem:[#allocation10 + $0x7c0] sm:$0xff] }
 0x475   : > { %v2206_v12 = vmul.f32 %v2197_v30, %v2188_v29  ;;  %5380 = vmatpush1.bf16.msra.mxu0 %v5379_v31  ;;  %5636 = vmatpush3.bf16.msra.mxu1 %v5635_v42  ;;  %v2341_v29 = vld [vmem:[#allocation10 + $0x408] sm:$0xff]  ;;  %v5856_v31 = vadd.f32 %v7216_v7, %v7218_v53  ;;  %v5397_v42 = vpack.c.bf16 %v2342_v52, %v2339_v38  ;;  %v2463_v38 = vld [vmem:[#allocation10 + $0x7d8] sm:$0xff] }
 0x476   : > { %5382 = vmatprep.subr.bf16.mxu0 %v5381_v10  ;;  %5638 = vmatprep.subr.bf16.mxu1 %v5637_v2  ;;  %v2343_v10 = vld [vmem:[#allocation10 + $0x418] sm:$0xff]  ;;  %v2345_v2 = vld [vmem:[#allocation10 + $0x428] sm:$0xff]  ;;  %v5399_v30 = vpack.c.bf16 %v2341_v29, %v2338_v23  ;;  %v5411_v52 = vpack.c.bf16 %v2359_v60, %v2356_v58  ;;  %v5413_v23 = vpack.c.bf16 %v2366_v45, %v2363_v33  ;;  %v2430_v58 = vld [vmem:[#allocation10 + $0x6d0] sm:$0xff] }
 0x477   : > { %2779 = vmatprep.mubr.f32.mxu0 %v2206_v12  ;;  %3133 = vmatprep.mubr.f32.mxu1 %v2206_v12  ;;  %v5655_v36 = vpack.c.bf16 %v2343_v10, %v2340_v32  ;;  %v2178_v12 = vmax.f32 %v5856_v31, 0.0  ;;  %v5401_v53 = vpack.c.bf16 %v2348_v26, %v2345_v2  ;;  %v2369_v29 = vld [vmem:[#allocation10 + $0x4e8] sm:$0xff]  ;;  %v5669_v31 = vpack.c.bf16 %v2463_v38, %v2460_v14  ;;  %v2372_v32 = vld [vmem:[#allocation10 + $0x500] sm:$0xff]  ;;  %v2466_v10 = vld [vmem:[#allocation10 + $0x7f0] sm:$0xff] }
 0x478   : > { %v2469_v2 = vld [vmem:[#allocation10 + $0x808] sm:$0xff]  ;;  %v5415_v26 = vpack.c.bf16 %v2365_v55, %v2362_v35  ;;  %v2487_v33 = vld [vmem:[#allocation10 + $0x898] sm:$0xff]  ;;  %v2436_v35 = vld [vmem:[#allocation10 + $0x700] sm:$0xff] }
 0x479   : > { %5384 = vmatpush1.bf16.msra.mxu0 %v5383_v28  ;;  %5640 = vmatpush3.bf16.msra.mxu1 %v5639_v15  ;;  %v5657_v28 = vpack.c.bf16 %v2397_v21, %v2394_v1  ;;  %v2346_v15 = vld [vmem:[#allocation10 + $0x430] sm:$0xff]  ;;  %v2187_v40 = vmax.f32 %v2178_v12, 1e-06  ;;  %v2368_v1 = vld [vmem:[#allocation10 + $0x4e0] sm:$0xff]  ;;  %v2371_v21 = vld [vmem:[#allocation10 + $0x4f8] sm:$0xff]  ;;  %v5673_v11 = vpack.c.bf16 %v2469_v2, %v2466_v10 }
 0x47a   : > { %5386 = vmatprep.subr.bf16.mxu0 %v5385_v34  ;;  %5642 = vmatprep.subr.bf16.mxu1 %v5641_v37  ;;  %v2354_v34 = vld [vmem:[#allocation10 + $0x470] sm:$0xff]  ;;  %v2400_v37 = vld [vmem:[#allocation10 + $0x5e0] sm:$0xff]  ;;  %v5659_v47 = vpack.c.bf16 %v2349_v16, %v2346_v15  ;;  %v2475_v16 = vld [vmem:[#allocation10 + $0x838] sm:$0xff] }
 0x47b   : > { %v2418_v12 = vld [vmem:[#allocation10 + $0x670] sm:$0xff]  ;;  %v2472_v15 = vld [vmem:[#allocation10 + $0x820] sm:$0xff]  ;;  %v2433_v60 = vld [vmem:[#allocation10 + $0x6e8] sm:$0xff] }
 0x47c   : > { %v5677_v49 = vpack.c.bf16 %v2475_v16, %v2472_v15  ;;  %v5683_v45 = vpack.c.bf16 %v2433_v60, %v2430_v58  ;;  %v2393_v38 = vld [vmem:[#allocation10 + $0x5a8] sm:$0xff]  ;;  %v2439_v55 = vld [vmem:[#allocation10 + $0x718] sm:$0xff]  ;;  %v2420_v58 = vld [vmem:[#allocation10 + $0x680] sm:$0xff] }
 0x47d   : > { %5388 = vmatpush1.bf16.msra.mxu0 %v5387_v44  ;;  %5644 = vmatpush3.bf16.msra.mxu1 %v5643_v41  ;;  %v5405_v44 = vpack.c.bf16 %v2354_v34, %v2351_v27  ;;  %v5661_v41 = vpack.c.bf16 %v2403_v9, %v2400_v37  ;;  %v5419_v27 = vpack.c.bf16 %v2371_v21, %v2368_v1  ;;  %v2374_v34 = vld [vmem:[#allocation10 + $0x510] sm:$0xff]  ;;  %v2377_v37 = vld [vmem:[#allocation10 + $0x528] sm:$0xff]  ;;  %v2399_v2 = vld [vmem:[#allocation10 + $0x5d8] sm:$0xff] }
 0x47e   : > { %5390 = vmatprep.subr.bf16.mxu0 %v5389_v25  ;;  %5646 = vmatprep.subr.bf16.mxu1 %v5645_v24  ;;  %v2357_v25 = vld [vmem:[#allocation10 + $0x488] sm:$0xff]  ;;  %v2360_v24 = vld [vmem:[#allocation10 + $0x4a0] sm:$0xff]  ;;  %v5423_v22 = vpack.c.bf16 %v2377_v37, %v2374_v34  ;;  %v2442_v1 = vld [vmem:[#allocation10 + $0x730] sm:$0xff] }
 0x47f   : > { %v2445_v21 = vld [vmem:[#allocation10 + $0x748] sm:$0xff]  ;;  %v2448_v34 = vld [vmem:[#allocation10 + $0x760] sm:$0xff]  ;;  %v2451_v37 = vld [vmem:[#allocation10 + $0x778] sm:$0xff] }
 0x480   : > { %v2405_v16 = vld [vmem:[#allocation10 + $0x608] sm:$0xff] }
 0x481   : > { %5392 = vmatpush1.bf16.msra.mxu0 %v5391_v6  ;;  %5648 = vmatpush3.bf16.msra.mxu1 %v5647_v59  ;;  %v2196_v6 = vmul.f32 %v2187_v40, %v2187_v40  ;;  %v5409_v59 = vpack.c.bf16 %v2360_v24, %v2357_v25  ;;  %v2380_v25 = vld [vmem:[#allocation10 + $0x540] sm:$0xff]  ;;  %v2383_v24 = vld [vmem:[#allocation10 + $0x558] sm:$0xff] }
 0x482   : > { %5394 = vmatprep.subr.bf16.mxu0 %v5393_v61  ;;  %5650 = vmatprep.subr.bf16.mxu1 %v5649_v62  ;;  %v2406_v61 = vld [vmem:[#allocation10 + $0x610] sm:$0xff]  ;;  %v2409_v62 = vld [vmem:[#allocation10 + $0x628] sm:$0xff] }
 0x485   : > { %5396 = vmatpush1.bf16.msra.mxu0 %v5395_v19  ;;  %5652 = vmatpush3.bf16.msra.mxu1 %v5651_v57  ;;  %v5667_v19 = vpack.c.bf16 %v2409_v62, %v2406_v61  ;;  %v7227_v57 = vmul.f32 %v2196_v6, %v2187_v40  ;;  %v2427_v40 = vld [vmem:[#allocation10 + $0x6b8] sm:$0xff]  ;;  %v2390_v6 = vld [vmem:[#allocation10 + $0x590] sm:$0xff]  ;;  %v2389_v62 = vld [vmem:[#allocation10 + $0x588] sm:$0xff] }
 0x486   : > { %5398 = vmatprep.subr.bf16.mxu0 %v5397_v42  ;;  %5654 = vmatprep.subr.bf16.mxu1 %v5653_v56  ;;  %v2412_v42 = vld [vmem:[#allocation10 + $0x640] sm:$0xff]  ;;  %v2415_v56 = vld [vmem:[#allocation10 + $0x658] sm:$0xff]  ;;  %v5679_v48 = vpack.c.bf16 %v2427_v40, %v2424_v46  ;;  %v2386_v61 = vld [vmem:[#allocation10 + $0x570] sm:$0xff]  ;;  %v5695_v46 = vpack.c.bf16 %v2451_v37, %v2448_v34 }
 0x489   : > { %5400 = vmatpush1.bf16.msra.mxu0 %v5399_v30  ;;  %5656 = vmatpush3.bf16.msra.mxu1 %v5655_v36  ;;  %v5671_v30 = vpack.c.bf16 %v2415_v56, %v2412_v42  ;;  %v5417_v36 = vpack.c.bf16 %v2372_v32, %v2369_v29  ;;  %v2493_v29 = vld [vmem:[#allocation10 + $0x8c8] sm:$0xff]  ;;  %v2392_v42 = vld [vmem:[#allocation10 + $0x5a0] sm:$0xff]  ;;  %v2395_v56 = vld [vmem:[#allocation10 + $0x5b8] sm:$0xff]  ;;  %v5687_v32 = vpack.c.bf16 %v2439_v55, %v2436_v35 }
 0x48a   : > { %5402 = vmatprep.subr.bf16.mxu0 %v5401_v53  ;;  %5658 = vmatprep.subr.bf16.mxu1 %v5657_v28  ;;  %v2421_v53 = vld [vmem:[#allocation10 + $0x688] sm:$0xff]  ;;  %v2378_v28 = vld [vmem:[#allocation10 + $0x530] sm:$0xff]  ;;  %v2432_v35 = vld [vmem:[#allocation10 + $0x6e0] sm:$0xff] }
 0x48b   : > { %v5675_v9 = vpack.c.bf16 %v2421_v53, %v2418_v12  ;;  %v2398_v12 = vld [vmem:[#allocation10 + $0x5d0] sm:$0xff]  ;;  %v2401_v53 = vld [vmem:[#allocation10 + $0x5e8] sm:$0xff] }
 0x48d   : > { %5404 = vmatpush1.bf16.msra.mxu0 %v5403_v39  ;;  %5660 = vmatpush3.bf16.msra.mxu1 %v5659_v47  ;;  %v5421_v39 = vpack.c.bf16 %v2378_v28, %v2375_v17  ;;  %v2381_v47 = vld [vmem:[#allocation10 + $0x548] sm:$0xff]  ;;  %v2499_v17 = vld [vmem:[#allocation10 + $0x8f8] sm:$0xff]  ;;  %v5691_v28 = vpack.c.bf16 %v2445_v21, %v2442_v1 }
 0x48e   : > { %5406 = vmatprep.subr.bf16.mxu0 %v5405_v44  ;;  %5662 = vmatprep.subr.bf16.mxu1 %v5661_v41  ;;  %v2384_v44 = vld [vmem:[#allocation10 + $0x560] sm:$0xff]  ;;  %v2478_v41 = vld [vmem:[#allocation10 + $0x850] sm:$0xff] }
 0x48f   : > { %v5425_v18 = vpack.c.bf16 %v2384_v44, %v2381_v47  ;;  %v2553_v47 = vld [vmem:[#allocation10 + $0xaa8] sm:$0xff]  ;;  %v2404_v44 = vld [vmem:[#allocation10 + $0x600] sm:$0xff] }
 0x491   : > { %5408 = vmatpush1.bf16.msra.mxu0 %v5407_v50  ;;  %5664 = vmatpush3.bf16.msra.mxu1 %v5663_v54  ;;  %v2387_v50 = vld [vmem:[#allocation10 + $0x578] sm:$0xff]  ;;  %v5681_v54 = vpack.c.bf16 %v2481_v43, %v2478_v41 }
 0x492   : > { %5410 = vmatprep.subr.bf16.mxu0 %v5409_v59  ;;  %5666 = vmatprep.subr.bf16.mxu1 %v5665_v51  ;;  %v2484_v59 = vld [vmem:[#allocation10 + $0x880] sm:$0xff]  ;;  %v5427_v51 = vpack.c.bf16 %v2383_v24, %v2380_v25  ;;  %v5429_v14 = vpack.c.bf16 %v2390_v6, %v2387_v50  ;;  %v2407_v41 = vld [vmem:[#allocation10 + $0x618] sm:$0xff]  ;;  %v2414_v25 = vld [vmem:[#allocation10 + $0x650] sm:$0xff] }
 0x493   : > { %v5443_v24 = vpack.c.bf16 %v2407_v41, %v2404_v44  ;;  %v2413_v50 = vld [vmem:[#allocation10 + $0x648] sm:$0xff]  ;;  %v2458_v44 = vld [vmem:[#allocation10 + $0x7b0] sm:$0xff] }
 0x494   : > { %3134 = vmatmul.mubr.f32.vlgmr.msra.gmra.mrb[12].mxu1 %v7227_v57  ;;  %v2461_v41 = vld [vmem:[#allocation10 + $0x7c8] sm:$0xff] }
 0x495   : > { %5412 = vmatpush1.bf16.msra.mxu0 %v5411_v52  ;;  %5668 = vmatpush3.bf16.msra.mxu1 %v5667_v19  ;;  %v5685_v52 = vpack.c.bf16 %v2487_v33, %v2484_v59  ;;  %v2396_v19 = vld [vmem:[#allocation10 + $0x5c0] sm:$0xff]  ;;  %v2419_v33 = vld [vmem:[#allocation10 + $0x678] sm:$0xff] }
 0x496   : > { %5414 = vmatprep.subr.bf16.mxu0 %v5413_v23  ;;  %5670 = vmatprep.subr.bf16.mxu1 %v5669_v31  ;;  %v2490_v23 = vld [vmem:[#allocation10 + $0x8b0] sm:$0xff]  ;;  %v5431_v31 = vpack.c.bf16 %v2389_v62, %v2386_v61  ;;  %v5433_v10 = vpack.c.bf16 %v2396_v19, %v2393_v38  ;;  %v2416_v59 = vld [vmem:[#allocation10 + $0x660] sm:$0xff]  ;;  %v2425_v38 = vld [vmem:[#allocation10 + $0x6a8] sm:$0xff] }
 0x497   : > { %v2426_v61 = vld [vmem:[#allocation10 + $0x6b0] sm:$0xff]  ;;  %v5451_v62 = vpack.c.bf16 %v2419_v33, %v2416_v59  ;;  %v2428_v19 = vld [vmem:[#allocation10 + $0x6c0] sm:$0xff]  ;;  %v2473_v59 = vld [vmem:[#allocation10 + $0x828] sm:$0xff] }
 0x498   : > { %v2477_v33 = vld [vmem:[#allocation10 + $0x848] sm:$0xff] }
 0x499   : > { %5416 = vmatpush1.bf16.msra.mxu0 %v5415_v26  ;;  %5672 = vmatpush3.bf16.msra.mxu1 %v5671_v30  ;;  %v5689_v26 = vpack.c.bf16 %v2493_v29, %v2490_v23  ;;  %v2402_v30 = vld [vmem:[#allocation10 + $0x5f0] sm:$0xff]  ;;  %v2431_v23 = vld [vmem:[#allocation10 + $0x6d8] sm:$0xff] }
 0x49a   : > { %5418 = vmatprep.subr.bf16.mxu0 %v5417_v36  ;;  %5674 = vmatprep.subr.bf16.mxu1 %v5673_v11  ;;  %v2496_v36 = vld [vmem:[#allocation10 + $0x8e0] sm:$0xff]  ;;  %v5435_v11 = vpack.c.bf16 %v2395_v56, %v2392_v42  ;;  %v5437_v15 = vpack.c.bf16 %v2402_v30, %v2399_v2  ;;  %v2435_v29 = vld [vmem:[#allocation10 + $0x6f8] sm:$0xff]  ;;  %v5459_v42 = vpack.c.bf16 %v2431_v23, %v2428_v19  ;;  %v2441_v2 = vld [vmem:[#allocation10 + $0x728] sm:$0xff] }
 0x49b   : > { %v2440_v30 = vld [vmem:[#allocation10 + $0x720] sm:$0xff]  ;;  %v2485_v19 = vld [vmem:[#allocation10 + $0x888] sm:$0xff] }
 0x49c   : > { %v2489_v23 = vld [vmem:[#allocation10 + $0x8a8] sm:$0xff] }
 0x49d   : > { %5420 = vmatpush1.bf16.msra.mxu0 %v5419_v27  ;;  %5676 = vmatpush3.bf16.msra.mxu1 %v5675_v9  ;;  %v5693_v27 = vpack.c.bf16 %v2499_v17, %v2496_v36  ;;  %v2408_v9 = vld [vmem:[#allocation10 + $0x620] sm:$0xff]  ;;  %v2443_v36 = vld [vmem:[#allocation10 + $0x738] sm:$0xff] }
 0x49e   : > { %5422 = vmatprep.subr.bf16.mxu0 %v5421_v39  ;;  %5678 = vmatprep.subr.bf16.mxu1 %v5677_v49  ;;  %v2550_v39 = vld [vmem:[#allocation10 + $0xa90] sm:$0xff]  ;;  %v5439_v49 = vpack.c.bf16 %v2401_v53, %v2398_v12  ;;  %v5441_v40 = vpack.c.bf16 %v2408_v9, %v2405_v16  ;;  %v2447_v17 = vld [vmem:[#allocation10 + $0x758] sm:$0xff]  ;;  %v5467_v12 = vpack.c.bf16 %v2443_v36, %v2440_v30  ;;  %v2453_v16 = vld [vmem:[#allocation10 + $0x788] sm:$0xff] }
 0x49f   : > { %v5697_v43 = vpack.c.bf16 %v2553_v47, %v2550_v39  ;;  %v2452_v9 = vld [vmem:[#allocation10 + $0x780] sm:$0xff]  ;;  %v2455_v39 = vld [vmem:[#allocation10 + $0x798] sm:$0xff]  ;;  %v2497_v30 = vld [vmem:[#allocation10 + $0x8e8] sm:$0xff] }
 0x4a0   : > { %v2459_v47 = vld [vmem:[#allocation10 + $0x7b8] sm:$0xff]  ;;  %v2501_v36 = vld [vmem:[#allocation10 + $0x908] sm:$0xff] }
 0x4a1   : > { %5424 = vmatpush1.bf16.msra.mxu0 %v5423_v22  ;;  %5680 = vmatpush3.bf16.msra.mxu1 %v5679_v48  ;;  %v2411_v22 = vld [vmem:[#allocation10 + $0x638] sm:$0xff] }
 0x4a2   : > { %5426 = vmatprep.subr.bf16.mxu0 %v5425_v18  ;;  %5682 = vmatprep.subr.bf16.mxu1 %v5681_v54  ;;  %v5445_v48 = vpack.c.bf16 %v2414_v25, %v2411_v22  ;;  %v2410_v18 = vld [vmem:[#allocation10 + $0x630] sm:$0xff]  ;;  %v2417_v54 = vld [vmem:[#allocation10 + $0x668] sm:$0xff]  ;;  %v2468_v22 = vld [vmem:[#allocation10 + $0x800] sm:$0xff]  ;;  %v5479_v25 = vpack.c.bf16 %v2461_v41, %v2458_v44 }
 0x4a3   : > { %v5447_v60 = vpack.c.bf16 %v2413_v50, %v2410_v18  ;;  %v5449_v6 = vpack.c.bf16 %v2420_v58, %v2417_v54  ;;  %v2467_v18 = vld [vmem:[#allocation10 + $0x7f8] sm:$0xff]  ;;  %v2474_v54 = vld [vmem:[#allocation10 + $0x830] sm:$0xff]  ;;  %v2500_v44 = vld [vmem:[#allocation10 + $0x900] sm:$0xff] }
 0x4a4   : > { %v2471_v50 = vld [vmem:[#allocation10 + $0x818] sm:$0xff] }
 0x4a5   : > { %5428 = vmatpush1.bf16.msra.mxu0 %v5427_v51  ;;  %5684 = vmatpush3.bf16.msra.mxu1 %v5683_v45  ;;  %v2423_v51 = vld [vmem:[#allocation10 + $0x698] sm:$0xff] }
 0x4a6   : > { %5430 = vmatprep.subr.bf16.mxu0 %v5429_v14  ;;  %5686 = vmatprep.subr.bf16.mxu1 %v5685_v52  ;;  %v5453_v45 = vpack.c.bf16 %v2426_v61, %v2423_v51  ;;  %v2422_v14 = vld [vmem:[#allocation10 + $0x690] sm:$0xff]  ;;  %v2429_v52 = vld [vmem:[#allocation10 + $0x6c8] sm:$0xff]  ;;  %v2480_v51 = vld [vmem:[#allocation10 + $0x860] sm:$0xff] }
 0x4a7   : > { %v5455_v55 = vpack.c.bf16 %v2425_v38, %v2422_v14  ;;  %v2479_v14 = vld [vmem:[#allocation10 + $0x858] sm:$0xff] }
 0x4a8   : > { %v2483_v38 = vld [vmem:[#allocation10 + $0x878] sm:$0xff] }
 0x4a9   : > { %5432 = vmatpush1.bf16.msra.mxu0 %v5431_v31  ;;  %5688 = vmatpush3.bf16.msra.mxu1 %v5687_v32  ;;  %v2438_v31 = vld [vmem:[#allocation10 + $0x710] sm:$0xff] }
 0x4aa   : > { %5434 = vmatprep.subr.bf16.mxu0 %v5433_v10  ;;  %5690 = vmatprep.subr.bf16.mxu1 %v5689_v26  ;;  %v5461_v56 = vpack.c.bf16 %v2438_v31, %v2435_v29  ;;  %v2434_v32 = vld [vmem:[#allocation10 + $0x6f0] sm:$0xff]  ;;  %v2437_v10 = vld [vmem:[#allocation10 + $0x708] sm:$0xff]  ;;  %v2444_v26 = vld [vmem:[#allocation10 + $0x740] sm:$0xff] }
 0x4ab   : > { %v5463_v1 = vpack.c.bf16 %v2437_v10, %v2434_v32  ;;  %v5465_v21 = vpack.c.bf16 %v2444_v26, %v2441_v2  ;;  %v2492_v29 = vld [vmem:[#allocation10 + $0x8c0] sm:$0xff]  ;;  %v2491_v32 = vld [vmem:[#allocation10 + $0x8b8] sm:$0xff]  ;;  %v2498_v2 = vld [vmem:[#allocation10 + $0x8f0] sm:$0xff] }
 0x4ac   : > { %v2495_v10 = vld [vmem:[#allocation10 + $0x8d8] sm:$0xff] }
 0x4ad   : > { %5436 = vmatpush1.bf16.msra.mxu0 %v5435_v11  ;;  %5692 = vmatpush3.bf16.msra.mxu1 %v5691_v28  ;;  %v2450_v11 = vld [vmem:[#allocation10 + $0x770] sm:$0xff] }
 0x4ae   : > { %5438 = vmatprep.subr.bf16.mxu0 %v5437_v15  ;;  %5694 = vmatprep.subr.bf16.mxu1 %v5693_v27  ;;  %v5469_v53 = vpack.c.bf16 %v2450_v11, %v2447_v17  ;;  %v2446_v28 = vld [vmem:[#allocation10 + $0x750] sm:$0xff]  ;;  %v2449_v15 = vld [vmem:[#allocation10 + $0x768] sm:$0xff]  ;;  %v2456_v27 = vld [vmem:[#allocation10 + $0x7a0] sm:$0xff] }
 0x4af   : > { %v5471_v34 = vpack.c.bf16 %v2449_v15, %v2446_v28  ;;  %v5473_v37 = vpack.c.bf16 %v2456_v27, %v2453_v16  ;;  %v2504_v17 = vld [vmem:[#allocation10 + $0x920] sm:$0xff] }
 0x4b1   : > { %5440 = vmatpush1.bf16.msra.mxu0 %v5439_v49  ;;  %5696 = vmatpush3.bf16.msra.mxu1 %v5695_v46  ;;  %v2462_v49 = vld [vmem:[#allocation10 + $0x7d0] sm:$0xff]  ;;  %v5475_v46 = vpack.c.bf16 %v2455_v39, %v2452_v9 }
 0x4b2   : > { %5442 = vmatprep.subr.bf16.mxu0 %v5441_v40  ;;  %5698 = vmatprep.subr.bf16.mxu1 %v5697_v43  ;;  %v5477_v40 = vpack.c.bf16 %v2462_v49, %v2459_v47  ;;  %v2465_v43 = vld [vmem:[#allocation10 + $0x7e8] sm:$0xff] }
 0x4b4   : > { %2780 = vmatmul.mubr.f32.vlgmr.msra.gmra.mrb[12].mxu0 %v7227_v57  ;;  %v5457_v57 = vpack.c.bf16 %v2432_v35, %v2429_v52  ;;  %v2486_v52 = vld [vmem:[#allocation10 + $0x890] sm:$0xff] }
 0x4b5   : > { %5444 = vmatpush1.bf16.msra.mxu0 %v5443_v24  ;;  %v5481_v24 = vpack.c.bf16 %v2468_v22, %v2465_v43  ;;  %v2503_v43 = vld [vmem:[#allocation10 + $0x918] sm:$0xff]  ;;  %v2502_v22 = vld [vmem:[#allocation10 + $0x910] sm:$0xff] }
 0x4b6   : > { %5446 = vmatprep.subr.bf16.mxu0 %v5445_v48  ;;  %v2464_v48 = vld [vmem:[#allocation10 + $0x7e0] sm:$0xff] }
 0x4b7   : > { %v5483_v58 = vpack.c.bf16 %v2467_v18, %v2464_v48  ;;  %v2510_v18 = vld [vmem:[#allocation10 + $0x950] sm:$0xff] }
 0x4b9   : > { %5448 = vmatpush1.bf16.msra.mxu0 %v5447_v60  ;;  %v5485_v60 = vpack.c.bf16 %v2474_v54, %v2471_v50  ;;  %v2556_v50 = vld [vmem:[#allocation10 + $0xac0] sm:$0xff]  ;;  %v2559_v54 = vld [vmem:[#allocation10 + $0xad8] sm:$0xff] }
 0x4ba   : > { %5450 = vmatprep.subr.bf16.mxu0 %v5449_v6  ;;  %v2470_v6 = vld [vmem:[#allocation10 + $0x810] sm:$0xff] }
 0x4bb   : > { %v5487_v61 = vpack.c.bf16 %v2473_v59, %v2470_v6  ;;  %v2506_v59 = vld [vmem:[#allocation10 + $0x930] sm:$0xff] }
 0x4bd   : > { %5452 = vmatpush1.bf16.msra.mxu0 %v5451_v62  ;;  %v5489_v62 = vpack.c.bf16 %v2480_v51, %v2477_v33  ;;  %v2509_v33 = vld [vmem:[#allocation10 + $0x948] sm:$0xff] }
 0x4be   : > { %5454 = vmatprep.subr.bf16.mxu0 %v5453_v45  ;;  %v2476_v45 = vld [vmem:[#allocation10 + $0x840] sm:$0xff] }
 0x4bf   : > { %v5491_v35 = vpack.c.bf16 %v2479_v14, %v2476_v45  ;;  %v2513_v45 = vld [vmem:[#allocation10 + $0x968] sm:$0xff] }
 0x4c1   : > { %5456 = vmatpush1.bf16.msra.mxu0 %v5455_v55  ;;  %v5493_v55 = vpack.c.bf16 %v2486_v52, %v2483_v38  ;;  %v5701_v38 = vpack.c.bf16 %v2559_v54, %v2556_v50  ;;  %v2516_v52 = vld [vmem:[#allocation10 + $0x980] sm:$0xff]  ;;  %v2530_v50 = vld [vmem:[#allocation10 + $0x9f0] sm:$0xff]  ;;  %v2533_v54 = vld [vmem:[#allocation10 + $0xa08] sm:$0xff] }
 0x4c2   : > { %5458 = vmatprep.subr.bf16.mxu0 %v5457_v57  ;;  %v2482_v57 = vld [vmem:[#allocation10 + $0x870] sm:$0xff] }
 0x4c3   : > { %v5495_v31 = vpack.c.bf16 %v2485_v19, %v2482_v57  ;;  %v5511_v19 = vpack.c.bf16 %v2509_v33, %v2506_v59  ;;  %v2532_v59 = vld [vmem:[#allocation10 + $0xa00] sm:$0xff]  ;;  %v2535_v33 = vld [vmem:[#allocation10 + $0xa18] sm:$0xff] }
 0x4c5   : > { %5460 = vmatpush1.bf16.msra.mxu0 %v5459_v42  ;;  %v5497_v42 = vpack.c.bf16 %v2492_v29, %v2489_v23  ;;  %v2512_v29 = vld [vmem:[#allocation10 + $0x960] sm:$0xff] }
 0x4c6   : > { %5462 = vmatprep.subr.bf16.mxu0 %v5461_v56  ;;  %v2488_v56 = vld [vmem:[#allocation10 + $0x8a0] sm:$0xff] }
 0x4c7   : > { %v5499_v26 = vpack.c.bf16 %v2491_v32, %v2488_v56  ;;  %v2514_v32 = vld [vmem:[#allocation10 + $0x970] sm:$0xff] }
 0x4c9   : > { %5464 = vmatpush1.bf16.msra.mxu0 %v5463_v1  ;;  %v5501_v1 = vpack.c.bf16 %v2498_v2, %v2495_v10  ;;  %v2517_v10 = vld [vmem:[#allocation10 + $0x988] sm:$0xff]  ;;  %v2519_v2 = vld [vmem:[#allocation10 + $0x998] sm:$0xff] }
 0x4ca   : > { %5466 = vmatprep.subr.bf16.mxu0 %v5465_v21  ;;  %v2494_v21 = vld [vmem:[#allocation10 + $0x8d0] sm:$0xff] }
 0x4cb   : > { %v5503_v11 = vpack.c.bf16 %v2497_v30, %v2494_v21  ;;  %v2571_v21 = vld [vmem:[#allocation10 + $0xb38] sm:$0xff] }
 0x4cd   : > { %5468 = vmatpush1.bf16.msra.mxu0 %v5467_v12  ;;  %v5505_v12 = vpack.c.bf16 %v2504_v17, %v2501_v36  ;;  %v5707_v36 = vpack.c.bf16 %v2517_v10, %v2514_v32  ;;  %v2518_v17 = vld [vmem:[#allocation10 + $0x990] sm:$0xff] }
 0x4ce   : > { %5470 = vmatprep.subr.bf16.mxu0 %v5469_v53  ;;  %v5866_v53 = vadd.f32 %v7216_v7, %v7223_v8  ;;  %v2505_v8 = vld [vmem:[#allocation10 + $0x928] sm:$0xff] }
 0x4cf   : > { %v5699_v6 = vpack.c.bf16 %v2505_v8, %v2502_v22  ;;  %v2531_v22 = vld [vmem:[#allocation10 + $0x9f8] sm:$0xff]  ;;  %v2534_v8 = vld [vmem:[#allocation10 + $0xa10] sm:$0xff] }
 0x4d0   : > { %v2183_v15 = vmax.f32 %v5866_v53, 0.0 }
 0x4d1   : > { %5472 = vmatpush1.bf16.msra.mxu0 %v5471_v34 }
 0x4d2   : > { %5474 = vmatprep.subr.bf16.mxu0 %v5473_v37  ;;  %v2192_v47 = vmax.f32 %v2183_v15, 1e-06  ;;  %v2523_v15 = vld [vmem:[#allocation10 + $0x9b8] sm:$0xff] }
 0x4d4   : > { %v2201_v48 = vmul.f32 %v2192_v47, %v2192_v47 }
 0x4d5   : > { %5476 = vmatpush1.bf16.msra.mxu0 %v5475_v46 }
 0x4d6   : > { %5478 = vmatprep.subr.bf16.mxu0 %v5477_v40  ;;  %v2210_v57 = vmul.f32 %v2201_v48, %v2192_v47 }
 0x4d9   : > { %5480 = vmatpush1.bf16.msra.mxu0 %v5479_v25 }
 0x4da   : > { %5482 = vmatprep.subr.bf16.mxu0 %v5481_v24  ;;  %v2507_v24 = vld [vmem:[#allocation10 + $0x938] sm:$0xff] }
 0x4db   : > { %v5509_v14 = vpack.c.bf16 %v2510_v18, %v2507_v24  ;;  %v2583_v24 = vld [vmem:[#allocation10 + $0xb98] sm:$0xff] }
 0x4dd   : > { %5484 = vmatpush1.bf16.msra.mxu0 %v5483_v58 }
 0x4de   : > { %5486 = vmatprep.subr.bf16.mxu0 %v5485_v60  ;;  %v5507_v60 = vpack.c.bf16 %v2503_v43, %v2500_v44  ;;  %v2529_v43 = vld [vmem:[#allocation10 + $0x9e8] sm:$0xff] }
 0x4e1   : > { %5488 = vmatpush1.bf16.msra.mxu0 %v5487_v61  ;;  %v2508_v61 = vld [vmem:[#allocation10 + $0x940] sm:$0xff] }
 0x4e2   : > { %5490 = vmatprep.subr.bf16.mxu0 %v5489_v62  ;;  %v2511_v62 = vld [vmem:[#allocation10 + $0x958] sm:$0xff] }
 0x4e3   : > { %v5703_v23 = vpack.c.bf16 %v2511_v62, %v2508_v61  ;;  %v2540_v61 = vld [vmem:[#allocation10 + $0xa40] sm:$0xff]  ;;  %v2586_v62 = vld [vmem:[#allocation10 + $0xbb0] sm:$0xff] }
 0x4e5   : > { %5492 = vmatpush1.bf16.msra.mxu0 %v5491_v35  ;;  %v2562_v35 = vld [vmem:[#allocation10 + $0xaf0] sm:$0xff] }
 0x4e6   : > { %5494 = vmatprep.subr.bf16.mxu0 %v5493_v55  ;;  %v2565_v55 = vld [vmem:[#allocation10 + $0xb08] sm:$0xff] }
 0x4e7   : > { %v5705_v56 = vpack.c.bf16 %v2565_v55, %v2562_v35  ;;  %v2539_v35 = vld [vmem:[#allocation10 + $0xa38] sm:$0xff] }
 0x4e9   : > { %5496 = vmatpush1.bf16.msra.mxu0 %v5495_v31  ;;  %v2515_v31 = vld [vmem:[#allocation10 + $0x978] sm:$0xff] }
 0x4ea   : > { %5498 = vmatprep.subr.bf16.mxu0 %v5497_v42  ;;  %v5513_v42 = vpack.c.bf16 %v2516_v52, %v2513_v45  ;;  %v5515_v30 = vpack.c.bf16 %v2515_v31, %v2512_v29  ;;  %v2589_v45 = vld [vmem:[#allocation10 + $0xbc8] sm:$0xff]  ;;  %v2536_v52 = vld [vmem:[#allocation10 + $0xa20] sm:$0xff]  ;;  %v2543_v29 = vld [vmem:[#allocation10 + $0xa58] sm:$0xff] }
 0x4eb   : > { %v2546_v31 = vld [vmem:[#allocation10 + $0xa70] sm:$0xff]  ;;  %v5531_v32 = vpack.c.bf16 %v2539_v35, %v2536_v52  ;;  %v2616_v52 = vld [vmem:[#allocation10 + $0xca0] sm:$0xff]  ;;  %v2619_v35 = vld [vmem:[#allocation10 + $0xcb8] sm:$0xff] }
 0x4ed   : > { %5500 = vmatpush1.bf16.msra.mxu0 %v5499_v26  ;;  %v2522_v26 = vld [vmem:[#allocation10 + $0x9b0] sm:$0xff] }
 0x4ee   : > { %5502 = vmatprep.subr.bf16.mxu0 %v5501_v1  ;;  %v2568_v1 = vld [vmem:[#allocation10 + $0xb20] sm:$0xff] }
 0x4ef   : > { %v5709_v53 = vpack.c.bf16 %v2571_v21, %v2568_v1  ;;  %v5533_v1 = vpack.c.bf16 %v2546_v31, %v2543_v29  ;;  %v2575_v31 = vld [vmem:[#allocation10 + $0xb58] sm:$0xff] }
 0x4f1   : > { %5504 = vmatpush1.bf16.msra.mxu0 %v5503_v11  ;;  %v2521_v11 = vld [vmem:[#allocation10 + $0x9a8] sm:$0xff] }
 0x4f2   : > { %5506 = vmatprep.subr.bf16.mxu0 %v5505_v12  ;;  %v5517_v12 = vpack.c.bf16 %v2522_v26, %v2519_v2  ;;  %v2542_v2 = vld [vmem:[#allocation10 + $0xa50] sm:$0xff] }
 0x4f9   : > { %v2021_v28 = vpop.f32.mrb[6].mxu1 }
 0x4fa   : > { %v5860_v16 = vadd.f32 %v7216_v7, %v2021_v28  ;;  %v2023_v27 = vpop.f32.mrb[7].mxu1  ;;  %v2520_v28 = vld [vmem:[#allocation10 + $0x9a0] sm:$0xff] }
 0x4fb   : > { %v5862_v34 = vadd.f32 %v7216_v7, %v2023_v27  ;;  %v2528_v27 = vld [vmem:[#allocation10 + $0x9e0] sm:$0xff]  ;;  %v5711_v47 = vpack.c.bf16 %v2523_v15, %v2520_v28 }
 0x4fc   : > { %v2180_v37 = vmax.f32 %v5860_v16, 0.0  ;;  %v2525_v16 = vld [vmem:[#allocation10 + $0x9c8] sm:$0xff]  ;;  %v2548_v15 = vld [vmem:[#allocation10 + $0xa80] sm:$0xff] }
 0x4fd   : > { %v2181_v9 = vmax.f32 %v5862_v34, 0.0  ;;  %v7235_v39 = vpop.f32.mrb[8].mxu1  ;;  %v2574_v34 = vld [vmem:[#allocation10 + $0xb50] sm:$0xff] }
 0x4fe   : > { %v2189_v49 = vmax.f32 %v2180_v37, 1e-06  ;;  %v5104_v46 = vpop.f32.mrb[9].mxu1  ;;  %v2577_v37 = vld [vmem:[#allocation10 + $0xb68] sm:$0xff] }
 0x4ff   : > { %v2190_v40 = vmax.f32 %v2181_v9, 1e-06  ;;  %v5519_v9 = vpack.c.bf16 %v2521_v11, %v2518_v17  ;;  %v2527_v46 = vld [vmem:[#allocation10 + $0x9d8] sm:$0xff]  ;;  %v5713_v44 = vpack.c.bf16 %v2577_v37, %v2574_v34  ;;  %v2549_v11 = vld [vmem:[#allocation10 + $0xa88] sm:$0xff]  ;;  %v2598_v37 = vld [vmem:[#allocation10 + $0xc10] sm:$0xff] }
 0x500   : > { %v2198_v41 = vmul.f32 %v2189_v49, %v2189_v49  ;;  %v2547_v17 = vld [vmem:[#allocation10 + $0xa78] sm:$0xff] }
 0x501   : > { %v2199_v25 = vmul.f32 %v2190_v40, %v2190_v40  ;;  %v2551_v34 = vld [vmem:[#allocation10 + $0xa98] sm:$0xff] }
 0x502   : > { %v2207_v51 = vmul.f32 %v2198_v41, %v2189_v49  ;;  %v2524_v49 = vld [vmem:[#allocation10 + $0x9c0] sm:$0xff]  ;;  %v2526_v41 = vld [vmem:[#allocation10 + $0x9d0] sm:$0xff] }
 0x503   : > { %v2208_v58 = vmul.f32 %v2199_v25, %v2190_v40  ;;  %v5521_v40 = vpack.c.bf16 %v2528_v27, %v2525_v16  ;;  %v2580_v25 = vld [vmem:[#allocation10 + $0xb80] sm:$0xff]  ;;  %v5523_v48 = vpack.c.bf16 %v2527_v46, %v2524_v49  ;;  %v5715_v18 = vpack.c.bf16 %v2529_v43, %v2526_v41  ;;  %v2558_v49 = vld [vmem:[#allocation10 + $0xad0] sm:$0xff] }
 0x504   : > { %v5539_v46 = vpack.c.bf16 %v2551_v34, %v2548_v15 }
 0x505   : > { %2850 = vmatprep.mubr.f32.mxu0 %v2208_v58  ;;  %3203 = vmatprep.mubr.f32.mxu1 %v2208_v58  ;;  %v5864_v58 = vadd.f32 %v7216_v7, %v7221_v4 }
 0x506   : > { %2851 = vmatmul.mubr.f32.vlgmr.msra.gmra.mrb[12].mxu0 %v2207_v51  ;;  %3204 = vmatmul.mubr.f32.vlgmr.msra.gmra.mrb[14].mxu1 %v2207_v51  ;;  %v2537_v51 = vld [vmem:[#allocation10 + $0xa28] sm:$0xff] }
 0x507   : > { %5508 = vmatpush1.bf16.msra.mxu0 %v5507_v60  ;;  %5700 = vmatpush3.bf16.msra.mxu1 %v5699_v6  ;;  %v5525_v60 = vpack.c.bf16 %v2534_v8, %v2531_v22  ;;  %v5717_v6 = vpack.c.bf16 %v2583_v24, %v2580_v25  ;;  %v2182_v55 = vmax.f32 %v5864_v58, 0.0  ;;  %v5529_v4 = vpack.c.bf16 %v2540_v61, %v2537_v51  ;;  %v2557_v22 = vld [vmem:[#allocation10 + $0xac8] sm:$0xff]  ;;  %v2604_v8 = vld [vmem:[#allocation10 + $0xc40] sm:$0xff]  ;;  %v2607_v25 = vld [vmem:[#allocation10 + $0xc58] sm:$0xff] }
 0x508   : > { %2921 = vmatprep.mubr.f32.mxu0 %v2210_v57  ;;  %3273 = vmatprep.mubr.f32.mxu1 %v2210_v57  ;;  %v5721_v57 = vpack.c.bf16 %v2589_v45, %v2586_v62  ;;  %v2561_v24 = vld [vmem:[#allocation10 + $0xae8] sm:$0xff]  ;;  %v2570_v51 = vld [vmem:[#allocation10 + $0xb30] sm:$0xff] }
 0x509   : > { %5510 = vmatprep.subr.bf16.mxu0 %v5509_v14  ;;  %5702 = vmatprep.subr.bf16.mxu1 %v5701_v38  ;;  %v5527_v14 = vpack.c.bf16 %v2533_v54, %v2530_v50  ;;  %v5719_v38 = vpack.c.bf16 %v2535_v33, %v2532_v59  ;;  %v2191_v26 = vmax.f32 %v2182_v55, 1e-06  ;;  %v5733_v50 = vpack.c.bf16 %v2607_v25, %v2604_v8  ;;  %v2560_v54 = vld [vmem:[#allocation10 + $0xae0] sm:$0xff]  ;;  %v2613_v59 = vld [vmem:[#allocation10 + $0xc88] sm:$0xff]  ;;  %v2567_v33 = vld [vmem:[#allocation10 + $0xb18] sm:$0xff] }
 0x50a   : > { %v2566_v45 = vld [vmem:[#allocation10 + $0xb10] sm:$0xff]  ;;  %v2573_v55 = vld [vmem:[#allocation10 + $0xb48] sm:$0xff]  ;;  %v2640_v8 = vld [vmem:[#allocation10 + $0xd60] sm:$0xff] }
 0x50b   : > { %5512 = vmatpush1.bf16.msra.mxu0 %v5511_v19  ;;  %5704 = vmatpush3.bf16.msra.mxu1 %v5703_v23  ;;  %v2538_v19 = vld [vmem:[#allocation10 + $0xa30] sm:$0xff]  ;;  %v2541_v23 = vld [vmem:[#allocation10 + $0xa48] sm:$0xff]  ;;  %v2200_v16 = vmul.f32 %v2191_v26, %v2191_v26  ;;  %v2643_v25 = vld [vmem:[#allocation10 + $0xd78] sm:$0xff] }
 0x50c   : > { %5514 = vmatprep.subr.bf16.mxu0 %v5513_v42  ;;  %5706 = vmatprep.subr.bf16.mxu1 %v5705_v56  ;;  %v2592_v42 = vld [vmem:[#allocation10 + $0xbe0] sm:$0xff]  ;;  %v2595_v56 = vld [vmem:[#allocation10 + $0xbf8] sm:$0xff]  ;;  %v5723_v10 = vpack.c.bf16 %v2541_v23, %v2538_v19  ;;  %v5739_v19 = vpack.c.bf16 %v2619_v35, %v2616_v52 }
 0x50d   : > { %v5725_v21 = vpack.c.bf16 %v2595_v56, %v2592_v42  ;;  %v7239_v41 = vmul.f32 %v2200_v16, %v2191_v26  ;;  %v2572_v23 = vld [vmem:[#allocation10 + $0xb40] sm:$0xff]  ;;  %v2622_v42 = vld [vmem:[#allocation10 + $0xcd0] sm:$0xff]  ;;  %v2625_v56 = vld [vmem:[#allocation10 + $0xce8] sm:$0xff] }
 0x50e   : > { %v5742_v26 = vpack.c.bf16 %v2625_v56, %v2622_v42  ;;  %v2584_v16 = vld [vmem:[#allocation10 + $0xba0] sm:$0xff] }
 0x50f   : > { %5516 = vmatpush1.bf16.msra.mxu0 %v5515_v30  ;;  %5708 = vmatpush3.bf16.msra.mxu1 %v5707_v36  ;;  %v2545_v30 = vld [vmem:[#allocation10 + $0xa68] sm:$0xff]  ;;  %v2544_v36 = vld [vmem:[#allocation10 + $0xa60] sm:$0xff] }
 0x510   : > { %5518 = vmatprep.subr.bf16.mxu0 %v5517_v12  ;;  %5710 = vmatprep.subr.bf16.mxu1 %v5709_v53  ;;  %v2552_v12 = vld [vmem:[#allocation10 + $0xaa0] sm:$0xff]  ;;  %v5535_v53 = vpack.c.bf16 %v2545_v30, %v2542_v2  ;;  %v5727_v28 = vpack.c.bf16 %v2547_v17, %v2544_v36  ;;  %v5555_v2 = vpack.c.bf16 %v2575_v31, %v2572_v23  ;;  %v2581_v36 = vld [vmem:[#allocation10 + $0xb88] sm:$0xff]  ;;  %v2618_v31 = vld [vmem:[#allocation10 + $0xcb0] sm:$0xff] }
 0x511   : > { %v5537_v27 = vpack.c.bf16 %v2552_v12, %v2549_v11  ;;  %v2628_v17 = vld [vmem:[#allocation10 + $0xd00] sm:$0xff]  ;;  %v2631_v11 = vld [vmem:[#allocation10 + $0xd18] sm:$0xff]  ;;  %v2585_v12 = vld [vmem:[#allocation10 + $0xba8] sm:$0xff] }
 0x512   : > { %v5745_v15 = vpack.c.bf16 %v2631_v11, %v2628_v17  ;;  %v2612_v52 = vld [vmem:[#allocation10 + $0xc80] sm:$0xff]  ;;  %v2627_v17 = vld [vmem:[#allocation10 + $0xcf8] sm:$0xff]  ;;  %v2630_v11 = vld [vmem:[#allocation10 + $0xd10] sm:$0xff] }
 0x513   : > { %5520 = vmatpush1.bf16.msra.mxu0 %v5519_v9  ;;  %5712 = vmatpush3.bf16.msra.mxu1 %v5711_v47  ;;  %v2601_v9 = vld [vmem:[#allocation10 + $0xc28] sm:$0xff]  ;;  %v2555_v47 = vld [vmem:[#allocation10 + $0xab8] sm:$0xff] }
 0x514   : > { %5522 = vmatprep.subr.bf16.mxu0 %v5521_v40  ;;  %5714 = vmatprep.subr.bf16.mxu1 %v5713_v44  ;;  %v5730_v40 = vpack.c.bf16 %v2601_v9, %v2598_v37  ;;  %v2554_v44 = vld [vmem:[#allocation10 + $0xab0] sm:$0xff]  ;;  %v5541_v43 = vpack.c.bf16 %v2558_v49, %v2555_v47  ;;  %v2637_v37 = vld [vmem:[#allocation10 + $0xd48] sm:$0xff]  ;;  %v2591_v9 = vld [vmem:[#allocation10 + $0xbd8] sm:$0xff] }
 0x515   : > { %v2594_v47 = vld [vmem:[#allocation10 + $0xbf0] sm:$0xff] }
 0x517   : > { %5524 = vmatpush1.bf16.msra.mxu0 %v5523_v48  ;;  %5716 = vmatpush3.bf16.msra.mxu1 %v5715_v18  ;;  %v2564_v48 = vld [vmem:[#allocation10 + $0xb00] sm:$0xff]  ;;  %v5543_v18 = vpack.c.bf16 %v2557_v22, %v2554_v44  ;;  %v2593_v22 = vld [vmem:[#allocation10 + $0xbe8] sm:$0xff] }
 0x518   : > { %5526 = vmatprep.subr.bf16.mxu0 %v5525_v60  ;;  %5718 = vmatprep.subr.bf16.mxu1 %v5717_v6  ;;  %v5545_v58 = vpack.c.bf16 %v2564_v48, %v2561_v24  ;;  %v2563_v60 = vld [vmem:[#allocation10 + $0xaf8] sm:$0xff]  ;;  %v2610_v6 = vld [vmem:[#allocation10 + $0xc70] sm:$0xff]  ;;  %v2597_v24 = vld [vmem:[#allocation10 + $0xc08] sm:$0xff] }
 0x519   : > { %v5547_v61 = vpack.c.bf16 %v2563_v60, %v2560_v54  ;;  %v5736_v62 = vpack.c.bf16 %v2613_v59, %v2610_v6  ;;  %v2600_v48 = vld [vmem:[#allocation10 + $0xc20] sm:$0xff]  ;;  %v2599_v6 = vld [vmem:[#allocation10 + $0xc18] sm:$0xff] }
 0x51a   : > { %v2596_v60 = vld [vmem:[#allocation10 + $0xc00] sm:$0xff]  ;;  %v2603_v59 = vld [vmem:[#allocation10 + $0xc38] sm:$0xff] }
 0x51b   : > { %5528 = vmatpush1.bf16.msra.mxu0 %v5527_v14  ;;  %5720 = vmatpush3.bf16.msra.mxu1 %v5719_v38  ;;  %v5549_v14 = vpack.c.bf16 %v2570_v51, %v2567_v33  ;;  %v2569_v38 = vld [vmem:[#allocation10 + $0xb28] sm:$0xff]  ;;  %v2606_v33 = vld [vmem:[#allocation10 + $0xc50] sm:$0xff]  ;;  %v5571_v51 = vpack.c.bf16 %v2599_v6, %v2596_v60 }
 0x51c   : > { %5530 = vmatprep.subr.bf16.mxu0 %v5529_v4  ;;  %5722 = vmatprep.subr.bf16.mxu1 %v5721_v57  ;;  %v2576_v4 = vld [vmem:[#allocation10 + $0xb60] sm:$0xff]  ;;  %v5551_v57 = vpack.c.bf16 %v2569_v38, %v2566_v45  ;;  %v2602_v45 = vld [vmem:[#allocation10 + $0xc30] sm:$0xff]  ;;  %v2609_v38 = vld [vmem:[#allocation10 + $0xc68] sm:$0xff] }
 0x51d   : > { %v5553_v29 = vpack.c.bf16 %v2576_v4, %v2573_v55  ;;  %v5577_v4 = vpack.c.bf16 %v2612_v52, %v2609_v38 }
 0x51f   : > { %5532 = vmatpush1.bf16.msra.mxu0 %v5531_v32  ;;  %5724 = vmatpush3.bf16.msra.mxu1 %v5723_v10  ;;  %v2579_v32 = vld [vmem:[#allocation10 + $0xb78] sm:$0xff]  ;;  %v2582_v10 = vld [vmem:[#allocation10 + $0xb90] sm:$0xff] }
 0x520   : > { %5534 = vmatprep.subr.bf16.mxu0 %v5533_v1  ;;  %5726 = vmatprep.subr.bf16.mxu1 %v5725_v21  ;;  %v2578_v1 = vld [vmem:[#allocation10 + $0xb70] sm:$0xff]  ;;  %v5868_v21 = vadd.f32 %v7216_v7, %v7235_v39  ;;  %v5557_v30 = vpack.c.bf16 %v2582_v10, %v2579_v32  ;;  %v2587_v7 = vld [vmem:[#allocation10 + $0xbb8] sm:$0xff]  ;;  %v2617_v10 = vld [vmem:[#allocation10 + $0xca8] sm:$0xff] }
 0x521   : > { %v2634_v39 = vld [vmem:[#allocation10 + $0xd30] sm:$0xff]  ;;  %v5563_v49 = vpack.c.bf16 %v2587_v7, %v2584_v16  ;;  %v2633_v16 = vld [vmem:[#allocation10 + $0xd28] sm:$0xff] }
 0x522   : > { %v2614_v32 = vld [vmem:[#allocation10 + $0xc90] sm:$0xff] }
 0x523   : > { %5536 = vmatpush1.bf16.msra.mxu0 %v5535_v53  ;;  %5728 = vmatpush3.bf16.msra.mxu1 %v5727_v28  ;;  %v2588_v53 = vld [vmem:[#allocation10 + $0xbc0] sm:$0xff]  ;;  %v5559_v28 = vpack.c.bf16 %v2581_v36, %v2578_v1  ;;  %v5583_v1 = vpack.c.bf16 %v2617_v10, %v2614_v32  ;;  %v2623_v36 = vld [vmem:[#allocation10 + $0xcd8] sm:$0xff] }
 0x524   : > { %5538 = vmatprep.subr.bf16.mxu0 %v5537_v27  ;;  %5729 = vmatprep.subr.bf16.mxu1 %v6528_v13  ;;  %v2184_v27 = vmax.f32 %v5868_v21, 0.0  ;;  %v5561_v34 = vpack.c.bf16 %v2588_v53, %v2585_v12  ;;  %v5589_v53 = vpack.c.bf16 %v2630_v11, %v2627_v17 }
 0x526   : > { %3274 = vmatmul.mubr.f32.vlgmr.msra.gmra.mrb[16].mxu1 %v7239_v41  ;;  %v2193_v44 = vmax.f32 %v2184_v27, 1e-06  ;;  %v2636_v27 = vld [vmem:[#allocation10 + $0xd40] sm:$0xff] }
 0x527   : > { %5540 = vmatpush1.bf16.msra.mxu0 %v5539_v46  ;;  %5731 = vmatpush3.bf16.msra.mxu1 %v5730_v40  ;;  %v5748_v46 = vpack.c.bf16 %v2637_v37, %v2634_v39  ;;  %v2590_v40 = vld [vmem:[#allocation10 + $0xbd0] sm:$0xff]  ;;  %v5593_v7 = vpack.c.bf16 %v2636_v27, %v2633_v16  ;;  %v2632_v39 = vld [vmem:[#allocation10 + $0xd20] sm:$0xff]  ;;  %v2635_v37 = vld [vmem:[#allocation10 + $0xd38] sm:$0xff] }
 0x528   : > { %5542 = vmatprep.subr.bf16.mxu0 %v5541_v43  ;;  %5732 = vmatprep.subr.bf16.mxu1 %v6528_v13  ;;  %v5565_v43 = vpack.c.bf16 %v2594_v47, %v2591_v9  ;;  %v2202_v54 = vmul.f32 %v2193_v44, %v2193_v44  ;;  %v2639_v9 = vld [vmem:[#allocation10 + $0xd58] sm:$0xff]  ;;  %v2642_v47 = vld [vmem:[#allocation10 + $0xd70] sm:$0xff] }
 0x529   : > { %5137 = vmatprep.mubr.msk.f32.mxu1 %vm7518_vm6, %v6525_v20 }
 0x52b   : > { %5544 = vmatpush1.bf16.msra.mxu0 %v5543_v18  ;;  %5734 = vmatpush3.bf16.msra.mxu1 %v5733_v50  ;;  %v5567_v18 = vpack.c.bf16 %v2593_v22, %v2590_v40  ;;  %v5751_v50 = vpack.c.bf16 %v2643_v25, %v2640_v8  ;;  %v2638_v40 = vld [vmem:[#allocation10 + $0xd50] sm:$0xff] }
 0x52c   : > { %5546 = vmatprep.subr.bf16.mxu0 %v5545_v58  ;;  %5735 = vmatprep.subr.bf16.mxu1 %v6528_v13  ;;  %v5569_v58 = vpack.c.bf16 %v2600_v48, %v2597_v24 }
 0x52f   : > { %5548 = vmatpush1.bf16.msra.mxu0 %v5547_v61  ;;  %5737 = vmatpush3.bf16.msra.mxu1 %v5736_v62  ;;  %v7254_v61 = vmul.f32 %v2202_v54, %v2193_v44  ;;  %v5573_v62 = vpack.c.bf16 %v2606_v33, %v2603_v59  ;;  %v2641_v44 = vld [vmem:[#allocation10 + $0xd68] sm:$0xff] }
 0x530   : > { %5550 = vmatprep.subr.bf16.mxu0 %v5549_v14  ;;  %5738 = vmatprep.subr.bf16.mxu1 %v6528_v13  ;;  %v2605_v14 = vld [vmem:[#allocation10 + $0xc48] sm:$0xff] }
 0x531   : > { %v5575_v35 = vpack.c.bf16 %v2605_v14, %v2602_v45 }
 0x533   : > { %5552 = vmatpush1.bf16.msra.mxu0 %v5551_v57  ;;  %5740 = vmatpush3.bf16.msra.mxu1 %v5739_v19  ;;  %v2608_v57 = vld [vmem:[#allocation10 + $0xc60] sm:$0xff]  ;;  %v2611_v19 = vld [vmem:[#allocation10 + $0xc78] sm:$0xff] }
 0x534   : > { %5554 = vmatprep.subr.bf16.mxu0 %v5553_v29  ;;  %5741 = vmatprep.subr.bf16.mxu1 %v6528_v13  ;;  %v2615_v29 = vld [vmem:[#allocation10 + $0xc98] sm:$0xff]  ;;  %v5579_v56 = vpack.c.bf16 %v2611_v19, %v2608_v57 }
 0x537   : > { %5556 = vmatpush1.bf16.msra.mxu0 %v5555_v2  ;;  %5743 = vmatpush3.bf16.msra.mxu1 %v5742_v26  ;;  %v2621_v2 = vld [vmem:[#allocation10 + $0xcc8] sm:$0xff]  ;;  %v2624_v26 = vld [vmem:[#allocation10 + $0xce0] sm:$0xff] }
 0x538   : > { %5558 = vmatprep.subr.bf16.mxu0 %v5557_v30  ;;  %5744 = vmatprep.subr.bf16.mxu1 %v6528_v13  ;;  %v5585_v21 = vpack.c.bf16 %v2624_v26, %v2621_v2  ;;  %v2620_v30 = vld [vmem:[#allocation10 + $0xcc0] sm:$0xff] }
 0x539   : > { %v5587_v12 = vpack.c.bf16 %v2623_v36, %v2620_v30 }
 0x53b   : > { %5560 = vmatpush1.bf16.msra.mxu0 %v5559_v28  ;;  %5746 = vmatpush3.bf16.msra.mxu1 %v5745_v15  ;;  %v2626_v28 = vld [vmem:[#allocation10 + $0xcf0] sm:$0xff]  ;;  %v2629_v15 = vld [vmem:[#allocation10 + $0xd08] sm:$0xff] }
 0x53c   : > { %5562 = vmatprep.subr.bf16.mxu0 %v5561_v34  ;;  %5747 = vmatprep.subr.bf16.mxu1 %v6528_v13  ;;  %v5591_v34 = vpack.c.bf16 %v2629_v15, %v2626_v28 }
 0x53f   : > { %5564 = vmatpush1.bf16.msra.mxu0 %v5563_v49  ;;  %5749 = vmatpush3.bf16.msra.mxu1 %v5748_v46  ;;  %v5595_v49 = vpack.c.bf16 %v2635_v37, %v2632_v39  ;;  %v5597_v46 = vpack.c.bf16 %v2642_v47, %v2639_v9 }
 0x540   : > { %5566 = vmatprep.subr.bf16.mxu0 %v5565_v43  ;;  %5750 = vmatprep.subr.bf16.mxu1 %v6528_v13  ;;  %v5599_v43 = vpack.c.bf16 %v2641_v44, %v2638_v40 }
 0x543   : > { %5568 = vmatpush1.bf16.msra.mxu0 %v5567_v18  ;;  %5752 = vmatpush3.bf16.msra.mxu1 %v5751_v50 }
 0x544   : > { %5570 = vmatprep.subr.bf16.mxu0 %v5569_v58 }
 0x546   : > { %2922 = vmatmul.mubr.f32.vlgmr.msra.gmra.mrb[12].mxu0 %v7239_v41  ;;  %5138 = vmatmul.mubr.f32.vlgmr.msra.gmra.mrb[18].mxu1 %v7254_v61  ;;  %v5581_v41 = vpack.c.bf16 %v2618_v31, %v2615_v29 }
 0x547   : > { %5572 = vmatpush1.bf16.msra.mxu0 %v5571_v51  ;;  %v4869_v55 = vpop.f32.mrb[10].mxu1  ;;  %2992 = vmatprep.mubr.f32.mxu0 %v6525_v20 }
 0x548   : > { %5574 = vmatprep.subr.bf16.mxu0 %v5573_v62  ;;  %v4870_v23 = vpop.f32.mrb[11].mxu1  ;;  %3564 = vmatprep.mubr.f32.mxu1 %v6525_v20 }
 0x549   : > { %v4871_v42 = vadd.f32 %v4870_v23, %v4869_v55 }
 0x54b   : > { %5576 = vmatpush1.bf16.msra.mxu0 %v5575_v35 }
 0x54c   : > { %5578 = vmatprep.subr.bf16.mxu0 %v5577_v4 }
 0x54f   : > { %5580 = vmatpush1.bf16.msra.mxu0 %v5579_v56 }
 0x550   : > { %5582 = vmatprep.subr.bf16.mxu0 %v5581_v41 }
 0x553   : > { %5584 = vmatpush1.bf16.msra.mxu0 %v5583_v1 }
 0x554   : > { %5586 = vmatprep.subr.bf16.mxu0 %v5585_v21 }
 0x557   : > { %5588 = vmatpush1.bf16.msra.mxu0 %v5587_v12 }
 0x558   : > { %5590 = vmatprep.subr.bf16.mxu0 %v5589_v53 }
 0x55b   : > { %5592 = vmatpush1.bf16.msra.mxu0 %v5591_v34 }
 0x55c   : > { %5594 = vmatprep.subr.bf16.mxu0 %v5593_v7 }
 0x55f   : > { %5596 = vmatpush1.bf16.msra.mxu0 %v5595_v49 }
 0x560   : > { %5598 = vmatprep.subr.bf16.mxu0 %v5597_v46 }
 0x563   : > { %5600 = vmatpush1.bf16.msra.mxu0 %v5599_v43 }
 0x566   : > { %2993 = vmatmul.mubr.f32.vlgmr.msra.gmra.mrb[12].mxu0 %v7254_v61 }
 0x567   : > { %v4904_v22 = vpop.f32.mrb[12].mxu1 }
 0x568   : > { %v4905_v8 = vpop.f32.mrb[13].mxu1 }
 0x569   : > { %v4906_v25 = vadd.f32 %v4905_v8, %v4904_v22 }
 0x56b   : > { %v3136_v24 = vadd.f32 %v4906_v25, %v4871_v42 }
 0x5d9   : > { %v4939_v48 = vpop.f32.mrb[14].mxu1 }
 0x5da   : > { %v4940_v18 = vpop.f32.mrb[15].mxu1 }
 0x5db   : > { %v4941_v50 = vadd.f32 %v4940_v18, %v4939_v48 }
 0x5dd   : > { %v3206_v54 = vadd.f32 %v4941_v50, %v3136_v24 }
 0x5f9   : > { %v4974_v58 = vpop.f32.mrb[16].mxu1 }
 0x5fa   : > { %v4975_v60 = vpop.f32.mrb[17].mxu1 }
 0x5fb   : > { %v4976_v6 = vadd.f32 %v4975_v60, %v4974_v58 }
 0x5fd   : > { %v3276_v59 = vadd.f32 %v4976_v6, %v3206_v54  ;;  %v7299_v54 = vld [vmem:[%s7505_s4 + $0x8] sm:$0xff] }
 0x619   : > { %v3345_v33 = vpop.f32.mrb[18].mxu1 }
 0x61a   : > { %v3346_v51 = vadd.f32 %v3345_v33, %v3276_v59  ;;  %v5139_v62 = vpop.f32.mrb[19].mxu1 }
 0x61c   : > { %v5938_v45 = vand.u32 2147483647, %v3346_v51  ;;  %v5942_v61 = vand.u32 2147483648, %v3346_v51  ;;  %vm5937_vm10 = vcmp.lt.f32.partialorder %v3346_v51, 0.0  ;;  %vm5936_vm11 = vcmp.eq.f32.partialorder %v3346_v51, 0.0 }
 0x61e   : > { %6277 = vlog2.f32 %v5938_v45  ;;  %vm5946_vm8 = vweird.f32 %v5938_v45  ;;  %vm5948_vm9 = vcmp.eq.f32.partialorder %v5938_v45, 0.0  ;;  %vm5939_vm12 = vcmp.eq.f32.partialorder %v5938_v45, inf }
 0x628   : > { %v6278_v14 = vpop.eup %6277 }
 0x629   : > { %v5943_v38 = vmul.f32 0.33333334, %v6278_v14 }
 0x62b   : > { %6279 = vpow2.f32 %v5943_v38 }
 0x635   : > { %v6280_v52 = vpop.eup %6279 }
 0x636   : > { %v5945_v35 = vor.u32 %v6280_v52, %v5942_v61 }
 0x638   : > { %v5947_v55 = vsel %vm5946_vm8, %v3346_v51, %v5945_v35 }
 0x639   : > { %v2994_v4 = vpop.f32.mrb[12].mxu0  ;;  %v5950_v57 = vsel %vm5948_vm9, %v5942_v61, %v5947_v55 }
 0x63a   : > { %v5902_v19 = vand.u32 2147483647, %v2994_v4  ;;  %v2996_v23 = vpop.f32.mrb[13].mxu0  ;;  %v5951_v29 = vsel %vm5937_vm10, nan, %v5950_v57  ;;  %v5906_v26 = vand.u32 2147483648, %v2994_v4  ;;  %vm5901_vm9 = vcmp.lt.f32.partialorder %v2994_v4, 0.0 }
 0x63b   : > { %v5920_v31 = vand.u32 2147483647, %v2996_v23  ;;  %v5952_v42 = vsel %vm5936_vm11, 0.0, %v5951_v29  ;;  %v5924_v21 = vand.u32 2147483648, %v2996_v23  ;;  %vm5919_vm10 = vcmp.lt.f32.partialorder %v2996_v23, 0.0 }
 0x63c   : > { %6281 = vlog2.f32 %v5902_v19  ;;  %v7261_v56 = vsel %vm5939_vm12, inf, %v5952_v42  ;;  %vm5910_vm13 = vweird.f32 %v5902_v19  ;;  %vm5912_vm15 = vcmp.eq.f32.partialorder %v5902_v19, 0.0 }
 0x63d   : > { %6283 = vlog2.f32 %v5920_v31  ;;  %3367 = vperm.xlu0 %6205, %v7261_v56   ;;  %vm5928_vm14 = vweird.f32 %v5920_v31  ;;  %vm5930_vm8 = vcmp.eq.f32.partialorder %v5920_v31, 0.0  ;;  %vm5900_vm11 = vcmp.eq.f32.partialorder %v2994_v4, 0.0 }
 0x63e   : > { %vm5918_vm12 = vcmp.eq.f32.partialorder %v2996_v23, 0.0  ;;  %vm5903_vm7 = vcmp.eq.f32.partialorder %v5902_v19, inf  ;;  %vm5921_vm6 = vcmp.eq.f32.partialorder %v5920_v31, inf  ;;  %v3355_v31 = vld [vmem:[#allocation4 + $0x8] sm:$0xff] }
 0x641   : > { %6221 = vset.pattern.permute.xlu0 %v6521_v0 }
 0x646   : > { %v6282_v41 = vpop.eup %6281 }
 0x647   : > { %v6284_v32 = vpop.eup %6283  ;;  %v5907_v10 = vmul.f32 0.33333334, %v6282_v41 }
 0x648   : > { %v5925_v2 = vmul.f32 0.33333334, %v6284_v32 }
 0x649   : > { %6285 = vpow2.f32 %v5907_v10 }
 0x64a   : > { %6287 = vpow2.f32 %v5925_v2 }
 0x653   : > { %v6286_v1 = vpop.eup %6285 }
 0x654   : > { %v6288_v30 = vpop.eup %6287  ;;  %v5909_v36 = vor.u32 %v6286_v1, %v5906_v26 }
 0x655   : > { %v5927_v17 = vor.u32 %v6288_v30, %v5924_v21 }
 0x656   : > { %v5911_v11 = vsel %vm5910_vm13, %v2994_v4, %v5909_v36 }
 0x657   : > { %v5929_v12 = vsel %vm5928_vm14, %v2996_v23, %v5927_v17  ;;  %v5914_v53 = vsel %vm5912_vm15, %v5906_v26, %v5911_v11 }
 0x658   : > { %v5932_v28 = vsel %vm5930_vm8, %v5924_v21, %v5929_v12  ;;  %v5915_v15 = vsel %vm5901_vm9, nan, %v5914_v53 }
 0x659   : > { %v5933_v16 = vsel %vm5919_vm10, nan, %v5932_v28  ;;  %v5916_v27 = vsel %vm5900_vm11, 0.0, %v5915_v15 }
 0x65a   : > { %v5934_v34 = vsel %vm5918_vm12, 0.0, %v5933_v16  ;;  %v7265_v7 = vsel %vm5903_vm7, inf, %v5916_v27  ;;  %vm7539_vm7 = vcmask 64512  }
 0x65b   : > { %v7267_v39 = vsel %vm5921_vm6, inf, %v5934_v34  ;;  %3361 = vperm.xlu1 %6204, %v7265_v7   ;;  %vm7538_vm6 = vmmov 0   ;;  %vm7540_vm13 = vmmov %vm7539_vm7 }
 0x65c   : > { %v6206_v37 = vpack.i.bf16 %v7267_v39, %v7265_v7  ;;  %v6216_v25 = vpack.i.bf16 %v7261_v56, %v7267_v39 }
 0x65f   : > { %6207 = vrot.lane.b32.xlu1 %v6206_v37, %s6522_s17 }
 0x663   : > { %6212 = vrot.lane.b32.xlu1 %v6206_v37, %s6524_s21 }
 0x6bc   : > { %v3368_v9 = vpop.permute.xlu0 %3367 }
 0x6bd   : > { %3370 = vst.msk [vmem:[#allocation2 + $0x20] sm:$0xff] %vm382_vm0, %v3368_v9 }
 0x6c4   : > { %v3430_v50 = vld [vmem:[#allocation2 + $0x20] sm:$0xff] }
 0x6da   : > { %v3362_v47 = vpop.permute.xlu1 %3361 }
 0x6db   : > { %3364 = vst.msk [vmem:[#allocation2] sm:$0xff] %vm375_vm2, %v3362_v47 }
 0x6de   : > { %v6208_v49 = vpop.permute.xlu1 %6207 }
 0x6df   : > { %v6210_v46 = vunpack.i.h.bf16 %v6208_v49  ;;  %v6209_v40 = vunpack.i.l.bf16 %v6208_v49 }
 0x6e1   : > { %v3388_v24 = vsel %vm382_vm0, %v6209_v40, %v6210_v46 }
 0x6e2   : > { %v6213_v44 = vpop.permute.xlu1 %6212  ;;  %v3371_v43 = vld [vmem:[#allocation2] sm:$0xff] }
 0x6e3   : > { %v6215_v22 = vunpack.i.h.bf16 %v6213_v44  ;;  %v6214_v8 = vunpack.i.l.bf16 %v6213_v44  ;;  %3379 = vrot.lane.b32.xlu0 %v3371_v43, %s6522_s17  ;;  %3404 = vrot.lane.b32.xlu1 %v3371_v43, %s6524_s21 }
 0x6e5   : > { %v3413_v48 = vsel %vm491_vm1, %v6214_v8, %v6215_v22 }
 0x6e6   : > { %v5753_v18 = vpack.c.bf16 %v3413_v48, %v3388_v24 }
 0x6e7   : > { %6217 = vrot.lane.b32.xlu0 %v6216_v25, %s6526_s22  ;;  %3435 = vrot.lane.b32.xlu1 %v7265_v7, %s6526_s22 }
 0x6e8   : > { %5754 = vmatprep.subr.bf16.mxu1 %v5753_v18 }
 0x6eb   : > { %3462 = vrot.lane.b32.xlu0 %v7267_v39, %s6527_s8  ;;  %3464 = vrot.lane.b32.xlu1 %v7261_v56, %s6527_s8 }
 0x6ef   : > { %3460 = vrot.lane.b32.xlu0 %v7265_v7, %s6527_s8  ;;  %3385 = vrot.lane.b32.xlu1 %v7261_v56, %s6522_s17 }
 0x6f3   : > { %3410 = vrot.lane.b32.xlu0 %v7261_v56, %s6524_s21  ;;  %3441 = vrot.lane.b32.xlu1 %v3430_v50, %s6526_s22 }
 0x6f7   : > { %3466 = vrot.lane.b32.xlu0 %v3430_v50, %s6527_s8  ;;  %3494 = vperm.xlu1 %6204, %v7299_v54  }
 0x6fb   : > { %6222 = vset.pattern.permute.xlu1 %v6523_v5 }
 0x755   : > { %v3380_v58 = vpop.permute.xlu0 %3379  ;;  %v3405_v60 = vpop.permute.xlu1 %3404 }
 0x756   : > { %v3387_v6 = vsel %vm382_vm0, %v3380_v58, %v6209_v40  ;;  %v3412_v59 = vsel %vm491_vm1, %v3405_v60, %v6214_v8 }
 0x757   : > { %v5755_v33 = vpack.c.bf16 %v3412_v59, %v3387_v6 }
 0x759   : > { %v6218_v51 = vpop.permute.xlu0 %6217  ;;  %v3436_v62 = vpop.permute.xlu1 %3435  ;;  %5756 = vmatpush1.bf16.msra.mxu1 %v5755_v33 }
 0x75a   : > { %v6220_v45 = vunpack.i.h.bf16 %v6218_v51  ;;  %v6219_v14 = vunpack.i.l.bf16 %v6218_v51 }
 0x75c   : > { %v3443_v38 = vsel %vm577_vm3, %v3436_v62, %v6219_v14  ;;  %v3444_v61 = vsel %vm577_vm3, %v6219_v14, %v6220_v45 }
 0x75d   : > { %v5759_v52 = vpack.c.bf16 %v3443_v38, %v7265_v7  ;;  %v3463_v35 = vpop.permute.xlu0 %3462  ;;  %v3465_v55 = vpop.permute.xlu1 %3464  ;;  %v5757_v4 = vpack.c.bf16 %v3444_v61, %v7267_v39 }
 0x75e   : > { %v3469_v57 = vsel %vm645_vm4, %v3463_v35, %v3465_v55 }
 0x75f   : > { %5758 = vmatprep.subr.bf16.mxu1 %v5757_v4 }
 0x760   : > { %5760 = vmatpush1.bf16.msra.mxu1 %v5759_v52 }
 0x761   : > { %v3461_v19 = vpop.permute.xlu0 %3460  ;;  %v3386_v23 = vpop.permute.xlu1 %3385  ;;  %3508 = vmatprep.subr.mxu1 %v3469_v57 }
 0x762   : > { %v3468_v29 = vsel %vm645_vm4, %v3461_v19, %v3463_v35  ;;  %v3389_v32 = vsel %vm382_vm0, %v6210_v46, %v3386_v23 }
 0x764   : > { %3509 = vmatpush1.msra.mxu1 %v3468_v29 }
 0x765   : > { %v3411_v42 = vpop.permute.xlu0 %3410  ;;  %v3442_v41 = vpop.permute.xlu1 %3441  ;;  %4809 = vmatmul.mubr.msk.f32.vlgmr.msra.gmra.mrb[20].mxu1 %vm723_vm5, %v3355_v31  ;;  %5761 = vmatprep.subr.bf16.mxu1 %v6528_v13 }
 0x766   : > { %v3414_v10 = vsel %vm491_vm1, %v6215_v22, %v3411_v42  ;;  %5150 = vmatprep.mubr.msk.f32.mxu1 %vm7538_vm6, %v6525_v20  ;;  %v3445_v26 = vsel %vm577_vm3, %v6220_v45, %v3442_v41 }
 0x767   : > { %v5762_v2 = vpack.c.bf16 %v3414_v10, %v3389_v32  ;;  %v5765_v1 = vpack.c.bf16 %v3445_v26, %v7261_v56 }
 0x769   : > { %5763 = vmatpush3.bf16.msra.mxu1 %v5762_v2  ;;  %v3467_v21 = vpop.permute.xlu0 %3466 }
 0x76a   : > { %5764 = vmatprep.subr.bf16.mxu1 %v6528_v13  ;;  %v3470_v30 = vsel %vm645_vm4, %v3465_v55, %v3467_v21 }
 0x76d   : > { %5766 = vmatpush3.bf16.msra.mxu1 %v5765_v1 }
 0x76e   : > { %5148 = vmatprep.subr.mxu1 %v6525_v20 }
 0x771   : > { %5149 = vmatpush3.msra.mxu1 %v3470_v30 }
 0x772   : > { %5151 = vmatmul.mubr.msk.f32.vlgmr.msra.gmra.mrb[22].mxu1 %vm723_vm5, %v3355_v31  ;;  %v3645_v31 = vld [vmem:[#allocation7 + $0x8] sm:$0xff] }
 0x773   : > { %3853 = vmatprep.mubr.f32.mxu1 %v6525_v20 }
 0x776   : > { %v3495_v36 = vpop.permute.xlu1 %3494 }
 0x838   : > { %v3566_v17 = vpop.f32.mrb[20].mxu1 }
 0x839   : > { %v3567_v11 = vadd.f32 %v3566_v17, %v3495_v36  ;;  %v3568_v12 = vpop.f32.mrb[21].mxu1  ;;  %v4112_v17 = vld [vmem:[#allocation12 + $0x88] sm:$0xff] }
 0x83a   : > { %v3569_v53 = vadd.f32 %v3568_v12, %v3495_v36 }
 0x83b   : > { %v7325_v28 = vmax.f32 %v3567_v11, 0.0  ;;  %v3931_v11 = vld [vmem:[#allocation9 + $0x8] sm:$0xff] }
 0x83c   : > { %v3642_v15 = vmax.f32 %v3569_v53, 0.0  ;;  %v4095_v53 = vld [vmem:[#allocation12] sm:$0xff] }
 0x83d   : > { %3651 = vperm.xlu0 %6221, %v7325_v28  }
 0x83e   : > { %3647 = vst [vmem:[#allocation2 + $0x10] sm:$0xff] %v3642_v15  ;;  %v6228_v16 = vpack.i.bf16 %v3642_v15, %v7325_v28 }
 0x841   : > { %6229 = vrot.lane.b32.xlu0 %v6228_v16, %s6524_s21 }
 0x842   : > { %6238 = vset.pattern.permute.xlu0 %v6530_v63 }
 0x845   : > { %v3637_v27 = vpop.f32.mrb[22].mxu1 }
 0x846   : > { %v3638_v34 = vadd.f32 %v3637_v27, %v3495_v36  ;;  %v5152_v37 = vpop.f32.mrb[23].mxu1  ;;  %v4111_v36 = vld [vmem:[#allocation12 + $0x80] sm:$0xff]  ;;  %v4097_v27 = vld [vmem:[#allocation12 + $0x10] sm:$0xff] }
 0x847   : > { %v5781_v12 = vpack.c.bf16 %v4112_v17, %v4111_v36  ;;  %v4115_v37 = vld [vmem:[#allocation12 + $0xa0] sm:$0xff] }
 0x848   : > { %v7331_v9 = vmax.f32 %v3638_v34, 0.0  ;;  %v4098_v34 = vld [vmem:[#allocation12 + $0x18] sm:$0xff] }
 0x84a   : > { %3657 = vperm.xlu1 %6222, %v7331_v9   ;;  %v6233_v47 = vpack.i.bf16 %v7331_v9, %v3642_v15 }
 0x84e   : > { %6224 = vrot.lane.b32.xlu1 %v6228_v16, %s6522_s17  ;;  %v4114_v16 = vld [vmem:[#allocation12 + $0x98] sm:$0xff] }
 0x84f   : > { %6239 = vset.pattern.permute.xlu1 %v6531_v3 }
 0x852   : > { %6234 = vrot.lane.b32.xlu1 %v6233_v47, %s6526_s22  ;;  %v5787_v47 = vpack.c.bf16 %v4098_v34, %v4097_v27  ;;  %v4129_v34 = vld [vmem:[#allocation12 + $0x110] sm:$0xff] }
 0x8bc   : > { %v3652_v49 = vpop.permute.xlu0 %3651 }
 0x8bd   : > { %3654 = vst.msk [vmem:[#allocation2] sm:$0xff] %vm375_vm2, %v3652_v49 }
 0x8c0   : > { %v6230_v40 = vpop.permute.xlu0 %6229 }
 0x8c1   : > { %v6232_v43 = vunpack.i.h.bf16 %v6230_v40  ;;  %v6231_v22 = vunpack.i.l.bf16 %v6230_v40  ;;  %v4100_v40 = vld [vmem:[#allocation12 + $0x28] sm:$0xff] }
 0x8c3   : > { %v3703_v18 = vsel %vm491_vm1, %v6231_v22, %v6232_v43 }
 0x8c4   : > { %v3686_v46 = vld [vmem:[#allocation2] sm:$0xff] }
 0x8c5   : > { %3694 = vrot.lane.b32.xlu0 %v3686_v46, %s6524_s21  ;;  %3669 = vrot.lane.b32.xlu1 %v3686_v46, %s6522_s17  ;;  %v4099_v46 = vld [vmem:[#allocation12 + $0x20] sm:$0xff] }
 0x8c9   : > { %v3658_v44 = vpop.permute.xlu1 %3657  ;;  %3725 = vrot.lane.b32.xlu0 %v7325_v28, %s6526_s22  ;;  %3752 = vrot.lane.b32.xlu1 %v3642_v15, %s6527_s8 }
 0x8ca   : > { %3660 = vst.msk [vmem:[#allocation2 + $0x20] sm:$0xff] %vm382_vm0, %v3658_v44  ;;  %v4117_v44 = vld [vmem:[#allocation12 + $0xb0] sm:$0xff] }
 0x8cd   : > { %3754 = vrot.lane.b32.xlu0 %v7331_v9, %s6527_s8  ;;  %3675 = vrot.lane.b32.xlu1 %v7331_v9, %s6522_s17  ;;  %v6225_v8 = vpop.permute.xlu1 %6224 }
 0x8ce   : > { %v6227_v25 = vunpack.i.h.bf16 %v6225_v8  ;;  %v6226_v24 = vunpack.i.l.bf16 %v6225_v8  ;;  %v4101_v8 = vld [vmem:[#allocation12 + $0x30] sm:$0xff] }
 0x8d0   : > { %v3678_v48 = vsel %vm382_vm0, %v6226_v24, %v6227_v25 }
 0x8d1   : > { %3700 = vrot.lane.b32.xlu0 %v7331_v9, %s6524_s21  ;;  %3750 = vrot.lane.b32.xlu1 %v7325_v28, %s6527_s8  ;;  %v5767_v50 = vpack.c.bf16 %v3703_v18, %v3678_v48  ;;  %v3720_v58 = vld [vmem:[#allocation2 + $0x20] sm:$0xff]  ;;  %v6235_v60 = vpop.permute.xlu1 %6234  ;;  %v4120_v48 = vld [vmem:[#allocation12 + $0xc8] sm:$0xff] }
 0x8d2   : > { %v6237_v6 = vunpack.i.h.bf16 %v6235_v60  ;;  %v6236_v59 = vunpack.i.l.bf16 %v6235_v60  ;;  %v4104_v60 = vld [vmem:[#allocation12 + $0x48] sm:$0xff] }
 0x8d3   : > { %5768 = vmatprep.subr.bf16.mxu1 %v5767_v50 }
 0x8d4   : > { %v3734_v62 = vsel %vm577_vm3, %v6236_v59, %v6237_v6 }
 0x8d5   : > { %3731 = vrot.lane.b32.xlu0 %v3720_v58, %s6526_s22  ;;  %3756 = vrot.lane.b32.xlu1 %v3720_v58, %s6527_s8  ;;  %v5771_v61 = vpack.c.bf16 %v3734_v62, %v3642_v15  ;;  %v4113_v15 = vld [vmem:[#allocation12 + $0x90] sm:$0xff]  ;;  %v4103_v58 = vld [vmem:[#allocation12 + $0x40] sm:$0xff] }
 0x8d6   : > { %v4105_v62 = vld [vmem:[#allocation12 + $0x50] sm:$0xff] }
 0x8d9   : > { %3783 = vperm.xlu0 %6238, %v7299_v54   ;;  %3933 = vperm.xlu1 %6239, %v7299_v54  }
 0x8dd   : > { %6241 = vset.pattern.permute.xlu0 %v6523_v5  ;;  %6240 = vset.pattern.permute.xlu1 %v6521_v0 }
 0x937   : > { %v3695_v33 = vpop.permute.xlu0 %3694  ;;  %v3670_v51 = vpop.permute.xlu1 %3669 }
 0x938   : > { %v3702_v45 = vsel %vm491_vm1, %v3695_v33, %v6231_v22  ;;  %v3677_v14 = vsel %vm382_vm0, %v3670_v51, %v6226_v24  ;;  %v4119_v24 = vld [vmem:[#allocation12 + $0xc0] sm:$0xff]  ;;  %v4122_v33 = vld [vmem:[#allocation12 + $0xd8] sm:$0xff] }
 0x939   : > { %v5769_v38 = vpack.c.bf16 %v3702_v45, %v3677_v14  ;;  %v5797_v50 = vpack.c.bf16 %v4120_v48, %v4119_v24  ;;  %v4106_v45 = vld [vmem:[#allocation12 + $0x58] sm:$0xff]  ;;  %v4137_v24 = vld [vmem:[#allocation12 + $0x150] sm:$0xff] }
 0x93a   : > { %v5803_v14 = vpack.c.bf16 %v4106_v45, %v4105_v62  ;;  %v4138_v48 = vld [vmem:[#allocation12 + $0x158] sm:$0xff] }
 0x93b   : > { %v3726_v52 = vpop.permute.xlu0 %3725  ;;  %v3753_v35 = vpop.permute.xlu1 %3752  ;;  %5770 = vmatpush1.bf16.msra.mxu1 %v5769_v38  ;;  %v4123_v38 = vld [vmem:[#allocation12 + $0xe0] sm:$0xff] }
 0x93c   : > { %v3733_v54 = vsel %vm577_vm3, %v3726_v52, %v6236_v59  ;;  %5772 = vmatprep.subr.bf16.mxu1 %v5771_v61  ;;  %v4121_v59 = vld [vmem:[#allocation12 + $0xd0] sm:$0xff]  ;;  %v4124_v61 = vld [vmem:[#allocation12 + $0xe8] sm:$0xff] }
 0x93d   : > { %v5773_v55 = vpack.c.bf16 %v3733_v54, %v7325_v28  ;;  %v4096_v28 = vld [vmem:[#allocation12 + $0x8] sm:$0xff]  ;;  %v5801_v51 = vpack.c.bf16 %v4122_v33, %v4121_v59  ;;  %v5805_v52 = vpack.c.bf16 %v4124_v61, %v4123_v38  ;;  %v4141_v33 = vld [vmem:[#allocation12 + $0x170] sm:$0xff] }
 0x93e   : > { %v4108_v54 = vld [vmem:[#allocation12 + $0x68] sm:$0xff] }
 0x93f   : > { %v3755_v4 = vpop.permute.xlu0 %3754  ;;  %v3676_v57 = vpop.permute.xlu1 %3675  ;;  %5774 = vmatpush1.bf16.msra.mxu1 %v5773_v55 }
 0x940   : > { %v3759_v19 = vsel %vm645_vm4, %v3753_v35, %v3755_v4  ;;  %v3679_v42 = vsel %vm382_vm0, %v6227_v25, %v3676_v57  ;;  %v4102_v25 = vld [vmem:[#allocation12 + $0x38] sm:$0xff] }
 0x941   : > { %3797 = vmatprep.subr.mxu1 %v3759_v19  ;;  %v5795_v18 = vpack.c.bf16 %v4102_v25, %v4101_v8  ;;  %v4126_v57 = vld [vmem:[#allocation12 + $0xf8] sm:$0xff] }
 0x943   : > { %v3701_v23 = vpop.permute.xlu0 %3700  ;;  %v3751_v29 = vpop.permute.xlu1 %3750 }
 0x944   : > { %v3704_v41 = vsel %vm491_vm1, %v6232_v43, %v3701_v23  ;;  %v3758_v32 = vsel %vm645_vm4, %v3751_v29, %v3753_v35  ;;  %v5791_v43 = vpack.c.bf16 %v4100_v40, %v4099_v46  ;;  %v4107_v35 = vld [vmem:[#allocation12 + $0x60] sm:$0xff]  ;;  %v4109_v23 = vld [vmem:[#allocation12 + $0x70] sm:$0xff]  ;;  %v4110_v29 = vld [vmem:[#allocation12 + $0x78] sm:$0xff] }
 0x945   : > { %v5776_v10 = vpack.c.bf16 %v3704_v41, %v3679_v42  ;;  %3798 = vmatpush1.msra.mxu1 %v3758_v32  ;;  %v5807_v55 = vpack.c.bf16 %v4108_v54, %v4107_v35  ;;  %v4133_v40 = vld [vmem:[#allocation12 + $0x130] sm:$0xff] }
 0x946   : > { %5775 = vmatprep.subr.bf16.mxu1 %v6528_v13  ;;  %4811 = vmatmul.mubr.msk.f32.vlgmr.msra.gmra.mrb[24].mxu1 %vm723_vm5, %v3645_v31 }
 0x947   : > { %v3732_v2 = vpop.permute.xlu0 %3731  ;;  %5777 = vmatpush3.bf16.msra.mxu1 %v5776_v10  ;;  %5163 = vmatprep.mubr.msk.f32.mxu1 %vm7538_vm6, %v6525_v20  ;;  %v3757_v21 = vpop.permute.xlu1 %3756 }
 0x948   : > { %v3735_v26 = vsel %vm577_vm3, %v6237_v6, %v3732_v2  ;;  %5778 = vmatprep.subr.bf16.mxu1 %v6528_v13  ;;  %v3760_v30 = vsel %vm645_vm4, %v3755_v4, %v3757_v21  ;;  %v5799_v6 = vpack.c.bf16 %v4104_v60, %v4103_v58  ;;  %v4125_v4 = vld [vmem:[#allocation12 + $0xf0] sm:$0xff]  ;;  %v4139_v58 = vld [vmem:[#allocation12 + $0x160] sm:$0xff]  ;;  %v4140_v60 = vld [vmem:[#allocation12 + $0x168] sm:$0xff] }
 0x949   : > { %v5779_v1 = vpack.c.bf16 %v3735_v26, %v7331_v9  ;;  %v4116_v9 = vld [vmem:[#allocation12 + $0xa8] sm:$0xff]  ;;  %v5809_v19 = vpack.c.bf16 %v4126_v57, %v4125_v4 }
 0x94a   : > { %v5789_v49 = vpack.c.bf16 %v4116_v9, %v4115_v37  ;;  %v4130_v37 = vld [vmem:[#allocation12 + $0x118] sm:$0xff] }
 0x94b   : > { %5780 = vmatpush3.bf16.msra.mxu1 %v5779_v1  ;;  %v5817_v9 = vpack.c.bf16 %v4130_v37, %v4129_v34 }
 0x94c   : > { %5161 = vmatprep.subr.mxu1 %v6525_v20 }
 0x94f   : > { %5162 = vmatpush3.msra.mxu1 %v3760_v30 }
 0x950   : > { %5164 = vmatmul.mubr.msk.f32.vlgmr.msra.gmra.mrb[26].mxu1 %vm723_vm5, %v3645_v31  ;;  %3939 = vmatprep.subr.mxu1 %v7267_v39  ;;  %v5783_v39 = vpack.c.bf16 %v4096_v28, %v4095_v53  ;;  %v5811_v31 = vpack.c.bf16 %v4110_v29, %v4109_v23  ;;  %v4127_v28 = vld [vmem:[#allocation12 + $0x100] sm:$0xff] }
 0x951   : > { %3940 = vmatpush1.msra.mxu1 %v7265_v7  ;;  %4003 = vmatprep.mubr.f32.mxu1 %v6525_v20  ;;  %v5785_v7 = vpack.c.bf16 %v4114_v16, %v4113_v15  ;;  %v4128_v15 = vld [vmem:[#allocation12 + $0x108] sm:$0xff] }
 0x952   : > { %5166 = vmatprep.subr.mxu1 %v6525_v20 }
 0x954   : > { %4813 = vmatmul.mubr.msk.f32.vlgmr.msra.gmra.mrb[24].mxu1 %vm7539_vm7, %v3931_v11 }
 0x955   : > { %5167 = vmatpush3.msra.mxu1 %v7261_v56  ;;  %5168 = vmatprep.mubr.msk.f32.mxu1 %vm7538_vm6, %v6525_v20  ;;  %v4118_v56 = vld [vmem:[#allocation12 + $0xb8] sm:$0xff] }
 0x956   : > { %5782 = vmatprep.subr.bf16.mxu1 %v5781_v12  ;;  %v5793_v22 = vpack.c.bf16 %v4118_v56, %v4117_v44  ;;  %v4134_v44 = vld [vmem:[#allocation12 + $0x138] sm:$0xff] }
 0x957   : > { %v5823_v56 = vpack.c.bf16 %v4134_v44, %v4133_v40  ;;  %v4287_v40 = vld [vmem:[#allocation4 + $0x10] sm:$0xff] }
 0x958   : > { %5169 = vmatmul.mubr.msk.f32.vlgmr.msra.gmra.mrb[26].mxu1 %vm7540_vm13, %v3931_v11  ;;  %v3784_v42 = vpop.permute.xlu0 %3783  ;;  %v3934_v41 = vpop.permute.xlu1 %3933 }
 0x959   : > { %5784 = vmatpush3.bf16.msra.mxu1 %v5783_v39  ;;  %v5869_v32 = vadd.f32 %v3934_v41, %v3784_v42 }
 0x95a   : > { %5786 = vmatprep.subr.bf16.mxu1 %v5785_v7  ;;  %v5814_v7 = vpack.c.bf16 %v4128_v15, %v4127_v28 }
 0x95d   : > { %5788 = vmatpush3.bf16.msra.mxu1 %v5787_v47  ;;  %v4131_v47 = vld [vmem:[#allocation12 + $0x120] sm:$0xff] }
 0x95e   : > { %5790 = vmatprep.subr.bf16.mxu1 %v5789_v49  ;;  %v4132_v49 = vld [vmem:[#allocation12 + $0x128] sm:$0xff] }
 0x95f   : > { %v5820_v46 = vpack.c.bf16 %v4132_v49, %v4131_v47 }
 0x961   : > { %5792 = vmatpush3.bf16.msra.mxu1 %v5791_v43  ;;  %v4135_v43 = vld [vmem:[#allocation12 + $0x140] sm:$0xff] }
 0x962   : > { %5794 = vmatprep.subr.bf16.mxu1 %v5793_v22  ;;  %v4136_v22 = vld [vmem:[#allocation12 + $0x148] sm:$0xff] }
 0x963   : > { %v5826_v8 = vpack.c.bf16 %v4136_v22, %v4135_v43 }
 0x965   : > { %5796 = vmatpush3.bf16.msra.mxu1 %v5795_v18  ;;  %v5829_v18 = vpack.c.bf16 %v4138_v48, %v4137_v24 }
 0x966   : > { %5798 = vmatprep.subr.bf16.mxu1 %v5797_v50 }
 0x969   : > { %5800 = vmatpush3.bf16.msra.mxu1 %v5799_v6  ;;  %v5832_v6 = vpack.c.bf16 %v4140_v60, %v4139_v58 }
 0x96a   : > { %5802 = vmatprep.subr.bf16.mxu1 %v5801_v51  ;;  %v4142_v51 = vld [vmem:[#allocation12 + $0x178] sm:$0xff] }
 0x96b   : > { %v5835_v62 = vpack.c.bf16 %v4142_v51, %v4141_v33 }
 0x96d   : > { %5804 = vmatpush3.bf16.msra.mxu1 %v5803_v14 }
 0x96e   : > { %5806 = vmatprep.subr.bf16.mxu1 %v5805_v52 }
 0x971   : > { %5808 = vmatpush3.bf16.msra.mxu1 %v5807_v55 }
 0x972   : > { %5810 = vmatprep.subr.bf16.mxu1 %v5809_v19 }
 0x975   : > { %5812 = vmatpush3.bf16.msra.mxu1 %v5811_v31 }
 0x976   : > { %5813 = vmatprep.subr.bf16.mxu1 %v6528_v13 }
 0xa27   : > { %v4005_v10 = vpop.f32.mrb[24].mxu1 }
 0xa28   : > { %v5870_v2 = vadd.f32 %v5869_v32, %v4005_v10  ;;  %v4007_v26 = vpop.f32.mrb[25].mxu1 }
 0xa29   : > { %v5872_v1 = vadd.f32 %v5869_v32, %v4007_v26 }
 0xa2a   : > { %v4083_v21 = vmax.f32 %v5870_v2, 0.0 }
 0xa2b   : > { %v4084_v30 = vmax.f32 %v5872_v1, 0.0  ;;  %v4076_v36 = vpop.f32.mrb[26].mxu1 }
 0xa2c   : > { %v4086_v17 = vmax.f32 %v4083_v21, 1e-06  ;;  %v5170_v11 = vpop.f32.mrb[27].mxu1  ;;  %v5874_v25 = vadd.f32 %v5869_v32, %v4076_v36 }
 0xa2d   : > { %v4087_v12 = vmax.f32 %v4084_v30, 1e-06 }
 0xa2e   : > { %v4089_v53 = vmul.f32 %v4086_v17, %v4086_v17  ;;  %v4085_v50 = vmax.f32 %v5874_v25, 0.0 }
 0xa2f   : > { %v4090_v16 = vmul.f32 %v4087_v12, %v4087_v12 }
 0xa30   : > { %v4092_v27 = vmul.f32 %v4089_v53, %v4086_v17  ;;  %v4088_v59 = vmax.f32 %v4085_v50, 1e-06 }
 0xa31   : > { %v4093_v39 = vmul.f32 %v4090_v16, %v4087_v12 }
 0xa32   : > { %v4091_v45 = vmul.f32 %v4088_v59, %v4088_v59 }
 0xa33   : > { %4207 = vmatprep.mubr.f32.mxu1 %v4093_v39 }
 0xa34   : > { %4208 = vmatmul.mubr.f32.vlgmr.msra.gmra.mrb[28].mxu1 %v4092_v27  ;;  %v4094_v14 = vmul.f32 %v4091_v45, %v4088_v59 }
 0xa35   : > { %5815 = vmatpush3.bf16.msra.mxu1 %v5814_v7  ;;  %5203 = vmatprep.mubr.msk.f32.mxu1 %vm7538_vm6, %v6525_v20 }
 0xa36   : > { %5816 = vmatprep.subr.bf16.mxu1 %v6528_v13 }
 0xa39   : > { %5818 = vmatpush3.bf16.msra.mxu1 %v5817_v9 }
 0xa3a   : > { %5819 = vmatprep.subr.bf16.mxu1 %v6528_v13 }
 0xa3d   : > { %5821 = vmatpush3.bf16.msra.mxu1 %v5820_v46 }
 0xa3e   : > { %5822 = vmatprep.subr.bf16.mxu1 %v6528_v13 }
 0xa41   : > { %5824 = vmatpush3.bf16.msra.mxu1 %v5823_v56 }
 0xa42   : > { %5825 = vmatprep.subr.bf16.mxu1 %v6528_v13 }
 0xa45   : > { %5827 = vmatpush3.bf16.msra.mxu1 %v5826_v8 }
 0xa46   : > { %5828 = vmatprep.subr.bf16.mxu1 %v6528_v13 }
 0xa49   : > { %5830 = vmatpush3.bf16.msra.mxu1 %v5829_v18 }
 0xa4a   : > { %5831 = vmatprep.subr.bf16.mxu1 %v6528_v13 }
 0xa4d   : > { %5833 = vmatpush3.bf16.msra.mxu1 %v5832_v6 }
 0xa4e   : > { %5834 = vmatprep.subr.bf16.mxu1 %v6528_v13 }
 0xa51   : > { %5836 = vmatpush3.bf16.msra.mxu1 %v5835_v62 }
 0xa52   : > { %5837 = vmatprep.subr.bf16.mxu1 %v6528_v13 }
 0xa54   : > { %5204 = vmatmul.mubr.f32.vlgmr.msra.gmra.mrb[30].mxu1 %v4094_v14 }
 0xa55   : > { %5216 = vmatprep.mubr.msk.f32.mxu1 %vm7538_vm6, %v6525_v20 }
 0xb07   : > { %v5040_v38 = vpop.f32.mrb[28].mxu1 }
 0xb08   : > { %v5041_v61 = vpop.f32.mrb[29].mxu1 }
 0xb09   : > { %v5042_v52 = vadd.f32 %v5041_v61, %v5040_v38 }
 0xb27   : > { %v4279_v35 = vpop.f32.mrb[30].mxu1 }
 0xb28   : > { %v4280_v54 = vadd.f32 %v5042_v52, %v4279_v35  ;;  %v5205_v55 = vpop.f32.mrb[31].mxu1 }
 0xb2a   : > { %v5956_v4 = vand.u32 2147483647, %v4280_v54  ;;  %v5960_v23 = vand.u32 2147483648, %v4280_v54  ;;  %vm5955_vm8 = vcmp.lt.f32.partialorder %v4280_v54, 0.0  ;;  %vm5954_vm9 = vcmp.eq.f32.partialorder %v4280_v54, 0.0 }
 0xb2c   : > { %6289 = vlog2.f32 %v5956_v4  ;;  %vm5964_vm14 = vweird.f32 %v5956_v4  ;;  %vm5966_vm15 = vcmp.eq.f32.partialorder %v5956_v4, 0.0  ;;  %vm5957_vm10 = vcmp.eq.f32.partialorder %v5956_v4, inf }
 0xb36   : > { %v6290_v57 = vpop.eup %6289 }
 0xb37   : > { %v5961_v19 = vmul.f32 0.33333334, %v6290_v57  ;;  %v4431_v57 = vld [vmem:[#allocation7 + $0x10] sm:$0xff] }
 0xb39   : > { %6291 = vpow2.f32 %v5961_v19 }
 0xb43   : > { %v6292_v29 = vpop.eup %6291 }
 0xb44   : > { %v5963_v31 = vor.u32 %v6292_v29, %v5960_v23 }
 0xb46   : > { %v5965_v42 = vsel %vm5964_vm14, %v4280_v54, %v5963_v31 }
 0xb47   : > { %v5968_v41 = vsel %vm5966_vm15, %v5960_v23, %v5965_v42 }
 0xb48   : > { %v5969_v32 = vsel %vm5955_vm8, nan, %v5968_v41 }
 0xb49   : > { %v5970_v10 = vsel %vm5954_vm9, 0.0, %v5969_v32 }
 0xb4a   : > { %v7402_v2 = vsel %vm5957_vm10, inf, %v5970_v10 }
 0xb4b   : > { %4296 = vperm.xlu0 %6241, %v7402_v2   ;;  %4291 = vperm.xlu1 %6240, %v7402_v2  }
 0xb4f   : > { %6257 = vset.pattern.permute.xlu0 %v6521_v0  ;;  %v4815_v0 = vld [vmem:[%s7505_s4 + $0x10] sm:$0xff] }
 0xbca   : > { %v4297_v26 = vpop.permute.xlu0 %4296  ;;  %v4292_v1 = vpop.permute.xlu1 %4291 }
 0xbcb   : > { %4299 = vst.msk [vmem:[#allocation2 + $0x10] sm:$0xff] %vm382_vm0, %v4297_v26 }
 0xbcc   : > { %4294 = vst.msk [vmem:[#allocation2] sm:$0xff] %vm375_vm2, %v4292_v1 }
 0xbd2   : > { %v4325_v21 = vld [vmem:[#allocation2 + $0x10] sm:$0xff] }
 0xbd3   : > { %v4300_v30 = vld [vmem:[#allocation2] sm:$0xff]  ;;  %v6252_v36 = vpack.i.bf16 %v4325_v21, %v7402_v2 }
 0xbd4   : > { %v6242_v17 = vpack.i.bf16 %v7402_v2, %v4300_v30 }
 0xbd5   : > { %6253 = vrot.lane.b32.xlu0 %v6252_v36, %s6526_s22 }
 0xbd6   : > { %6243 = vrot.lane.b32.xlu1 %v6242_v17, %s6522_s17 }
 0xbd9   : > { %4341 = vrot.lane.b32.xlu0 %v4325_v21, %s6527_s8 }
 0xbda   : > { %6248 = vrot.lane.b32.xlu1 %v6242_v17, %s6524_s21 }
 0xbde   : > { %4339 = vrot.lane.b32.xlu1 %v7402_v2, %s6527_s8 }
 0xbe2   : > { %4353 = vperm.xlu1 %6240, %v4815_v0  }
 0xbe6   : > { %6258 = vset.pattern.permute.xlu1 %v6523_v5 }
 0xc47   : > { %v6254_v12 = vpop.permute.xlu0 %6253 }
 0xc48   : > { %v6244_v11 = vpop.permute.xlu1 %6243  ;;  %v6256_v16 = vunpack.i.h.bf16 %v6254_v12  ;;  %v6255_v39 = vunpack.i.l.bf16 %v6254_v12 }
 0xc49   : > { %v6246_v53 = vunpack.i.h.bf16 %v6244_v11  ;;  %v6245_v28 = vunpack.i.l.bf16 %v6244_v11 }
 0xc4a   : > { %v4332_v47 = vsel %vm577_vm3, %v6255_v39, %v6256_v16 }
 0xc4b   : > { %v4308_v34 = vsel %vm382_vm0, %v6245_v28, %v6246_v53  ;;  %v5841_v5 = vpack.c.bf16 %v4332_v47, %v7402_v2  ;;  %v4342_v46 = vpop.permute.xlu0 %4341 }
 0xc4c   : > { %v6249_v15 = vpop.permute.xlu1 %6248 }
 0xc4d   : > { %v6251_v7 = vunpack.i.h.bf16 %v6249_v15  ;;  %v6250_v27 = vunpack.i.l.bf16 %v6249_v15 }
 0xc4f   : > { %v4319_v37 = vsel %vm491_vm1, %v6250_v27, %v6251_v7 }
 0xc50   : > { %v5838_v9 = vpack.c.bf16 %v4319_v37, %v4308_v34  ;;  %v4340_v49 = vpop.permute.xlu1 %4339 }
 0xc51   : > { %v4343_v44 = vsel %vm645_vm4, %v4340_v49, %v4342_v46 }
 0xc52   : > { %5839 = vmatpush3.bf16.msra.mxu1 %v5838_v9 }
 0xc53   : > { %5840 = vmatprep.subr.bf16.mxu1 %v6528_v13 }
 0xc56   : > { %5842 = vmatpush3.bf16.msra.mxu1 %v5841_v5 }
 0xc57   : > { %5214 = vmatprep.subr.mxu1 %v6525_v20 }
 0xc5a   : > { %5215 = vmatpush3.msra.mxu1 %v4343_v44 }
 0xc5b   : > { %5217 = vmatmul.mubr.msk.f32.vlgmr.msra.gmra.mrb[32].mxu1 %vm723_vm5, %v4287_v40  ;;  %5843 = vmatprep.subr.bf16.mxu1 %v6528_v13 }
 0xc5c   : > { %5229 = vmatprep.mubr.msk.f32.mxu1 %vm7538_vm6, %v6525_v20 }
 0xc61   : > { %v4354_v56 = vpop.permute.xlu1 %4353 }
 0xd2e   : > { %v4425_v43 = vpop.f32.mrb[32].mxu1 }
 0xd2f   : > { %v4426_v22 = vadd.f32 %v4425_v43, %v4354_v56  ;;  %v5218_v8 = vpop.f32.mrb[33].mxu1 }
 0xd31   : > { %v4429_v25 = vmax.f32 %v4426_v22, 0.0 }
 0xd33   : > { %4440 = vperm.xlu1 %6258, %v4429_v25   ;;  %4435 = vperm.xlu0 %6257, %v4429_v25  }
 0xd37   : > { %6275 = vset.pattern.permute.xlu1 %v6531_v3  ;;  %6274 = vset.pattern.permute.xlu0 %v6530_v63 }
 0xdb2   : > { %v4441_v24 = vpop.permute.xlu1 %4440  ;;  %v4436_v48 = vpop.permute.xlu0 %4435 }
 0xdb3   : > { %4443 = vst.msk [vmem:[#allocation2 + $0x10] sm:$0xff] %vm382_vm0, %v4441_v24 }
 0xdb4   : > { %4438 = vst.msk [vmem:[#allocation2] sm:$0xff] %vm375_vm2, %v4436_v48 }
 0xdba   : > { %v4469_v58 = vld [vmem:[#allocation2 + $0x10] sm:$0xff] }
 0xdbb   : > { %v4455_v18 = vld [vmem:[#allocation2] sm:$0xff]  ;;  %v6269_v60 = vpack.i.bf16 %v4469_v58, %v4429_v25 }
 0xdbc   : > { %v6264_v50 = vpack.i.bf16 %v4429_v25, %v4455_v18 }
 0xdbe   : > { %6265 = vrot.lane.b32.xlu0 %v6264_v50, %s6524_s21  ;;  %6260 = vrot.lane.b32.xlu1 %v6264_v50, %s6522_s17  ;;  %s7459_s17 = scalar_lea.hbm %s7508_s7, %s4820_s13  ;;  %s4655_s21 = scalar_lea.sflag [#allocation6], %s342_s20 }
 0xdc2   : > { %4483 = vrot.lane.b32.xlu0 %v4429_v25, %s6527_s8  ;;  %6270 = vrot.lane.b32.xlu1 %v6269_v60, %s6526_s22  ;;  %s6436_s22 = scalar_lea.vmem %s7461_s29, 64 }
 0xdc3   : > { %p6437_p2 = scmp.ne.s32.totalorder %s7461_s29, %s6436_s22 }
 0xdc5   : > { %p6438_p4 = pnand %p6437_p2, %p7542_p3 }
 0xdc6   : > { %4485 = vrot.lane.b32.xlu1 %v4469_v58, %s6527_s8  ;;  %4496 = vperm.xlu0 %6274, %v4815_v0   ;;  %s6440_s8 = sshll.u32 %s6532_s28, 4  ;;  %s6441_s8 = int_to_ptr.vmem [resolvable:$false] %s6440_s8 }
 0xdc7   : > { %p6439_p7 = pneg %p6438_p4  ;;  %s6442_s14 = scalar_lea.vmem %s6441_s8, 128 }
 0xdc8   : > { %p6443_p8 = scmp.lt.s32.totalorder %s7461_s29, %s6441_s8  ;;  %p6444_p11 = scmp.lt.s32.totalorder %s6442_s14, %s6436_s22 }
 0xdca   : > { %4575 = vperm.xlu1 %6275, %v4815_v0   ;;  %6276 = vset.pattern.permute.xlu0 %v6531_v3  ;;  %p6445_p5 = por %p6444_p11, %p6443_p8 }
 0xdcc   : > { %p6446_p0 = pnand %p6445_p5, %p6439_p7 }
 0xe30   : > { %v6266_v63 = vpop.permute.xlu0 %6265  ;;  %v6261_v6 = vpop.permute.xlu1 %6260 }
 0xe31   : > { %v6268_v59 = vunpack.i.h.bf16 %v6266_v63  ;;  %v6267_v33 = vunpack.i.l.bf16 %v6266_v63  ;;  %v6263_v51 = vunpack.i.h.bf16 %v6261_v6  ;;  %v6262_v62 = vunpack.i.l.bf16 %v6261_v6 }
 0xe33   : > { %v4463_v45 = vsel %vm491_vm1, %v6267_v33, %v6268_v59  ;;  %v4452_v14 = vsel %vm382_vm0, %v6262_v62, %v6263_v51  ;;  %vm7541_vm0 = vmmov %vm7539_vm7 }
 0xe34   : > { %v5844_v38 = vpack.c.bf16 %v4463_v45, %v4452_v14  ;;  %v6271_v61 = vpop.permute.xlu1 %6270  ;;  %v4484_v4 = vpop.permute.xlu0 %4483 }
 0xe35   : > { %v6273_v52 = vunpack.i.h.bf16 %v6271_v61  ;;  %v6272_v35 = vunpack.i.l.bf16 %v6271_v61 }
 0xe36   : > { %5845 = vmatpush3.bf16.msra.mxu1 %v5844_v38 }
 0xe37   : > { %v4476_v54 = vsel %vm577_vm3, %v6272_v35, %v6273_v52  ;;  %5846 = vmatprep.subr.bf16.mxu1 %v6528_v13  ;;  %v4573_v13 = vld [vmem:[#allocation9 + $0x10] sm:$0xff] }
 0xe38   : > { %v5847_v3 = vpack.c.bf16 %v4476_v54, %v4429_v25  ;;  %v4486_v55 = vpop.permute.xlu1 %4485 }
 0xe39   : > { %v4487_v19 = vsel %vm645_vm4, %v4484_v4, %v4486_v55 }
 0xe3a   : > { %5848 = vmatpush3.bf16.msra.mxu1 %v5847_v3 }
 0xe3b   : > { %5227 = vmatprep.subr.mxu1 %v6525_v20 }
 0xe3e   : > { %5228 = vmatpush3.msra.mxu1 %v4487_v19 }
 0xe3f   : > { %5230 = vmatmul.mubr.msk.f32.vlgmr.msra.gmra.mrb[34].mxu1 %vm723_vm5, %v4431_v57  ;;  %5232 = vmatprep.subr.mxu1 %v6525_v20 }
 0xe40   : > { %5233 = vmatpush3.msra.mxu1 %v7402_v2  ;;  %5234 = vmatprep.mubr.msk.f32.mxu1 %vm7538_vm6, %v6525_v20 }
 0xe45   : > { %v4497_v23 = vpop.permute.xlu0 %4496 }
 0xe47   : > { %5235 = vmatmul.mubr.msk.f32.vlgmr.msra.gmra.mrb[34].mxu1 %vm7541_vm0, %v4573_v13 }
 0xe49   : > { %v4576_v29 = vpop.permute.xlu1 %4575 }
 0xe4a   : > { %v5875_v31 = vadd.f32 %v4576_v29, %v4497_v23 }
 0xf1a   : > { %v4647_v42 = vpop.f32.mrb[34].mxu1 }
 0xf1b   : > { %v5876_v41 = vadd.f32 %v5875_v31, %v4647_v42  ;;  %v5236_v32 = vpop.f32.mrb[35].mxu1 }
 0xf1d   : > { %v4652_v10 = vmax.f32 %v5876_v41, 0.0 }
 0xf1f   : > { %4653 = vst [vmem:[%s344_s16] sm:$0xf] %v4652_v10 }
 0xf20   : > { %6449 = shalt.err (!%p6446_p0)
}
 0xf21   : > { %s6450_s15 = scalar_lea.hbm %s7459_s17, 64  ;;  %s6454_s23 = scalar_lea.hbm %s7508_s7, 128 }
 0xf22   : > { %p6451_p6 = scmp.ne.s32.totalorder %s7459_s17, %s6450_s15  ;;  %p6455_p13 = scmp.lt.u32.totalorder %s7459_s17, %s7508_s7 }
 0xf23   : > { %p6456_p12 = scmp.lt.u32.totalorder %s6454_s23, %s6450_s15  ;;  %p6458_p2 = scmp.lt.u32.totalorder %s6450_s15, %s7459_s17 }
 0xf24   : > { %p6452_p9 = pnand %p6451_p6, %p7542_p3 }
 0xf25   : > { %p6457_p1 = por %p6456_p12, %p6455_p13 }
 0xf26   : > { %p6453_p10 = pneg %p6452_p9 }
 0xf27   : > { %p6459_p4 = por %p6458_p2, %p6457_p1 }
 0xf29   : > { %p6460_p7 = pnand %p6459_p4, %p6453_p10 }
 0xf2b   : > { %6463 = shalt.err (!%p6460_p7)
}
 0xf2c   : > { %5992 = dma.vmem_to_hbm [thread:$0]  (%p7542_p3), %s7461_s29, 64, %s7459_s17, %s4655_s21  }
 0xf2d PF: > { %p6024_p8 = scmp.ge.s32.totalorder %s6510_s27, 2  ;;  %s4680_s26 = sand.u32 1, %s6498_s24  }
 0xf2e   : > { %p7543_p11 = scmp.ne.s32.totalorder %s7524_s12, 0  ;;  %s4681_s13 = scalar_lea.sflag [#allocation6], %s4680_s26 }
 0xf30   : > { %p6011_p5 = pnand %p6024_p8, %p7543_p11 }
 0xf32   : > { %6493 = dma.done.wait (!%p6011_p5), %s4681_s13, 64  }
 0xf33   : > { %6495 = vsyncadd (!%p6011_p5), %s4681_s13, 4294967232  ;;  %s7544_s16 = sld [smem:[#allocation18_spill]]  ;;  %s7545_s26 = sld [smem:[#allocation19_spill]] }
 0xf34   : > { %p20_p0 = scmp.ge.s32.totalorder %s6598_s30, 4   ;;  %s7546_s24 = smov %s6502_s25 }
 0xf35   : > { %s7548_s27 = smov %s6598_s30 }
 0xf36   :  { %22 = sbr.rel (!%p20_p0) target bundleno = 8 (0x8), region = 112 }
 0xf39   : > { %s7547_s25 = smov %s7544_s16 }
 0xf3d   :  { %4686 = vsyncpa [#allocation5], 1 }
 0xf3e   :  { %4688 = vsyncpa [#allocation5 + $0x1], 1 }
 0xf3f   :  { %4689 = vsyncpa [#allocation8], 1 }
 0xf40   :  { %4690 = vsyncpa [#allocation11], 1 }
 0xf41   :  { %4691 = vsyncpa [#allocation6], 1 }
 0xf42   :  { %4693 = vsyncpa [#allocation6 + $0x1], 1 }

</bundles_post_ra>
